<compile_context>
chip_gen: v7x
topology: tpu7x:2x2x1
jax: 0.10.0
libtpu: 0.0.40
codegen_flags: <defaults>
</compile_context>

<pallas_src>
import functools

import jax
import jax.numpy as jnp
from jax.experimental import pallas as pl
from jax.experimental.pallas import tpu as pltpu


def filter_fsattn_kernel(x_ref, wq_ref, wcls_ref, hmat_ref, o_ref, *, dim, heads):
    """Processes TB batch elements per grid step.

    x_ref   : (TB, N, D)   f32   token 0 = CLS, tokens 1..N-1 = queries
    wq_ref  : (D, D)       bf16  to_q weight (transposed), unscaled
    wcls_ref: (D, D+H)     bf16  [ wk^T | (wv^T * w_out) @ hmat ]  fused cls-side weight
    hmat_ref: (D, H)       f32   block-diagonal head indicator * attention scale
    o_ref   : (TB, N, D)   f32
    """
    tb, n, _ = x_ref.shape

    x_all = x_ref[...]                         # (TB, N, D) f32, single full-block load
    cls = x_all[:, 0, :]                       # (TB, D)    CLS token per batch

    # ---- FSAttention gate (= self.fn(x)) -------------------------------------
    # q for ALL tokens (CLS row is masked out of the gate below) -> one fat
    # MXU matmul, no offset-1 sublane slice / compaction.
    q = jnp.dot(x_all.reshape(tb * n, dim).astype(jnp.bfloat16), wq_ref[...],
                preferred_element_type=jnp.float32)            # (TB*N, D)

    # one fused cls-side matmul: [k | w_head]
    #   k[b]      = cls[b] @ wk^T
    #   w_head[b] = per-head sum_d v[b,d]*w_out[d]   (broadcast-back + out-proj pre-fused)
    cls_proj = jnp.dot(cls.astype(jnp.bfloat16), wcls_ref[...],
                       preferred_element_type=jnp.float32)     # (TB, D+H)
    k = cls_proj[:, :dim]                                      # (TB, D)
    w_head = cls_proj[:, dim:]                                 # (TB, H)

    # scores[b,i,h] = scale * <q[b,i], k[b]>_head h   (single key per head)
    # Per-head reduction kept fully in f32; scale is folded into hmat (f32).
    qk = q.reshape(tb, n, dim) * k[:, None, :]                 # (TB, N, D) f32
    scores = jnp.dot(qk.reshape(tb * n, dim), hmat_ref[...],
                     preferred_element_type=jnp.float32)       # (TB*N, H)
    attn = jax.nn.sigmoid(scores).reshape(tb, n, heads)        # f32

    # gate[b,i] = ReLU( sum_h attn[b,i,h] * w_head[b,h] )  == ReLU(to_out(attn * v))
    gate = jnp.sum(attn * w_head[:, None, :], axis=-1, keepdims=True)   # (TB, N, 1)
    gate = jnp.maximum(gate, 0.0)

    # ---- Filter wrapper: cat([cls, fn(x) * rest], dim=1) ---------------------
    # CLS row gets gate == 1.0 exactly (f32), so it passes through bit-exact.
    # One full-block, lane-dense store (no masked vst, no offset-1 write).
    tok = jax.lax.broadcasted_iota(jnp.int32, (tb, n, 1), 1)
    gate_full = jnp.where(tok == 0, jnp.float32(1.0), gate)    # (TB, N, 1)
    o_ref[...] = (gate_full * x_all).astype(o_ref.dtype)


def _pick_batch_tile(b, n, dim, itemsize, target_bytes=1 << 20):
    """Largest divisor of b whose (tb, n, dim) block is <= ~target_bytes."""
    per_elem = n * dim * itemsize
    tb = max(1, min(b, target_bytes // max(per_elem, 1)))
    while b % tb:
        tb -= 1
    return tb


def filter_fs_attention(x, w_q, w_kv, w_out, heads, *, tb=None,
                        split_cores=False, vmem_limit_bytes=None):
    """x: (B, N, D) f32;  w_q: (D, D);  w_kv: (2D, D);  w_out: (1, D).  Returns (B, N, D)."""
    b, n, dim = x.shape
    assert dim % heads == 0
    dh = dim // heads
    scale = float((dim / heads) ** (-0.5))     # matches PyTorch: (dim/heads)**-0.5

    if tb is None:
        # ~0.5-2 MiB blocks amortize the per-grid-step overhead; for small B this
        # collapses to TB=B (grid=1). Re-derive target vs. VMEM if N*D grows.
        tb = _pick_batch_tile(b, n, dim, x.dtype.itemsize)
    assert b % tb == 0, "batch tile must divide batch"

    f32 = jnp.float32
    # head indicator matrix: hmat[d, h] = 1 iff d // dh == h; attention scale folded in (f32).
    hmat = jnp.repeat(jnp.eye(heads, dtype=f32), dh, axis=0)              # (D, H)
    hmat_scaled = hmat * scale                                            # (D, H) f32

    wq_b = w_q.T.astype(jnp.bfloat16)                                     # (D, D)
    wk_t = w_kv[:dim].T.astype(f32)                                       # (D, D)  (chunk 0)
    wv_t = w_kv[dim:].T.astype(f32)                                       # (D, D)  (chunk 1)
    wout_row = w_out.reshape(dim).astype(f32)                             # (D,)
    # fuse broadcast-back + out projection: w_head = cls @ ((wv^T * w_out) @ hmat)
    wvh = (wv_t * wout_row[None, :]) @ hmat                               # (D, H)
    w_cls = jnp.concatenate([wk_t, wvh], axis=1).astype(jnp.bfloat16)     # (D, D+H)

    kernel = functools.partial(filter_fsattn_kernel, dim=dim, heads=heads)

    # v7x: set split_cores=True so the batch-tile axis is genuinely split across
    # the 2 TensorCores (plain "parallel" does not change codegen). Keep the
    # number of grid steps >= 2 and even in that case.
    dim_sem = (pltpu.CORE_PARALLEL,) if split_cores else ("parallel",)

    # NOTE: FSAttention's dropout has p=0.0 and self.bn is unused in forward -> omitted.
    return pl.pallas_call(
        kernel,
        out_shape=jax.ShapeDtypeStruct((b, n, dim), x.dtype),
        grid_spec=pltpu.PrefetchScalarGridSpec(
            num_scalar_prefetch=0,
            grid=(b // tb,),
            in_specs=[
                pl.BlockSpec((tb, n, dim), lambda i: (i, 0, 0)),
                pl.BlockSpec((dim, dim), lambda i: (0, 0)),
                pl.BlockSpec((dim, dim + heads), lambda i: (0, 0)),
                pl.BlockSpec((dim, heads), lambda i: (0, 0)),
            ],
            out_specs=pl.BlockSpec((tb, n, dim), lambda i: (i, 0, 0)),
        ),
        compiler_params=pltpu.CompilerParams(
            dimension_semantics=dim_sem,
            vmem_limit_bytes=vmem_limit_bytes),
    )(x, wq_b, w_cls, hmat_scaled)


def filter_ref(x, w_q, w_kv, w_out, heads):
    """Pure-JAX f32 reference mirroring Filter(FSAttention) exactly."""
    b, n, dim = x.shape
    dh = dim // heads
    scale = (dim / heads) ** (-0.5)
    cls = x[:, :1, :]
    rest = x[:, 1:, :]
    kv = cls @ w_kv.T                               # (B, 1, 2D)
    k, v = kv[..., :dim], kv[..., dim:]
    q = rest @ w_q.T                                # (B, N-1, D)
    qh = q.reshape(b, n - 1, heads, dh).transpose(0, 2, 1, 3)
    kh = k.reshape(b, 1, heads, dh).transpose(0, 2, 1, 3)
    vh = v.reshape(b, 1, heads, dh).transpose(0, 2, 1, 3)
    attn = jax.nn.sigmoid(jnp.einsum('bhid,bhjd->bhij', qh, kh) * scale)
    out = jnp.einsum('bhij,bhjd->bhid', attn, vh)
    out = out.transpose(0, 2, 1, 3).reshape(b, n - 1, dim)
    gate = jnp.maximum(out @ w_out.T, 0.0)          # fn(x): (B, N-1, 1)
    return jnp.concatenate([cls, gate * rest], axis=1)


if __name__ == "__main__":
    B, N, DIM, HEADS = 16, 9, 32, 8     # N-1 = 8 query tokens, dim_head = 4

    key = jax.random.PRNGKey(0)
    kx, kq, kkv, kout = jax.random.split(key, 4)

    x = jax.random.normal(kx, (B, N, DIM), dtype=jnp.float32)
    # deterministic synthetic weights (nn.Linear stores (out_features, in_features))
    bound = 1.0 / (DIM ** 0.5)
    w_q = jax.random.uniform(kq, (DIM, DIM), jnp.float32, -bound, bound)
    w_kv = jax.random.uniform(kkv, (2 * DIM, DIM), jnp.float32, -bound, bound)
    w_out = jax.random.uniform(kout, (1, DIM), jnp.float32, -bound, bound)

    # tb=None -> auto tile; at this toy size that is TB=B (grid=1).
    out = filter_fs_attention(x, w_q, w_kv, w_out, HEADS)
    out = jax.block_until_ready(out)

    ref = filter_ref(x, w_q, w_kv, w_out, HEADS)
    assert out.shape == (B, N, DIM), out.shape
    # CLS rows must pass through exactly (gate == 1.0 in f32)
    assert jnp.array_equal(out[:, 0, :], x[:, 0, :])
    # bf16 matmul operands with f32 accumulation -> relaxed tolerance
    max_err = float(jnp.abs(out - ref).max())
    assert jnp.allclose(out, ref, atol=2e-2, rtol=2e-2), max_err

    print("KERNEL_OK")
</pallas_src>

<mosaic_0001>
module attributes {stable_mosaic.version = 11 : i64} {
  func.func @filter_fsattn_kernel(%arg0: i32, %arg1: memref<16x9x32xf32, #tpu.memory_space<vmem>>, %arg2: memref<32x32xbf16, #tpu.memory_space<vmem>>, %arg3: memref<32x40xbf16, #tpu.memory_space<vmem>>, %arg4: memref<32x8xf32, #tpu.memory_space<vmem>>, %arg5: memref<16x9x32xf32, #tpu.memory_space<vmem>>) attributes {dimension_semantics = [#tpu.dimension_semantics<parallel>], iteration_bounds = array<i64: 1>, scalar_prefetch = 0 : i64, scratch_operands = 0 : i64, tpu.core_type = #tpu.core_type<tc>, window_params = [{transform_indices = @transform_0, window_bounds = array<i64: 16, 9, 32>}, {pipeline_mode = #tpu.pipeline_mode<synchronous>, transform_indices = @transform_1, window_bounds = array<i64: 32, 32>}, {pipeline_mode = #tpu.pipeline_mode<synchronous>, transform_indices = @transform_2, window_bounds = array<i64: 32, 40>}, {pipeline_mode = #tpu.pipeline_mode<synchronous>, transform_indices = @transform_3, window_bounds = array<i64: 32, 8>}, {transform_indices = @transform_4, window_bounds = array<i64: 16, 9, 32>}]} {
    %c0 = arith.constant 0 : index
    %c0_0 = arith.constant 0 : index
    %c0_1 = arith.constant 0 : index
    %0 = vector.load %arg1[%c0, %c0_0, %c0_1] : memref<16x9x32xf32, #tpu.memory_space<vmem>>, vector<16x9x32xf32>
    %1 = vector.extract_strided_slice %0 {offsets = [0, 0, 0], sizes = [16, 1, 32], strides = [1, 1, 1]} : vector<16x9x32xf32> to vector<16x1x32xf32>
    %2 = vector.shape_cast %1 : vector<16x1x32xf32> to vector<16x32xf32>
    %3 = vector.shape_cast %0 : vector<16x9x32xf32> to vector<144x32xf32>
    %4 = arith.truncf %3 : vector<144x32xf32> to vector<144x32xbf16>
    %c0_2 = arith.constant 0 : index
    %c0_3 = arith.constant 0 : index
    %5 = vector.load %arg2[%c0_2, %c0_3] : memref<32x32xbf16, #tpu.memory_space<vmem>>, vector<32x32xbf16>
    %cst = arith.constant dense<0.000000e+00> : vector<144x32xf32>
    %6 = tpu.matmul %4, %5, %cst {dimension_numbers = #tpu.dot_dimension_numbers<[1], [0], [0], [1], [0, 0, 1, 1], [], []>} : vector<144x32xbf16>, vector<32x32xbf16>, vector<144x32xf32> -> vector<144x32xf32>
    %7 = arith.truncf %2 : vector<16x32xf32> to vector<16x32xbf16>
    %c0_4 = arith.constant 0 : index
    %c0_5 = arith.constant 0 : index
    %8 = vector.load %arg3[%c0_4, %c0_5] : memref<32x40xbf16, #tpu.memory_space<vmem>>, vector<32x40xbf16>
    %cst_6 = arith.constant dense<0.000000e+00> : vector<16x40xf32>
    %9 = tpu.matmul %7, %8, %cst_6 {dimension_numbers = #tpu.dot_dimension_numbers<[1], [0], [0], [1], [0, 0, 1, 1], [], []>} : vector<16x32xbf16>, vector<32x40xbf16>, vector<16x40xf32> -> vector<16x40xf32>
    %10 = vector.extract_strided_slice %9 {offsets = [0, 0], sizes = [16, 32], strides = [1, 1]} : vector<16x40xf32> to vector<16x32xf32>
    %11 = vector.extract_strided_slice %9 {offsets = [0, 32], sizes = [16, 8], strides = [1, 1]} : vector<16x40xf32> to vector<16x8xf32>
    %12 = vector.shape_cast %6 : vector<144x32xf32> to vector<16x9x32xf32>
    %13 = vector.shape_cast %10 : vector<16x32xf32> to vector<16x1x32xf32>
    %14 = vector.broadcast %13 : vector<16x1x32xf32> to vector<16x9x32xf32>
    %15 = arith.mulf %12, %14 : vector<16x9x32xf32>
    %16 = vector.shape_cast %15 : vector<16x9x32xf32> to vector<144x32xf32>
    %c0_7 = arith.constant 0 : index
    %c0_8 = arith.constant 0 : index
    %17 = vector.load %arg4[%c0_7, %c0_8] : memref<32x8xf32, #tpu.memory_space<vmem>>, vector<32x8xf32>
    %cst_9 = arith.constant dense<0.000000e+00> : vector<144x8xf32>
    %18 = tpu.matmul %16, %17, %cst_9 {dimension_numbers = #tpu.dot_dimension_numbers<[1], [0], [0], [1], [0, 0, 1, 1], [], []>} : vector<144x32xf32>, vector<32x8xf32>, vector<144x8xf32> -> vector<144x8xf32>
    %19 = arith.negf %18 : vector<144x8xf32>
    %20 = math.exp %19 : vector<144x8xf32>
    %cst_10 = arith.constant 1.000000e+00 : f32
    %21 = vector.broadcast %cst_10 : f32 to vector<144x8xf32>
    %22 = arith.addf %21, %20 : vector<144x8xf32>
    %23 = arith.divf %21, %22 : vector<144x8xf32>
    %24 = vector.shape_cast %23 : vector<144x8xf32> to vector<16x9x8xf32>
    %25 = vector.shape_cast %11 : vector<16x8xf32> to vector<16x1x8xf32>
    %26 = vector.broadcast %25 : vector<16x1x8xf32> to vector<16x9x8xf32>
    %27 = arith.mulf %24, %26 : vector<16x9x8xf32>
    %cst_11 = arith.constant dense<0.000000e+00> : vector<16x9xf32>
    %28 = vector.multi_reduction <add>, %27, %cst_11 [2] : vector<16x9x8xf32> to vector<16x9xf32>
    %29 = vector.shape_cast %28 : vector<16x9xf32> to vector<16x9x1xf32>
    %cst_12 = arith.constant 0.000000e+00 : f32
    %30 = vector.broadcast %cst_12 : f32 to vector<16x9x1xf32>
    %31 = arith.maximumf %29, %30 : vector<16x9x1xf32>
    %32 = tpu.iota {dimensions = array<i32: 1>} : vector<16x9x1xi32>
    %c0_i32 = arith.constant 0 : i32
    %33 = vector.broadcast %c0_i32 : i32 to vector<16x9x1xi32>
    %34 = arith.cmpi eq, %32, %33 : vector<16x9x1xi32>
    %cst_13 = arith.constant 1.000000e+00 : f32
    %35 = vector.broadcast %cst_13 : f32 to vector<16x9x1xf32>
    %36 = arith.select %34, %35, %31 : vector<16x9x1xi1>, vector<16x9x1xf32>
    %37 = vector.broadcast %36 : vector<16x9x1xf32> to vector<16x9x32xf32>
    %38 = arith.mulf %37, %0 : vector<16x9x32xf32>
    %c0_14 = arith.constant 0 : index
    %c0_15 = arith.constant 0 : index
    %c0_16 = arith.constant 0 : index
    %39 = vector.load %arg5[%c0_14, %c0_15, %c0_16] : memref<16x9x32xf32, #tpu.memory_space<vmem>>, vector<16x9x32xf32>
    tpu.vector_store %arg5[%c0_14, %c0_15, %c0_16], %38 {strides = array<i32>} : memref<16x9x32xf32, #tpu.memory_space<vmem>>, vector<16x9x32xf32>,
    return
  }
  func.func @transform_0(%arg0: i32) -> (i32, i32, i32) {
    %c0_i32 = arith.constant 0 : i32
    %c0_i32_0 = arith.constant 0 : i32
    %c0_i32_1 = arith.constant 0 : i32
    return %arg0, %c0_i32, %c0_i32_0 : i32, i32, i32
  }
  func.func @transform_1(%arg0: i32) -> (i32, i32) {
    %c0_i32 = arith.constant 0 : i32
    %c0_i32_0 = arith.constant 0 : i32
    %c0_i32_1 = arith.constant 0 : i32
    return %c0_i32, %c0_i32_0 : i32, i32
  }
  func.func @transform_2(%arg0: i32) -> (i32, i32) {
    %c0_i32 = arith.constant 0 : i32
    %c0_i32_0 = arith.constant 0 : i32
    %c0_i32_1 = arith.constant 0 : i32
    return %c0_i32, %c0_i32_0 : i32, i32
  }
  func.func @transform_3(%arg0: i32) -> (i32, i32) {
    %c0_i32 = arith.constant 0 : i32
    %c0_i32_0 = arith.constant 0 : i32
    %c0_i32_1 = arith.constant 0 : i32
    return %c0_i32, %c0_i32_0 : i32, i32
  }
  func.func @transform_4(%arg0: i32) -> (i32, i32, i32) {
    %c0_i32 = arith.constant 0 : i32
    %c0_i32_0 = arith.constant 0 : i32
    %c0_i32_1 = arith.constant 0 : i32
    return %arg0, %c0_i32, %c0_i32_0 : i32, i32, i32
  }
}

</mosaic_0001>

<bundles_post_ra>
// kernel: tpu_custom_call.1
= control target key start
LH: loop header
LB: loop body
LE: loop exit
PB: predicated region body
PF: predicated region fallthrough
CT: control target
= control target key end

     0   :  { %v86_v0 = vlaneseq  ;;  %v9218_v1 = vmov 0.0   ;;  %v9219_v3 = vmov 1966171168   ;;  %vm9220_vm0 = vmmov 0   ;;  %s12847_s1 = inlined_call_operand.vmem [shape: bf16[32,32], index: 1, kind: input, shape index: {}]   ;;  %s12848_s0 = inlined_call_operand.vmem [shape: f32[16,9,32], index: 0, kind: input, shape index: {}]   ;;  %s12849_s2 = inlined_call_operand.vmem [shape: bf16[32,40], index: 2, kind: input, shape index: {}]   ;;  %s12850_s3 = inlined_call_operand.vmem [shape: f32[32,8], index: 3, kind: input, shape index: {}]   ;;  %s12851_s4 = inlined_call_operand.vmem [shape: f32[16,9,32], index: 4, kind: output, shape index: {}]  }
   0x1   :  { %9070 = vmatprep.subr.bf16.mxu1 %v9218_v1  ;;  %8979 = vmatprep.subr.bf16.mxu0 %v9218_v1  ;;  %v9078_v2 = vld [vmem:[%s12847_s1] sm:$0xff]   ;;  %v84_v4 = vunpack.c.l.s4 %v9219_v3  ;;  %v9079_v6 = vld [vmem:[%s12847_s1 + $0x8] sm:$0xff]   ;;  %v20_v8 = vld [vmem:[%s12848_s0 + $0x10] sm:$0xff]  ;;  %vm2015_vm1 = vcmask 261120   ;;  %vm2201_vm2 = vcmask 1041409   ;;  %vm2204_vm3 = vcmask 1042434  }
   0x2   :  { %8983 = vmatprep.mubr.msk.bf16.mxu0 %vm9220_vm0, %v9218_v1  ;;  %9015 = vmatprep.mubr.msk.bf16.mxu1 %vm9220_vm0, %v9218_v1  ;;  %v9256_v5 = vshrl.u32 %v86_v0, 7  ;;  %v18_v7 = vld [vmem:[%s12848_s0] sm:$0xff]  ;;  %v9202_v10 = vld.sshfl [vmem:[%s12848_s0 + $0x8] sm:$0x1 pattern:$0x75316420]  ;;  %v145_v12 = vcombine.high %v20_v8, %v20_v8  ;;  %v2149_v17 = vpack.c.bf16 %v20_v8, %v20_v8 }
   0x3   :  { %9072 = vmatpush3.bf16.msra.mxu1 %v9078_v2  ;;  %8980 = vmatpush3.bf16.msra.mxu0 %v9078_v2  ;;  %v85_v9 = vunpack.c.0.s8 %v84_v4  ;;  %v82_v11 = vcombine.high %v18_v7, %v18_v7  ;;  %v2148_v13 = vpack.c.bf16 %v18_v7, %v18_v7  ;;  %v9275_v14 = vld [vmem:[%s12848_s0 + $0xe0] sm:$0xff]  ;;  %v9280_v15 = vld [vmem:[%s12848_s0 + $0xf0] sm:$0xff]  ;;  %v9203_v61 = vld.sshfl [vmem:[%s12848_s0 + $0xe8] sm:$0x1 pattern:$0x75316420] }
   0x4   :  { %13005 = vst [vmem:[#allocation2_spill] sm:$0xff] %v9256_v5  ;;  %9071 = vmatprep.subr.bf16.mxu1 %v9218_v1  ;;  %8981 = vmatprep.subr.bf16.mxu0 %v9218_v1  ;;  %v964_v18 = vcombine.high %v9275_v14, %v9275_v14  ;;  %v1027_v20 = vcombine.high %v9280_v15, %v9280_v15  ;;  %v9297_v25 = vunpack.c.l.b16 %v2149_v17  ;;  %vm2207_vm4 = vcmask 1043459  }
   0x5   :  { %v9283_v16 = vsub.s32 %v85_v9, %v9256_v5  ;;  %v9287_v19 = vunpack.c.l.b16 %v2148_v13  ;;  %v2162_v21 = vpack.c.bf16 %v9275_v14, %v9275_v14  ;;  %v2163_v22 = vpack.c.bf16 %v9280_v15, %v9280_v15 }
   0x6   :  { %v2200_v41 = vrot.slane %v9297_v25, 7  ;;  %vm2210_vm5 = vcmask 1044484   ;;  %vm2213_vm6 = vcmask 1045509   ;;  %vm2216_vm7 = vcmask 1046534  }
   0x7   :  { %9073 = vmatpush3.bf16.msra.mxu1 %v9079_v6  ;;  %8982 = vmatpush3.bf16.msra.mxu0 %v9079_v6  ;;  %v89_v23 = vrot.slane %v18_v7, %v9283_v16  ;;  %v96_v24 = vrot.slane %v82_v11, %v9283_v16  ;;  %v152_v26 = vrot.slane %v20_v8, %v9283_v16  ;;  %v9204_v8 = vld.sshfl [vmem:[%s12848_s0 + $0xf8] sm:$0x1 pattern:$0x75316420]  ;;  %vm2219_vm8 = vcmask 1047559  }
   0x8   :  { %9019 = vmatprep.subr.bf16.mxu1 %v9218_v1  ;;  %v159_v27 = vrot.slane %v145_v12, %v9283_v16  ;;  %v971_v28 = vrot.slane %v9275_v14, %v9283_v16  ;;  %v978_v29 = vrot.slane %v964_v18, %v9283_v16  ;;  %v144_v34 = vrot.slane %v9202_v10, %v9283_v16 }
   0x9   :  { %v97_v30 = vcombine.high %v89_v23, %v89_v23  ;;  %v98_v31 = vcombine.high %v96_v24, %v96_v24  ;;  %v105_v32 = vrot.slane %v89_v23, %v9283_v16  ;;  %v112_v33 = vrot.slane %v96_v24, %v9283_v16 }
   0xa   :  { %v160_v35 = vcombine.high %v152_v26, %v152_v26  ;;  %v161_v36 = vcombine.high %v159_v27, %v159_v27  ;;  %v168_v37 = vrot.slane %v152_v26, %v9283_v16  ;;  %v175_v40 = vrot.slane %v159_v27, %v9283_v16 }
   0xb   :  { %v119_v38 = vrot.slane %v97_v30, %v9283_v16  ;;  %v126_v39 = vrot.slane %v98_v31, %v9283_v16  ;;  %v979_v62 = vcombine.high %v971_v28, %v971_v28  ;;  %v980_v2 = vcombine.high %v978_v29, %v978_v29 }
   0xc   :  { %v182_v42 = vrot.slane %v160_v35, %v9283_v16  ;;  %v9315_v43 = vrot.slane %v161_v36, %v9283_v16  ;;  %v190_v44 = vcombine.high %v168_v37, %v168_v37  ;;  %v1139_v45 = vcombine.low %v144_v34, %v168_v37 }
   0xd   :  { %v191_v46 = vcombine.high %v175_v40, %v175_v40  ;;  %v1090_v47 = vcombine.low %v105_v32, %v119_v38  ;;  %v8877_v48 = vcombine.high %v105_v32, %v119_v38  ;;  %v1092_v49 = vcombine.low %v112_v33, %v126_v39 }
   0xe   :  { %v192_v50 = vcombine.high %v182_v42, %v182_v42  ;;  %v8878_v51 = vcombine.high %v112_v33, %v126_v39  ;;  %v1140_v52 = vcombine.low %v182_v42, %v190_v44  ;;  %v1149_v53 = vrot.slane %v1139_v45, %v9283_v16  ;;  %v9205_v45 = vld.sshfl [vmem:[%s12848_s0 + $0x18] sm:$0x1 pattern:$0x75316420] }
   0xf   :  { %v1100_v54 = vrot.slane %v1090_v47, %v9283_v16  ;;  %v1107_v55 = vrot.slane %v8877_v48, %v9283_v16  ;;  %v1114_v56 = vrot.slane %v1092_v49, %v9283_v16  ;;  %v1142_v57 = vcombine.low %v9315_v43, %v191_v46 }
  0x10   :  { %v1121_v58 = vrot.slane %v8878_v51, %v9283_v16  ;;  %v1141_v59 = vcombine.low %v192_v50, %v175_v40  ;;  %v1156_v60 = vrot.slane %v1140_v52, %v9283_v16  ;;  %v9329_v3 = vrot.slane %v971_v28, %v9283_v16 }
  0x11   :  { %v1122_v63 = vcombine.low %v1100_v54, %v1107_v55  ;;  %v1170_v0 = vrot.slane %v1142_v57, %v9283_v16  ;;  %v994_v9 = vrot.slane %v978_v29, %v9283_v16  ;;  %v9338_v11 = vrot.slane %v979_v62, %v9283_v16  ;;  %v9368_v54 = vld [vmem:[%s12848_s0 + $0x20] sm:$0xff]  ;;  %v9206_v57 = vld.sshfl [vmem:[%s12848_s0 + $0x28] sm:$0x1 pattern:$0x75316420] }
  0x12   :  { %v1123_v4 = vcombine.low %v1114_v56, %v1121_v58  ;;  %v1163_v6 = vrot.slane %v1141_v59, %v9283_v16  ;;  %v1171_v7 = vcombine.low %v1149_v53, %v1156_v60  ;;  %v1008_v12 = vrot.slane %v980_v2, %v9283_v16 }
  0x13   :  { %v1130_v10 = vrot.slane %v1122_v63, %v9283_v16  ;;  %v1034_v23 = vrot.slane %v9280_v15, %v9283_v16  ;;  %v1026_v24 = vrot.slane %v9203_v61, %v9283_v16  ;;  %v1041_v26 = vrot.slane %v1027_v20, %v9283_v16  ;;  %v9383_v63 = vld [vmem:[%s12848_s0 + $0x30] sm:$0xff] }
  0x14   :  { %v1137_v13 = vrot.slane %v1123_v4, %v9283_v16  ;;  %v1172_v17 = vcombine.low %v1163_v6, %v1170_v0  ;;  %v1179_v18 = vrot.slane %v1171_v7, %v9283_v16  ;;  %v8891_v27 = vcombine.high %v9329_v3, %v9338_v11 }
  0x15   :  { %v1042_v30 = vcombine.high %v1034_v23, %v1034_v23  ;;  %v1050_v31 = vrot.slane %v1034_v23, %v9283_v16  ;;  %v1043_v32 = vcombine.high %v1041_v26, %v1041_v26  ;;  %v1057_v33 = vrot.slane %v1041_v26, %v9283_v16 }
  0x16   :  { %v1138_v28 = vcombine.low %v1130_v10, %v1137_v13  ;;  %v1186_v29 = vrot.slane %v1172_v17, %v9283_v16  ;;  %v1089_v34 = vrot.slane %v9204_v8, %v9283_v16  ;;  %v1875_v35 = vcombine.low %v994_v9, %v1008_v12 }
  0x17   :  { %v1064_v37 = vrot.slane %v1042_v30, %v9283_v16  ;;  %v1072_v38 = vcombine.high %v1050_v31, %v1050_v31  ;;  %v8892_v20 = vcombine.high %v994_v9, %v1008_v12  ;;  %v1071_v39 = vrot.slane %v1043_v32, %v9283_v16 }
  0x18   :  { %v1187_v36 = vcombine.low %v1179_v18, %v1186_v29  ;;  %v1073_v40 = vcombine.high %v1057_v33, %v1057_v33  ;;  %v1877_v42 = vcombine.low %v1026_v24, %v1050_v31  ;;  %v1884_v44 = vrot.slane %v8891_v27, %v9283_v16 }
  0x19   :  { %v1074_v47 = vcombine.high %v1064_v37, %v1064_v37  ;;  %v1891_v48 = vrot.slane %v1875_v35, %v9283_v16  ;;  %v1898_v49 = vrot.slane %v8892_v20, %v9283_v16  ;;  %v1075_v50 = vcombine.high %v1071_v39, %v1071_v39 }
  0x1a   :  { %v1990_v46 = vpack.c.bf16 %v1187_v36, %v1138_v28  ;;  %v1905_v51 = vrot.slane %v1877_v42, %v9283_v16  ;;  %v1923_v52 = vcombine.low %v1064_v37, %v1072_v38  ;;  %v1925_v53 = vcombine.low %v1071_v39, %v1073_v40  ;;  %v9084_v42 = vld [vmem:[%s12849_s2] sm:$0xff]  }
  0x1b   :  { %v1906_v55 = vcombine.low %v1884_v44, %v1891_v48  ;;  %v1924_v56 = vcombine.low %v1074_v47, %v1057_v33  ;;  %v193_v58 = vcombine.high %v9315_v43, %v9315_v43  ;;  %v1926_v60 = vcombine.low %v1075_v50, %v1089_v34 }
  0x1c   :  { %8984 = vmatmul.mubr.msk.bf16.vlgmr.msra.gmra.mrb[0].mxu0 %vm2015_vm1, %v1990_v46  ;;  %v1907_v59 = vcombine.low %v1898_v49, %v1905_v51  ;;  %v1933_v61 = vrot.slane %v1923_v52, %v9283_v16  ;;  %v1947_v62 = vrot.slane %v1925_v53, %v9283_v16  ;;  %v207_v43 = vrot.slane %v9205_v45, %v9283_v16 }
  0x1d   :  { %8987 = vmatprep.mubr.msk.bf16.mxu0 %vm9220_vm0, %v9218_v1  ;;  %v1914_v0 = vrot.slane %v1906_v55, %v9283_v16  ;;  %v1940_v2 = vrot.slane %v1924_v56, %v9283_v16  ;;  %v208_v4 = vcombine.high %v9368_v54, %v9368_v54  ;;  %v1954_v7 = vrot.slane %v1926_v60, %v9283_v16  ;;  %v9427_v56 = vld [vmem:[%s12848_s0 + $0x40] sm:$0xff] }
  0x1e   :  { %v1921_v6 = vrot.slane %v1907_v59, %v9283_v16  ;;  %v215_v8 = vrot.slane %v9368_v54, %v9283_v16  ;;  %v271_v12 = vcombine.high %v9383_v63, %v9383_v63  ;;  %v278_v13 = vrot.slane %v9383_v63, %v9283_v16 }
  0x1f   :  { %v1955_v9 = vcombine.low %v1933_v61, %v1940_v2  ;;  %v222_v10 = vrot.slane %v208_v4, %v9283_v16  ;;  %v1956_v18 = vcombine.low %v1947_v62, %v1954_v7  ;;  %v270_v29 = vrot.slane %v9206_v57, %v9283_v16  ;;  %v9432_v57 = vld [vmem:[%s12848_s0 + $0x50] sm:$0xff]  ;;  %v9443_v62 = vld [vmem:[%s12848_s0 + $0x60] sm:$0xff] }
  0x20   :  { %v1922_v17 = vcombine.low %v1914_v0, %v1921_v6  ;;  %v223_v23 = vcombine.high %v215_v8, %v215_v8  ;;  %v231_v24 = vrot.slane %v215_v8, %v9283_v16  ;;  %v9406_v32 = vrot.slane %v271_v12, %v9283_v16  ;;  %v9448_v0 = vld [vmem:[%s12848_s0 + $0x70] sm:$0xff]  ;;  %v9459_v7 = vld [vmem:[%s12848_s0 + $0x80] sm:$0xff] }
  0x21   :  { %v1963_v26 = vrot.slane %v1955_v9, %v9283_v16  ;;  %v224_v27 = vcombine.high %v222_v10, %v222_v10  ;;  %v238_v28 = vrot.slane %v222_v10, %v9283_v16  ;;  %v1970_v30 = vrot.slane %v1956_v18, %v9283_v16  ;;  %v9464_v8 = vld [vmem:[%s12848_s0 + $0x90] sm:$0xff] }
  0x22   :  { %v245_v31 = vrot.slane %v223_v23, %v9283_v16  ;;  %v286_v33 = vcombine.high %v278_v13, %v278_v13  ;;  %v294_v35 = vrot.slane %v278_v13, %v9283_v16  ;;  %v1188_v36 = vcombine.low %v193_v58, %v207_v43  ;;  %v9085_v58 = vld [vmem:[%s12849_s2 + $0x8] sm:$0xff]   ;;  %v9477_v13 = vld [vmem:[%s12848_s0 + $0xb0] sm:$0xff] }
  0x23   :  { %v252_v34 = vrot.slane %v224_v27, %v9283_v16  ;;  %v2150_v37 = vpack.c.bf16 %v9368_v54, %v9368_v54  ;;  %v1971_v38 = vcombine.low %v1963_v26, %v1970_v30  ;;  %v9414_v20 = vrot.slane %v9406_v32, %v9283_v16  ;;  %v9492_v27 = vld [vmem:[%s12848_s0 + $0xd0] sm:$0xff] }
  0x24   :  { %v308_v39 = vrot.slane %v286_v33, %v9283_v16  ;;  %v1189_v40 = vcombine.low %v231_v24, %v245_v31  ;;  %v316_v44 = vcombine.high %v294_v35, %v294_v35  ;;  %v8879_v45 = vcombine.high %v231_v24, %v245_v31 }
  0x25   :  { %v1191_v46 = vcombine.low %v238_v28, %v252_v34  ;;  %v1198_v47 = vrot.slane %v1188_v36, %v9283_v16  ;;  %v1998_v48 = vpack.c.bf16 %v1971_v38, %v1922_v17  ;;  %v8880_v51 = vcombine.high %v238_v28, %v252_v34  ;;  %v9482_v17 = vld [vmem:[%s12848_s0 + $0xc0] sm:$0xff] }
  0x26   :  { %v318_v49 = vcombine.high %v308_v39, %v308_v39  ;;  %v1205_v50 = vrot.slane %v1189_v40, %v9283_v16  ;;  %v1212_v52 = vrot.slane %v8879_v45, %v9283_v16  ;;  %v1238_v54 = vcombine.low %v270_v29, %v294_v35 }
  0x27   :  { %v1219_v53 = vrot.slane %v1191_v46, %v9283_v16  ;;  %v1239_v55 = vcombine.low %v308_v39, %v316_v44  ;;  %9016 = vmatmul.mubr.msk.bf16.vlgmr.msra.gmra.mrb[0].mxu1 %vm2015_vm1, %v1998_v48  ;;  %v1247_v61 = vrot.slane %v8880_v51, %v9283_v16  ;;  %v2151_v2 = vpack.c.bf16 %v9383_v63, %v9383_v63  ;;  %v9469_v63 = vld [vmem:[%s12848_s0 + $0xa0] sm:$0xff] }
  0x28   :  { %v1220_v59 = vcombine.low %v1198_v47, %v1205_v50  ;;  %v1240_v60 = vcombine.low %v318_v49, %v9414_v20  ;;  %9020 = vmatpush3.bf16.msra.mxu1 %v9084_v42  ;;  %9023 = vmatprep.mubr.msk.bf16.mxu1 %vm9220_vm0, %v9218_v1  ;;  %v1254_v4 = vrot.slane %v1238_v54, %v9283_v16  ;;  %v2186_v9 = vunpack.c.l.b16 %v2150_v37 }
  0x29   :  { %v1221_v43 = vcombine.low %v1212_v52, %v1219_v53  ;;  %v1261_v6 = vrot.slane %v1239_v55, %v9283_v16  ;;  %9021 = vmatprep.subr.bf16.mxu1 %v9218_v1  ;;  %v2152_v18 = vpack.c.bf16 %v9427_v56, %v9427_v56  ;;  %v2153_v23 = vpack.c.bf16 %v9432_v57, %v9432_v57 }
  0x2a   :  { %v1228_v10 = vrot.slane %v1220_v59, %v9283_v16  ;;  %v1268_v12 = vrot.slane %v1240_v60, %v9283_v16  ;;  %v1269_v26 = vcombine.low %v1247_v61, %v1254_v4  ;;  %v2154_v28 = vpack.c.bf16 %v9443_v62, %v9443_v62 }
  0x2b   :  { %v1235_v24 = vrot.slane %v1221_v43, %v9283_v16  ;;  %v2155_v29 = vpack.c.bf16 %v9448_v0, %v9448_v0  ;;  %v2156_v31 = vpack.c.bf16 %v9459_v7, %v9459_v7  ;;  %v2157_v33 = vpack.c.bf16 %v9464_v8, %v9464_v8 }
  0x2c   :  { %v1270_v30 = vcombine.low %v1261_v6, %v1268_v12  ;;  %v2158_v34 = vpack.c.bf16 %v9469_v63, %v9469_v63  ;;  %9022 = vmatpush3.bf16.msra.mxu1 %v9085_v58  ;;  %v1277_v36 = vrot.slane %v1269_v26, %v9283_v16  ;;  %v2159_v37 = vpack.c.bf16 %v9477_v13, %v9477_v13 }
  0x2d   :  { %v1236_v35 = vcombine.low %v1228_v10, %v1235_v24  ;;  %v2160_v38 = vpack.c.bf16 %v9482_v17, %v9482_v17  ;;  %v2161_v40 = vpack.c.bf16 %v9492_v27, %v9492_v27  ;;  %v2187_v42 = vunpack.c.l.b16 %v2151_v2 }
  0x2e   :  { %v1284_v39 = vrot.slane %v1270_v30, %v9283_v16  ;;  %v2188_v44 = vunpack.c.l.b16 %v2152_v18  ;;  %v2189_v45 = vunpack.c.l.b16 %v2153_v23  ;;  %v2190_v46 = vunpack.c.l.b16 %v2154_v28  ;;  %v9208_v28 = vld.sshfl [vmem:[%s12848_s0 + $0x48] sm:$0x1 pattern:$0x75316420] }
  0x2f   :  { %v2191_v47 = vunpack.c.l.b16 %v2155_v29  ;;  %v2192_v48 = vunpack.c.l.b16 %v2156_v31  ;;  %v2193_v50 = vunpack.c.l.b16 %v2157_v33  ;;  %v2194_v51 = vunpack.c.l.b16 %v2158_v34 }
  0x30   :  { %v1285_v49 = vcombine.low %v1277_v36, %v1284_v39  ;;  %v2195_v52 = vunpack.c.l.b16 %v2159_v37  ;;  %v2196_v53 = vunpack.c.l.b16 %v2160_v38  ;;  %v2197_v54 = vunpack.c.l.b16 %v2161_v40 }
  0x31   :  { %v2198_v55 = vunpack.c.l.b16 %v2162_v21  ;;  %v2199_v58 = vunpack.c.l.b16 %v2163_v22  ;;  %v2202_v60 = vsel %vm2201_vm2, %v2200_v41, %v9287_v19  ;;  %v2203_v61 = vrot.slane %v2186_v9, 6  ;;  %v9207_v19 = vld.sshfl [vmem:[%s12848_s0 + $0x38] sm:$0x1 pattern:$0x75316420] }
  0x32   :  { %v1991_v59 = vpack.c.bf16 %v1285_v49, %v1236_v35  ;;  %v2206_v2 = vrot.slane %v2187_v42, 5  ;;  %v2209_v43 = vrot.slane %v2188_v44, 4  ;;  %v2212_v4 = vrot.slane %v2189_v45, 3 }
  0x33   :  { %v2215_v6 = vrot.slane %v2190_v46, 2  ;;  %v2205_v14 = vsel %vm2204_vm3, %v2203_v61, %v2202_v60  ;;  %v2218_v21 = vrot.slane %v2191_v47, 1  ;;  %v2221_v22 = vrot.slane %v2193_v50, 7 }
  0x34   :  { %8988 = vmatmul.mubr.msk.bf16.gmra.mrb[4].mxu0 %vm2015_vm1, %v1991_v59  ;;  %v2208_v15 = vsel %vm2207_vm4, %v2206_v2, %v2205_v14  ;;  %v2223_v10 = vrot.slane %v2194_v51, 6  ;;  %v2225_v25 = vrot.slane %v2195_v52, 5  ;;  %v2227_v9 = vrot.slane %v2196_v53, 4 }
  0x35   :  { %8991 = vmatprep.mubr.msk.bf16.mxu0 %vm9220_vm0, %v9218_v1  ;;  %v2211_v41 = vsel %vm2210_vm5, %v2209_v43, %v2208_v15  ;;  %v2229_v12 = vrot.slane %v2197_v54, 3  ;;  %v2231_v18 = vrot.slane %v2198_v55, 2  ;;  %v2222_v24 = vsel %vm2201_vm2, %v2221_v22, %v2192_v48 }
  0x36   :  { %v2214_v23 = vsel %vm2213_vm6, %v2212_v4, %v2211_v41  ;;  %v2233_v26 = vrot.slane %v2199_v58, 1  ;;  %v287_v29 = vcombine.high %v9406_v32, %v9406_v32  ;;  %v2224_v31 = vsel %vm2204_vm3, %v2223_v10, %v2222_v24 }
  0x37   :  { %v2217_v30 = vsel %vm2216_vm7, %v2215_v6, %v2214_v23  ;;  %v317_v33 = vcombine.high %v9414_v20, %v9414_v20  ;;  %v2226_v35 = vsel %vm2207_vm4, %v2225_v25, %v2224_v31  ;;  %v334_v37 = vcombine.high %v9427_v56, %v9427_v56 }
  0x38   :  { %v2220_v34 = vsel %vm2219_vm8, %v2218_v21, %v2217_v30  ;;  %v315_v36 = vrot.slane %v287_v29, %v9283_v16  ;;  %v2228_v38 = vsel %vm2210_vm5, %v2227_v9, %v2226_v35  ;;  %v333_v32 = vrot.slane %v9207_v19, %v9283_v16 }
  0x39   :  { %v341_v39 = vrot.slane %v9427_v56, %v9283_v16  ;;  %v2230_v40 = vsel %vm2213_vm6, %v2229_v12, %v2228_v38  ;;  %v348_v20 = vrot.slane %v334_v37, %v9283_v16  ;;  %v404_v44 = vrot.slane %v9432_v57, %v9283_v16 }
  0x3a   :  { %v319_v42 = vcombine.high %v315_v36, %v315_v36  ;;  %v2232_v45 = vsel %vm2216_vm7, %v2231_v18, %v2230_v40  ;;  %v396_v48 = vrot.slane %v9208_v28, %v9283_v16  ;;  %v1286_v55 = vcombine.low %v315_v36, %v317_v33  ;;  %v9210_v33 = vld.sshfl [vmem:[%s12848_s0 + $0x68] sm:$0x1 pattern:$0x75316420] }
  0x3b   :  { %v349_v46 = vcombine.high %v341_v39, %v341_v39  ;;  %v357_v47 = vrot.slane %v341_v39, %v9283_v16  ;;  %v2234_v49 = vsel %vm2219_vm8, %v2233_v26, %v2232_v45  ;;  %v350_v50 = vcombine.high %v348_v20, %v348_v20 }
  0x3c   :  { %v364_v56 = vrot.slane %v348_v20, %v9283_v16  ;;  %v412_v51 = vcombine.high %v404_v44, %v404_v44  ;;  %v2235_v52 = vpack.c.b16 %v2234_v49, %v2220_v34  ;;  %v420_v54 = vrot.slane %v404_v44, %v9283_v16 }
  0x3d   :  { %v371_v53 = vrot.slane %v349_v46, %v9283_v16  ;;  %v378_v58 = vrot.slane %v350_v50, %v9283_v16  ;;  %v1287_v60 = vcombine.low %v319_v42, %v333_v32  ;;  %v397_v61 = vcombine.high %v9432_v57, %v9432_v57  ;;  %v9209_v57 = vld.sshfl [vmem:[%s12848_s0 + $0x58] sm:$0x1 pattern:$0x75316420] }
  0x3e   :  { %v434_v59 = vrot.slane %v412_v51, %v9283_v16  ;;  %9024 = vmatmul.mubr.msk.bf16.vlgmr.msra.gmra.mrb[4].mxu1 %vm2015_vm1, %v2235_v52  ;;  %v442_v2 = vcombine.high %v420_v54, %v420_v54  ;;  %v1296_v6 = vrot.slane %v1286_v55, %v9283_v16  ;;  %v1337_v22 = vcombine.low %v396_v48, %v420_v54 }
  0x3f   :  { %v1288_v43 = vcombine.low %v357_v47, %v371_v53  ;;  %v8881_v4 = vcombine.high %v357_v47, %v371_v53  ;;  %v1303_v14 = vrot.slane %v1287_v60, %v9283_v16  ;;  %v1335_v21 = vcombine.low %v364_v56, %v378_v58 }
  0x40   :  { %v8882_v15 = vcombine.high %v364_v56, %v378_v58  ;;  %v1338_v19 = vcombine.low %v434_v59, %v442_v2  ;;  %v411_v41 = vrot.slane %v397_v61, %v9283_v16  ;;  %v1359_v23 = vrot.slane %v1337_v22, %v9283_v16 }
  0x41   :  { %v1310_v10 = vrot.slane %v1288_v43, %v9283_v16  ;;  %v1317_v25 = vrot.slane %v8881_v4, %v9283_v16  ;;  %v1318_v9 = vcombine.low %v1296_v6, %v1303_v14  ;;  %v1345_v12 = vrot.slane %v1335_v21, %v9283_v16 }
  0x42   :  { %v1352_v18 = vrot.slane %v8882_v15, %v9283_v16  ;;  %v1366_v26 = vrot.slane %v1338_v19, %v9283_v16  ;;  %v413_v28 = vcombine.high %v411_v41, %v411_v41  ;;  %v427_v29 = vrot.slane %v411_v41, %v9283_v16  ;;  %v9211_v41 = vld.sshfl [vmem:[%s12848_s0 + $0x78] sm:$0x1 pattern:$0x75316420] }
  0x43   :  { %v1319_v24 = vcombine.low %v1310_v10, %v1317_v25  ;;  %v1326_v30 = vrot.slane %v1318_v9, %v9283_v16  ;;  %v444_v34 = vcombine.high %v434_v59, %v434_v59  ;;  %v459_v39 = vrot.slane %v9209_v57, %v9283_v16 }
  0x44   :  { %v1367_v31 = vcombine.low %v1345_v12, %v1352_v18  ;;  %v1368_v36 = vcombine.low %v1359_v23, %v1366_v26  ;;  %v441_v37 = vrot.slane %v413_v28, %v9283_v16  ;;  %v443_v38 = vcombine.high %v427_v29, %v427_v29 }
  0x45   :  { %v1333_v35 = vrot.slane %v1319_v24, %v9283_v16  ;;  %v460_v40 = vcombine.high %v9443_v62, %v9443_v62  ;;  %v467_v42 = vrot.slane %v9443_v62, %v9283_v16  ;;  %v530_v49 = vrot.slane %v9448_v0, %v9283_v16 }
  0x46   :  { %v1375_v32 = vrot.slane %v1367_v31, %v9283_v16  ;;  %v1382_v44 = vrot.slane %v1368_v36, %v9283_v16  ;;  %v445_v45 = vcombine.high %v441_v37, %v441_v37  ;;  %v522_v56 = vrot.slane %v9210_v33, %v9283_v16 }
  0x47   :  { %v1334_v20 = vcombine.low %v1326_v30, %v1333_v35  ;;  %v474_v46 = vrot.slane %v460_v40, %v9283_v16  ;;  %v475_v47 = vcombine.high %v467_v42, %v467_v42  ;;  %v483_v48 = vrot.slane %v467_v42, %v9283_v16 }
  0x48   :  { %v1383_v50 = vcombine.low %v1375_v32, %v1382_v44  ;;  %v1384_v51 = vcombine.low %v444_v34, %v427_v29  ;;  %v1385_v52 = vcombine.low %v441_v37, %v443_v38  ;;  %v546_v55 = vrot.slane %v530_v49, %v9283_v16 }
  0x49   :  { %v476_v53 = vcombine.high %v474_v46, %v474_v46  ;;  %v490_v62 = vrot.slane %v474_v46, %v9283_v16  ;;  %v497_v54 = vrot.slane %v475_v47, %v9283_v16  ;;  %v1386_v59 = vcombine.low %v445_v45, %v459_v39 }
  0x4a   :  { %v1992_v58 = vpack.c.bf16 %v1383_v50, %v1334_v20  ;;  %v1394_v60 = vrot.slane %v1384_v51, %v9283_v16  ;;  %v1401_v61 = vrot.slane %v1385_v52, %v9283_v16  ;;  %v1436_v6 = vcombine.low %v522_v56, %v546_v55 }
  0x4b   :  { %v504_v2 = vrot.slane %v476_v53, %v9283_v16  ;;  %v1387_v43 = vcombine.low %v483_v48, %v497_v54  ;;  %v8883_v4 = vcombine.high %v483_v48, %v497_v54  ;;  %v1408_v14 = vrot.slane %v1386_v59, %v9283_v16 }
  0x4c   :  { %8992 = vmatmul.mubr.msk.bf16.gmra.mrb[8].mxu0 %vm2015_vm1, %v1992_v58  ;;  %v1416_v21 = vcombine.low %v1394_v60, %v1401_v61  ;;  %v523_v15 = vcombine.high %v9448_v0, %v9448_v0  ;;  %v538_v22 = vcombine.high %v530_v49, %v530_v49  ;;  %v1464_v12 = vrot.slane %v1436_v6, %v9283_v16  ;;  %v9212_v49 = vld.sshfl [vmem:[%s12848_s0 + $0x88] sm:$0x1 pattern:$0x75316420] }
  0x4d   :  { %8995 = vmatprep.mubr.msk.bf16.mxu0 %vm9220_vm0, %v9218_v1  ;;  %v1415_v10 = vrot.slane %v1387_v43, %v9283_v16  ;;  %v1434_v25 = vcombine.low %v490_v62, %v504_v2  ;;  %v8884_v19 = vcombine.high %v490_v62, %v504_v2  ;;  %v1443_v57 = vrot.slane %v8883_v4, %v9283_v16 }
  0x4e   :  { %v1424_v9 = vrot.slane %v1416_v21, %v9283_v16  ;;  %v537_v0 = vrot.slane %v523_v15, %v9283_v16  ;;  %v560_v18 = vrot.slane %v538_v22, %v9283_v16  ;;  %v568_v28 = vcombine.high %v546_v55, %v546_v55  ;;  %v9213_v21 = vld.sshfl [vmem:[%s12848_s0 + $0x98] sm:$0x1 pattern:$0x75316420] }
  0x4f   :  { %v1417_v23 = vcombine.low %v1408_v14, %v1415_v10  ;;  %v1450_v24 = vrot.slane %v1434_v25, %v9283_v16  ;;  %v1457_v26 = vrot.slane %v8884_v19, %v9283_v16  ;;  %v586_v36 = vcombine.high %v9459_v7, %v9459_v7 }
  0x50   :  { %v539_v29 = vcombine.high %v537_v0, %v537_v0  ;;  %v553_v30 = vrot.slane %v537_v0, %v9283_v16  ;;  %v570_v31 = vcombine.high %v560_v18, %v560_v18  ;;  %v585_v32 = vrot.slane %v9211_v41, %v9283_v16 }
  0x51   :  { %v1431_v33 = vrot.slane %v1417_v23, %v9283_v16  ;;  %v1465_v34 = vcombine.low %v1443_v57, %v1450_v24  ;;  %v1466_v35 = vcombine.low %v1457_v26, %v1464_v12  ;;  %v593_v39 = vrot.slane %v9459_v7, %v9283_v16 }
  0x52   :  { %v567_v37 = vrot.slane %v539_v29, %v9283_v16  ;;  %v569_v38 = vcombine.high %v553_v30, %v553_v30  ;;  %v600_v44 = vrot.slane %v586_v36, %v9283_v16  ;;  %v1482_v48 = vcombine.low %v560_v18, %v568_v28 }
  0x53   :  { %v1432_v40 = vcombine.low %v1424_v9, %v1431_v33  ;;  %v1473_v42 = vrot.slane %v1465_v34, %v9283_v16  ;;  %v1480_v20 = vrot.slane %v1466_v35, %v9283_v16  ;;  %v601_v46 = vcombine.high %v593_v39, %v593_v39 }
  0x54   :  { %v571_v45 = vcombine.high %v567_v37, %v567_v37  ;;  %v609_v47 = vrot.slane %v593_v39, %v9283_v16  ;;  %v602_v56 = vcombine.high %v600_v44, %v600_v44  ;;  %v616_v7 = vrot.slane %v600_v44, %v9283_v16 }
  0x55   :  { %v1481_v50 = vcombine.low %v1473_v42, %v1480_v20  ;;  %v1483_v51 = vcombine.low %v570_v31, %v553_v30  ;;  %v623_v52 = vrot.slane %v601_v46, %v9283_v16  ;;  %v1484_v53 = vcombine.low %v567_v37, %v569_v38 }
  0x56   :  { %v1485_v62 = vcombine.low %v571_v45, %v585_v32  ;;  %v1492_v54 = vrot.slane %v1482_v48, %v9283_v16  ;;  %v630_v58 = vrot.slane %v602_v56, %v9283_v16  ;;  %v648_v15 = vrot.slane %v9212_v49, %v9283_v16 }
  0x57   :  { %v1993_v55 = vpack.c.bf16 %v1481_v50, %v1432_v40  ;;  %v1499_v59 = vrot.slane %v1483_v51, %v9283_v16  ;;  %v1506_v60 = vrot.slane %v1484_v53, %v9283_v16  ;;  %v1531_v2 = vcombine.low %v609_v47, %v623_v52  ;;  %v9214_v50 = vld.sshfl [vmem:[%s12848_s0 + $0xa8] sm:$0x1 pattern:$0x75316420] }
  0x58   :  { %v1513_v61 = vrot.slane %v1485_v62, %v9283_v16  ;;  %v8885_v43 = vcombine.high %v609_v47, %v623_v52  ;;  %v1533_v6 = vcombine.low %v616_v7, %v630_v58  ;;  %v8886_v14 = vcombine.high %v616_v7, %v630_v58 }
  0x59   :  { %8996 = vmatmul.mubr.msk.bf16.gmra.mrb[12].mxu0 %vm2015_vm1, %v1993_v55  ;;  %v1514_v4 = vcombine.low %v1492_v54, %v1499_v59  ;;  %v1541_v10 = vrot.slane %v1531_v2, %v9283_v16  ;;  %v649_v19 = vcombine.high %v9464_v8, %v9464_v8  ;;  %v656_v12 = vrot.slane %v9464_v8, %v9283_v16 }
  0x5a   :  { %8999 = vmatprep.mubr.msk.bf16.mxu0 %vm9220_vm0, %v9218_v1  ;;  %v1515_v22 = vcombine.low %v1506_v60, %v1513_v61  ;;  %v1548_v25 = vrot.slane %v8885_v43, %v9283_v16  ;;  %v1555_v41 = vrot.slane %v1533_v6, %v9283_v16  ;;  %v1562_v9 = vrot.slane %v8886_v14, %v9283_v16 }
  0x5b   :  { %v1522_v57 = vrot.slane %v1514_v4, %v9283_v16  ;;  %v663_v23 = vrot.slane %v649_v19, %v9283_v16  ;;  %v664_v26 = vcombine.high %v656_v12, %v656_v12  ;;  %v672_v28 = vrot.slane %v656_v12, %v9283_v16  ;;  %v9215_v4 = vld.sshfl [vmem:[%s12848_s0 + $0xb8] sm:$0x1 pattern:$0x75316420] }
  0x5c   :  { %v1529_v0 = vrot.slane %v1515_v22, %v9283_v16  ;;  %v1563_v18 = vcombine.low %v1541_v10, %v1548_v25  ;;  %v1564_v24 = vcombine.low %v1555_v41, %v1562_v9  ;;  %v712_v29 = vcombine.high %v9469_v63, %v9469_v63 }
  0x5d   :  { %v665_v33 = vcombine.high %v663_v23, %v663_v23  ;;  %v679_v34 = vrot.slane %v663_v23, %v9283_v16  ;;  %v686_v35 = vrot.slane %v664_v26, %v9283_v16  ;;  %v694_v36 = vcombine.high %v672_v28, %v672_v28 }
  0x5e   :  { %v1530_v30 = vcombine.low %v1522_v57, %v1529_v0  ;;  %v1571_v31 = vrot.slane %v1563_v18, %v9283_v16  ;;  %v1578_v8 = vrot.slane %v1564_v24, %v9283_v16  ;;  %v711_v37 = vrot.slane %v9213_v21, %v9283_v16 }
  0x5f   :  { %v693_v38 = vrot.slane %v665_v33, %v9283_v16  ;;  %v695_v32 = vcombine.high %v679_v34, %v679_v34  ;;  %v719_v39 = vrot.slane %v9469_v63, %v9283_v16  ;;  %v726_v40 = vrot.slane %v712_v29, %v9283_v16 }
  0x60   :  { %v1579_v42 = vcombine.low %v1571_v31, %v1578_v8  ;;  %v696_v20 = vcombine.high %v686_v35, %v686_v35  ;;  %v1580_v44 = vcombine.low %v648_v15, %v672_v28  ;;  %v1581_v45 = vcombine.low %v686_v35, %v694_v36 }
  0x61   :  { %v697_v46 = vcombine.high %v693_v38, %v693_v38  ;;  %v727_v47 = vcombine.high %v719_v39, %v719_v39  ;;  %v728_v48 = vcombine.high %v726_v40, %v726_v40  ;;  %v735_v49 = vrot.slane %v719_v39, %v9283_v16 }
  0x62   :  { %v1994_v56 = vpack.c.bf16 %v1579_v42, %v1530_v30  ;;  %v742_v7 = vrot.slane %v726_v40, %v9283_v16  ;;  %v1582_v51 = vcombine.low %v696_v20, %v679_v34  ;;  %v1583_v63 = vcombine.low %v693_v38, %v695_v32 }
  0x63   :  { %v749_v52 = vrot.slane %v727_v47, %v9283_v16  ;;  %v756_v53 = vrot.slane %v728_v48, %v9283_v16  ;;  %v1590_v62 = vrot.slane %v1580_v44, %v9283_v16  ;;  %v1597_v54 = vrot.slane %v1581_v45, %v9283_v16 }
  0x64   :  { %9000 = vmatmul.mubr.msk.bf16.gmra.mrb[16].mxu0 %vm2015_vm1, %v1994_v56  ;;  %v1604_v55 = vrot.slane %v1582_v51, %v9283_v16  ;;  %v1611_v58 = vrot.slane %v1583_v63, %v9283_v16  ;;  %v1629_v59 = vcombine.low %v697_v46, %v711_v37  ;;  %v774_v21 = vrot.slane %v9214_v50, %v9283_v16 }
  0x65   :  { %9003 = vmatprep.mubr.msk.bf16.mxu0 %vm9220_vm0, %v9218_v1  ;;  %v1612_v60 = vcombine.low %v1590_v62, %v1597_v54  ;;  %v1630_v61 = vcombine.low %v735_v49, %v749_v52  ;;  %v8887_v2 = vcombine.high %v735_v49, %v749_v52  ;;  %v1632_v43 = vcombine.low %v742_v7, %v756_v53  ;;  %v9216_v49 = vld.sshfl [vmem:[%s12848_s0 + $0xc8] sm:$0x1 pattern:$0x75316420] }
  0x66   :  { %v1613_v6 = vcombine.low %v1604_v55, %v1611_v58  ;;  %v1639_v14 = vrot.slane %v1629_v59, %v9283_v16  ;;  %v775_v15 = vcombine.high %v9477_v13, %v9477_v13  ;;  %v782_v41 = vrot.slane %v9477_v13, %v9283_v16 }
  0x67   :  { %v1620_v22 = vrot.slane %v1612_v60, %v9283_v16  ;;  %v1646_v10 = vrot.slane %v1630_v61, %v9283_v16  ;;  %v1653_v25 = vrot.slane %v8887_v2, %v9283_v16  ;;  %v1660_v19 = vrot.slane %v1632_v43, %v9283_v16 }
  0x68   :  { %v1627_v57 = vrot.slane %v1613_v6, %v9283_v16  ;;  %v789_v9 = vrot.slane %v775_v15, %v9283_v16  ;;  %v845_v18 = vrot.slane %v9482_v17, %v9283_v16  ;;  %v8888_v23 = vcombine.high %v742_v7, %v756_v53 }
  0x69   :  { %v1661_v12 = vcombine.low %v1639_v14, %v1646_v10  ;;  %v1662_v0 = vcombine.low %v1653_v25, %v1660_v19  ;;  %v790_v26 = vcombine.high %v782_v41, %v782_v41  ;;  %v798_v29 = vrot.slane %v782_v41, %v9283_v16 }
  0x6a   :  { %v1628_v24 = vcombine.low %v1620_v22, %v1627_v57  ;;  %v791_v28 = vcombine.high %v789_v9, %v789_v9  ;;  %v805_v33 = vrot.slane %v789_v9, %v9283_v16  ;;  %v837_v13 = vrot.slane %v9215_v4, %v9283_v16 }
  0x6b   :  { %v1669_v30 = vrot.slane %v1661_v12, %v9283_v16  ;;  %v1676_v31 = vrot.slane %v1662_v0, %v9283_v16  ;;  %v812_v34 = vrot.slane %v790_v26, %v9283_v16  ;;  %v820_v35 = vcombine.high %v798_v29, %v798_v29 }
  0x6c   :  { %v819_v8 = vrot.slane %v791_v28, %v9283_v16  ;;  %v853_v36 = vcombine.high %v845_v18, %v845_v18  ;;  %v821_v38 = vcombine.high %v805_v33, %v805_v33  ;;  %v861_v32 = vrot.slane %v845_v18, %v9283_v16 }
  0x6d   :  { %v1677_v37 = vcombine.low %v1669_v30, %v1676_v31  ;;  %v1679_v39 = vcombine.low %v774_v21, %v798_v29  ;;  %v822_v40 = vcombine.high %v812_v34, %v812_v34  ;;  %v1680_v44 = vcombine.low %v812_v34, %v820_v35  ;;  %v9217_v21 = vld.sshfl [vmem:[%s12848_s0 + $0xd8] sm:$0x1 pattern:$0x75316420] }
  0x6e   :  { %v823_v42 = vcombine.high %v819_v8, %v819_v8  ;;  %v875_v20 = vrot.slane %v853_v36, %v9283_v16  ;;  %v1688_v46 = vrot.slane %v8888_v23, %v9283_v16  ;;  %v1727_v48 = vcombine.low %v819_v8, %v821_v38 }
  0x6f   :  { %v1995_v45 = vpack.c.bf16 %v1677_v37, %v1628_v24  ;;  %v1695_v47 = vrot.slane %v1679_v39, %v9283_v16  ;;  %v1681_v50 = vcombine.low %v822_v40, %v805_v33  ;;  %v1702_v56 = vrot.slane %v1680_v44, %v9283_v16 }
  0x70   :  { %v1728_v7 = vcombine.low %v823_v42, %v837_v13  ;;  %v1729_v51 = vcombine.low %v861_v32, %v875_v20  ;;  %v8889_v52 = vcombine.high %v861_v32, %v875_v20  ;;  %v1737_v53 = vrot.slane %v1727_v48, %v9283_v16 }
  0x71   :  { %9004 = vmatmul.mubr.msk.bf16.gmra.mrb[20].mxu0 %vm2015_vm1, %v1995_v45  ;;  %v1710_v63 = vcombine.low %v1688_v46, %v1695_v47  ;;  %v838_v62 = vcombine.high %v9482_v17, %v9482_v17  ;;  %v1709_v54 = vrot.slane %v1681_v50, %v9283_v16  ;;  %v901_v2 = vcombine.high %v9492_v27, %v9492_v27 }
  0x72   :  { %9007 = vmatprep.mubr.msk.bf16.mxu0 %vm9220_vm0, %v9218_v1  ;;  %v1744_v55 = vrot.slane %v1728_v7, %v9283_v16  ;;  %v1751_v58 = vrot.slane %v1729_v51, %v9283_v16  ;;  %v1758_v60 = vrot.slane %v8889_v52, %v9283_v16  ;;  %v900_v4 = vrot.slane %v9216_v49, %v9283_v16 }
  0x73   :  { %v1718_v59 = vrot.slane %v1710_v63, %v9283_v16  ;;  %v852_v61 = vrot.slane %v838_v62, %v9283_v16  ;;  %v1711_v43 = vcombine.low %v1702_v56, %v1709_v54  ;;  %v908_v6 = vrot.slane %v9492_v27, %v9283_v16  ;;  %v4556_v62 = vld [vmem:[%s12850_s3] sm:$0xff]  ;;  %v4557_v54 = vld [vmem:[%s12850_s3 + $0x8] sm:$0xff] }
  0x74   :  { %v1759_v17 = vcombine.low %v1737_v53, %v1744_v55  ;;  %v1760_v14 = vcombine.low %v1751_v58, %v1758_v60  ;;  %v915_v10 = vrot.slane %v901_v2, %v9283_v16  ;;  %v963_v33 = vrot.slane %v9217_v21, %v9283_v16 }
  0x75   :  { %v854_v15 = vcombine.high %v852_v61, %v852_v61  ;;  %v868_v22 = vrot.slane %v852_v61, %v9283_v16  ;;  %v1725_v25 = vrot.slane %v1711_v43, %v9283_v16  ;;  %v916_v57 = vcombine.high %v908_v6, %v908_v6 }
  0x76   :  { %v1767_v19 = vrot.slane %v1759_v17, %v9283_v16  ;;  %v924_v41 = vrot.slane %v908_v6, %v9283_v16  ;;  %v1774_v9 = vrot.slane %v1760_v14, %v9283_v16  ;;  %v917_v12 = vcombine.high %v915_v10, %v915_v10  ;;  %v4558_v17 = vld [vmem:[%s12850_s3 + $0x10] sm:$0xff] }
  0x77   :  { %v882_v27 = vrot.slane %v854_v15, %v9283_v16  ;;  %v931_v0 = vrot.slane %v915_v10, %v9283_v16  ;;  %v1726_v18 = vcombine.low %v1718_v59, %v1725_v25  ;;  %v938_v23 = vrot.slane %v916_v57, %v9283_v16 }
  0x78   :  { %v946_v24 = vcombine.high %v924_v41, %v924_v41  ;;  %v1775_v26 = vcombine.low %v1767_v19, %v1774_v9  ;;  %v945_v28 = vrot.slane %v917_v12, %v9283_v16  ;;  %v1778_v34 = vcombine.low %v900_v4, %v924_v41  ;;  %v4559_v4 = vld [vmem:[%s12850_s3 + $0x18] sm:$0xff]  ;;  %s9221_s3 = smov 96  }
  0x79   :  { %v947_v29 = vcombine.high %v931_v0, %v931_v0  ;;  %v1776_v30 = vcombine.low %v868_v22, %v882_v27  ;;  %v948_v31 = vcombine.high %v938_v23, %v938_v23  ;;  %v8890_v13 = vcombine.high %v868_v22, %v882_v27 }
  0x7a   :  { %v1996_v8 = vpack.c.bf16 %v1775_v26, %v1726_v18  ;;  %v949_v35 = vcombine.high %v945_v28, %v945_v28  ;;  %v1779_v36 = vcombine.low %v938_v23, %v946_v24  ;;  %v1800_v32 = vrot.slane %v1778_v34, %v9283_v16 }
  0x7b   :  { %v1786_v37 = vrot.slane %v1776_v30, %v9283_v16  ;;  %v1793_v38 = vrot.slane %v8890_v13, %v9283_v16  ;;  %v1825_v39 = vcombine.low %v948_v31, %v931_v0  ;;  %v1826_v40 = vcombine.low %v945_v28, %v947_v29 }
  0x7c   :  { %9008 = vmatmul.mubr.msk.bf16.gmra.mrb[24].mxu0 %vm2015_vm1, %v1996_v8  ;;  %v1807_v42 = vrot.slane %v1779_v36, %v9283_v16  ;;  %v1827_v20 = vcombine.low %v949_v35, %v963_v33  ;;  %v1828_v44 = vcombine.low %v9329_v3, %v9338_v11  ;;  %v9062_v55 = vpack.c.bf16 %v4557_v54, %v4556_v62 }
  0x7d   :  { %9011 = vmatprep.mubr.msk.bf16.mxu0 %vm9220_vm0, %v9218_v1  ;;  %v1808_v45 = vcombine.low %v1786_v37, %v1793_v38  ;;  %v1835_v46 = vrot.slane %v1825_v39, %v9283_v16  ;;  %v1842_v47 = vrot.slane %v1826_v40, %v9283_v16  ;;  %v9066_v14 = vpack.c.bf16 %v4559_v4, %v4558_v17 }
  0x7e   :  { %v1809_v48 = vcombine.low %v1800_v32, %v1807_v42  ;;  %v1849_v49 = vrot.slane %v1827_v20, %v9283_v16  ;;  %v1856_v50 = vrot.slane %v1828_v44, %v9283_v16  ;;  %9063 = vmatprep.subr.bf16.mxu1 %v9062_v55  ;;  %v9796_v29 = vsub.s32 0, %v9256_v5 }
  0x7f   :  { %v1816_v56 = vrot.slane %v1808_v45, %v9283_v16  ;;  %v1857_v7 = vcombine.low %v1835_v46, %v1842_v47  ;;  %9065 = vmatpush3.bf16.msra.mxu1 %v9062_v55  ;;  %vm8645_vm9 = vcmask 57344   ;;  %vm8641_vm10 = vcmask 64512  }
  0x80   :  { %v1823_v51 = vrot.slane %v1809_v48, %v9283_v16  ;;  %v1858_v63 = vcombine.low %v1849_v49, %v1856_v50  ;;  %9067 = vmatprep.subr.bf16.mxu1 %v9066_v14  ;;  %vm8841_vm11 = vcmask 253952  }
  0x81   :  { %v1865_v3 = vrot.slane %v1857_v7, %v9283_v16 }
  0x82   :  { %v1824_v11 = vcombine.low %v1816_v56, %v1823_v51  ;;  %v1872_v1 = vrot.slane %v1858_v63, %v9283_v16 }
  0x83   :  { %9069 = vmatpush3.bf16.msra.mxu1 %v9066_v14 }
  0x84   :  { %v1873_v52 = vcombine.low %v1865_v3, %v1872_v1 }
  0x86   :  { %v1997_v53 = vpack.c.bf16 %v1873_v52, %v1824_v11 }
  0x88   :  { %9012 = vmatmul.mubr.msk.bf16.gmra.mrb[28].mxu0 %vm2015_vm1, %v1997_v53 }
  0xef   :  { %v2077_v58 = vpop.f32.mrb[0].mxu0 }
  0xf0   :  { %v8985_v59 = vpop.f32.mrb[1].mxu0  ;;  %v2310_v43 = vcombine.high %v2077_v58, %v2077_v58  ;;  %v2317_v15 = vrot.slane %v2077_v58, %v9283_v16 }
  0xf1   :  { %v2080_v60 = vpop.f32.mrb[2].mxu0 }
  0xf2   :  { %v8986_v61 = vpop.f32.mrb[3].mxu0  ;;  %v2324_v10 = vrot.slane %v2310_v43, %v9283_v16  ;;  %v2359_v25 = vcombine.high %v2080_v60, %v2080_v60  ;;  %v2325_v19 = vcombine.high %v2317_v15, %v2317_v15  ;;  %v2366_v57 = vrot.slane %v2080_v60, %v9283_v16 }
  0xf3   :  { %v9784_v27 = vrot.slane %v2317_v15, %v9283_v16 }
  0xf4   :  { %v2326_v9 = vcombine.high %v2324_v10, %v2324_v10  ;;  %v2373_v12 = vrot.slane %v2359_v25, %v9283_v16  ;;  %v9788_v18 = vrot.slane %v2324_v10, %v9283_v16  ;;  %v9791_v23 = vrot.slane %v2325_v19, %v9283_v16 }
  0xf5   :  { %v2374_v24 = vcombine.high %v2366_v57, %v2366_v57  ;;  %v9799_v30 = vrot.slane %v2366_v57, %v9283_v16 }
  0xf6   :  { %v9803_v33 = vrot.slane %v2326_v9, %v9283_v16  ;;  %v2375_v13 = vcombine.high %v2373_v12, %v2373_v12  ;;  %v9811_v37 = vrot.slane %v2373_v12, %v9283_v16 }
  0xf7   :  { %v9816_v40 = vrot.slane %v2374_v24, %v9283_v16 }
  0xf8   :  { %v9825_v7 = vrot.slane %v2375_v13, %v9283_v16  ;;  %v2405_v1 = vcombine.high %v9811_v37, %v9811_v37 }
  0xfa   :  { %v2141_v2 = vpop.f32.mrb[0].mxu1 }
  0xfb   :  { %v9017_v6 = vpop.f32.mrb[1].mxu1  ;;  %v3094_v41 = vcombine.high %v2141_v2, %v2141_v2  ;;  %v3101_v26 = vrot.slane %v2141_v2, %v9283_v16 }
  0xfc   :  { %v2144_v21 = vpop.f32.mrb[2].mxu1 }
  0xfd   :  { %v9018_v22 = vpop.f32.mrb[3].mxu1  ;;  %v3143_v0 = vcombine.high %v2144_v21, %v2144_v21  ;;  %v3108_v28 = vrot.slane %v3094_v41, %v9283_v16  ;;  %v3150_v31 = vrot.slane %v2144_v21, %v9283_v16  ;;  %v3109_v45 = vcombine.high %v3101_v26, %v3101_v26 }
  0xfe   :  { %v9829_v63 = vrot.slane %v3101_v26, %v9283_v16 }
  0xff   :  { %v3157_v35 = vrot.slane %v3143_v0, %v9283_v16  ;;  %v3110_v46 = vcombine.high %v3108_v28, %v3108_v28  ;;  %v3158_v50 = vcombine.high %v3150_v31, %v3150_v31  ;;  %v9832_v3 = vrot.slane %v3108_v28, %v9283_v16 }
 0x100   :  { %13006 = vst [vmem:[#allocation3_spill] sm:$0xff] %v9829_v63  ;;  %v9840_v55 = vrot.slane %v3109_v45, %v9283_v16  ;;  %v9846_v59 = vrot.slane %v3150_v31, %v9283_v16 }
 0x101   :  { %13007 = vst [vmem:[#allocation4_spill] sm:$0xff] %v9832_v3  ;;  %v3159_v11 = vcombine.high %v3157_v35, %v3157_v35  ;;  %v9843_v58 = vrot.slane %v3110_v46, %v9283_v16  ;;  %v9849_v60 = vrot.slane %v3157_v35, %v9283_v16  ;;  %v9852_v61 = vrot.slane %v3158_v50, %v9283_v16 }
 0x102   :  { %13008 = vst [vmem:[#allocation5_spill] sm:$0xff] %v9840_v55  ;;  %13010 = vst [vmem:[#allocation7_spill] sm:$0xff] %v9846_v59 }
 0x103   :  { %13009 = vst [vmem:[#allocation6_spill] sm:$0xff] %v9843_v58  ;;  %13011 = vst [vmem:[#allocation8_spill] sm:$0xff] %v9849_v60  ;;  %v9861_v14 = vrot.slane %v3159_v11, %v9283_v16 }
 0x104   :  { %13012 = vst [vmem:[#allocation9_spill] sm:$0xff] %v9852_v61 }
 0x105   :  { %13013 = vst [vmem:[#allocation10_spill] sm:$0xff] %v9861_v14 }
 0x107   :  { %v2085_v34 = vpop.f32.mrb[4].mxu0 }
 0x108   :  { %v2408_v38 = vcombine.high %v2085_v34, %v2085_v34  ;;  %v8989_v32 = vpop.f32.mrb[5].mxu0  ;;  %v2415_v20 = vrot.slane %v2085_v34, %v9283_v16 }
 0x109   :  { %v2088_v44 = vpop.f32.mrb[6].mxu0 }
 0x10a   :  { %v2422_v47 = vrot.slane %v2408_v38, %v9283_v16  ;;  %v2457_v48 = vcombine.high %v2088_v44, %v2088_v44  ;;  %v8990_v49 = vpop.f32.mrb[7].mxu0  ;;  %v2464_v51 = vrot.slane %v2088_v44, %v9283_v16  ;;  %v2423_v53 = vcombine.high %v2415_v20, %v2415_v20 }
 0x10b   :  { %v9864_v21 = vrot.slane %v2415_v20, %v9283_v16 }
 0x10c   :  { %v2424_v62 = vcombine.high %v2422_v47, %v2422_v47  ;;  %v2471_v54 = vrot.slane %v2457_v48, %v9283_v16  ;;  %v2472_v43 = vcombine.high %v2464_v51, %v2464_v51  ;;  %v9867_v15 = vrot.slane %v2422_v47, %v9283_v16 }
 0x10d   :  { %v9870_v22 = vrot.slane %v2423_v53, %v9283_v16  ;;  %v9876_v25 = vrot.slane %v2464_v51, %v9283_v16 }
 0x10e   :  { %v2473_v17 = vcombine.high %v2471_v54, %v2471_v54  ;;  %v9873_v10 = vrot.slane %v2424_v62, %v9283_v16  ;;  %v9889_v24 = vrot.slane %v2471_v54, %v9283_v16  ;;  %v9892_v26 = vrot.slane %v2472_v43, %v9283_v16 }
 0x110   :  { %v9895_v28 = vrot.slane %v2473_v17, %v9283_v16 }
 0x111   :  { %v2285_v0 = vpop.f32.mrb[4].mxu1 }
 0x112   :  { %v3338_v13 = vcombine.high %v2285_v0, %v2285_v0  ;;  %v3345_v34 = vrot.slane %v2285_v0, %v9283_v16  ;;  %v9025_v35 = vpop.f32.mrb[5].mxu1 }
 0x113   :  { %v2288_v32 = vpop.f32.mrb[6].mxu1 }
 0x114   :  { %v3352_v47 = vrot.slane %v3338_v13, %v9283_v16  ;;  %v3353_v48 = vcombine.high %v3345_v34, %v3345_v34  ;;  %v3361_v49 = vrot.slane %v3345_v34, %v9283_v16  ;;  %v3387_v50 = vcombine.high %v2288_v32, %v2288_v32  ;;  %v9026_v51 = vpop.f32.mrb[7].mxu1 }
 0x115   :  { %v9913_v11 = vrot.slane %v2288_v32, %v9283_v16 }
 0x116   :  { %v3354_v43 = vcombine.high %v3352_v47, %v3352_v47  ;;  %v3368_v17 = vrot.slane %v3352_v47, %v9283_v16  ;;  %v3375_v0 = vrot.slane %v3353_v48, %v9283_v16  ;;  %v3383_v13 = vcombine.high %v3361_v49, %v3361_v49 }
 0x117   :  { %v9924_v34 = vrot.slane %v3361_v49, %v9796_v29  ;;  %v9927_v35 = vrot.slane %v3387_v50, %v9283_v16  ;;  %v9933_v51 = vrot.slane %v9913_v11, %v9283_v16 }
 0x118   :  { %v3382_v31 = vrot.slane %v3354_v43, %v9283_v16  ;;  %v3384_v9 = vcombine.high %v3368_v17, %v3368_v17  ;;  %v3385_v47 = vcombine.high %v3375_v0, %v3375_v0  ;;  %v9937_v48 = vrot.slane %v3375_v0, %v9796_v29 }
 0x119   :  { %v9940_v49 = vrot.slane %v3383_v13, %v9796_v29  ;;  %v9943_v50 = vrot.slane %v3368_v17, %v9796_v29  ;;  %v9949_v41 = vrot.slane %v9924_v34, %v9283_v16  ;;  %v3403_v14 = vcombine.high %v9927_v35, %v9927_v35 }
 0x11a   :  { %v3386_v57 = vcombine.high %v3382_v31, %v3382_v31  ;;  %v3451_v43 = vrot.slane %v3385_v47, %v9796_v29  ;;  %v3459_v6 = vrot.slane %v3382_v31, %v9796_v29  ;;  %v3463_v0 = vrot.slane %v3384_v9, %v9796_v29 }
 0x11b   :  { %13014 = vst [vmem:[#allocation11_spill] sm:$0xff] %v9940_v49  ;;  %13015 = vst [vmem:[#allocation12_spill] sm:$0xff] %v9943_v50  ;;  %v9956_v13 = vrot.slane %v9949_v41, %v9283_v16  ;;  %v3549_v17 = vcombine.high %v9937_v48, %v9937_v48  ;;  %v3598_v19 = vcombine.high %v9940_v49, %v9940_v49 }
 0x11c   :  { %v3696_v4 = vcombine.high %v9943_v50, %v9943_v50  ;;  %v3467_v44 = vrot.slane %v3386_v57, %v9796_v29  ;;  %v3647_v47 = vcombine.high %v3451_v43, %v3451_v43  ;;  %v9966_v31 = vrot.slane %v3451_v43, %v9283_v16 }
 0x11d   :  { %v3745_v9 = vcombine.high %v3459_v6, %v3459_v6  ;;  %v3563_v46 = vrot.slane %v3549_v17, %v9283_v16  ;;  %v3612_v38 = vrot.slane %v3598_v19, %v9283_v16  ;;  %v9974_v42 = vrot.slane %v3459_v6, %v9283_v16  ;;  %6929 = vrot.lane.b32.xlu0 %v9956_v13, %s9221_s3 }
 0x11e   :  { %v9971_v52 = vrot.slane %v3696_v4, %v9283_v16  ;;  %v9979_v57 = vrot.slane %v3647_v47, %v9283_v16  ;;  %v9985_v17 = vrot.slane %v9966_v31, %v9283_v16  ;;  %v3794_v53 = vcombine.high %v3463_v0, %v3463_v0 }
 0x11f   :  { %v9988_v4 = vrot.slane %v3745_v9, %v9283_v16  ;;  %v3565_v19 = vcombine.high %v3563_v46, %v3563_v46  ;;  %v9991_v6 = vrot.slane %v3563_v46, %v9283_v16  ;;  %v3614_v56 = vcombine.high %v3612_v38, %v3612_v38  ;;  %v9996_v47 = vpop.f32.mrb[8].mxu0 }
 0x120   :  { %13016 = vst [vmem:[#allocation13_spill] sm:$0xff] %v9985_v17  ;;  %v9994_v36 = vrot.slane %v3612_v38, %v9283_v16  ;;  %v10000_v12 = vrot.slane %v9979_v57, %v9283_v16  ;;  %v10008_v46 = vrot.slane %v9974_v42, %v9283_v16  ;;  %v8993_v8 = vpop.f32.mrb[9].mxu0  ;;  %v3801_v54 = vrot.slane %v3463_v0, %v9283_v16 }
 0x121   :  { %13017 = vst [vmem:[#allocation14_spill] sm:$0xff] %v9991_v6  ;;  %v10011_v38 = vrot.slane %v3614_v56, %v9283_v16  ;;  %v3843_v62 = vcombine.high %v3467_v44, %v3467_v44  ;;  %v10014_v43 = vpop.f32.mrb[10].mxu0  ;;  %v10017_v45 = vrot.slane %v3467_v44, %v9283_v16  ;;  %v10020_v39 = vrot.slane %v3565_v19, %v9283_v16 }
 0x122   :  { %13018 = vst [vmem:[#allocation15_spill] sm:$0xff] %v9994_v36  ;;  %13019 = vst [vmem:[#allocation16_spill] sm:$0xff] %v10000_v12  ;;  %v10024_v9 = vcombine.high %v9991_v6, %v9991_v6  ;;  %v10028_v8 = vmul.f32 %v9956_v13, %v9799_v30  ;;  %v8994_v56 = vpop.f32.mrb[11].mxu0  ;;  %v10031_v0 = vrot.slane %v3794_v53, %v9283_v16 }
 0x123   :  { %13020 = vst [vmem:[#allocation17_spill] sm:$0xff] %v10008_v46  ;;  %13021 = vst [vmem:[#allocation18_spill] sm:$0xff] %v10011_v38  ;;  %v3809_v20 = vcombine.high %v3801_v54, %v3801_v54  ;;  %v10034_v32 = vrot.slane %v3801_v54, %v9283_v16  ;;  %v10037_v44 = vrot.slane %v3843_v62, %v9283_v16 }
 0x124   :  { %13022 = vst [vmem:[#allocation19_spill] sm:$0xff] %v10020_v39  ;;  %13023 = vst [vmem:[#allocation20_spill] sm:$0xff] %v10024_v9  ;;  %v10041_v19 = vrot.slane %v10017_v45, %v9283_v16  ;;  %v10045_v2 = vmul.f32 %v9991_v6, %v9825_v7  ;;  %v4426_v53 = vmul.f32 %v10020_v39, %v2405_v1 }
 0x125   :  { %13024 = vst [vmem:[#allocation21_spill] sm:$0xff] %v10034_v32  ;;  %v13026_v54 = vcombine.high %v9825_v7, %v9825_v7  ;;  %v10058_v5 = vrot.slane %v3809_v20, %v9283_v16  ;;  %v3417_v60 = vrot.slane %v9927_v35, %v9283_v16  ;;  %v13028_v1 = vcombine.high %v9913_v11, %v9913_v11 }
 0x126   :  { %13025 = vst [vmem:[#allocation22_spill] sm:$0xff] %v10041_v19  ;;  %v3471_v62 = vrot.slane %v9933_v51, %v9796_v29  ;;  %v3431_v20 = vrot.slane %v3403_v14, %v9283_v16  ;;  %v10076_v35 = vcombine.high %v10020_v39, %v10020_v39 }
 0x127   :  { %v4427_v56 = vmul.f32 %v10024_v9, %v13026_v54  ;;  %13027 = vst [vmem:[#allocation23_spill] sm:$0xff] %v10058_v5  ;;  %v3424_v7 = vrot.slane %v13028_v1, %v9283_v16  ;;  %v3432_v54 = vcombine.high %v9933_v51, %v9933_v51  ;;  %v3433_v59 = vcombine.high %v3417_v60, %v3417_v60 }
 0x128   :  { %v3487_v58 = vrot.slane %v3417_v60, %v9796_v29  ;;  %13029 = vst [vmem:[#allocation24_spill] sm:$0xff] %v10076_v35  ;;  %v3435_v3 = vcombine.high %v3431_v20, %v3431_v20  ;;  %v3491_v51 = vrot.slane %v3431_v20, %v9796_v29  ;;  %v3892_v55 = vcombine.high %v3471_v62, %v3471_v62 }
 0x129   :  { %v4756_v61 = vcombine.low %v4426_v53, %v4427_v56  ;;  %v3434_v11 = vcombine.high %v3424_v7, %v3424_v7  ;;  %v3475_v56 = vrot.slane %v3424_v7, %v9796_v29  ;;  %v3479_v1 = vrot.slane %v3432_v54, %v9796_v29 }
 0x12a   :  { %v3495_v14 = vrot.slane %v3433_v59, %v9796_v29  ;;  %v10087_v63 = vrot.slane %v3471_v62, %v9283_v16  ;;  %v3499_v39 = vrot.slane %v3435_v3, %v9796_v29  ;;  %v3906_v7 = vrot.slane %v3892_v55, %v9283_v16 }
 0x12b   :  { %v10079_v53 = vrot.slane %v4756_v61, %v9283_v16  ;;  %v3483_v60 = vrot.slane %v3434_v11, %v9796_v29  ;;  %v3941_v9 = vcombine.high %v3475_v56, %v3475_v56  ;;  %v10090_v61 = vrot.slane %v3475_v56, %v9283_v16 }
 0x12c   :  { %13031 = vst [vmem:[#allocation26_spill] sm:$0xff] %v10087_v63  ;;  %v3990_v54 = vcombine.high %v3479_v1, %v3479_v1  ;;  %v3997_v6 = vrot.slane %v3479_v1, %v9283_v16  ;;  %v10097_v59 = vrot.slane %v10087_v63, %v9283_v16  ;;  %v10108_v29 = vpop.f32.mrb[12].mxu0  ;;  %v3908_v3 = vcombine.high %v3906_v7, %v3906_v7 }
 0x12d   :  { %13030 = vst [vmem:[#allocation25_spill] sm:$0xff] %v10079_v53  ;;  %13032 = vst [vmem:[#allocation27_spill] sm:$0xff] %v10090_v61  ;;  %v10100_v20 = vrot.slane %v3941_v9, %v9283_v16  ;;  %v10106_v11 = vrot.slane %v10090_v61, %v9283_v16  ;;  %v10111_v55 = vrot.slane %v3906_v7, %v9283_v16  ;;  %v8997_v63 = vpop.f32.mrb[13].mxu0 }
 0x12e   :  { %v4004_v56 = vrot.slane %v3990_v54, %v9283_v16  ;;  %v4005_v1 = vcombine.high %v3997_v6, %v3997_v6  ;;  %v10121_v61 = vrot.slane %v3997_v6, %v9283_v16  ;;  %v10123_v50 = vpop.f32.mrb[14].mxu0  ;;  %v10126_v7 = vrot.slane %v3908_v3, %v9283_v16 }
 0x12f   :  { %13033 = vst [vmem:[#allocation28_spill] sm:$0xff] %v10100_v20  ;;  %13034 = vst [vmem:[#allocation29_spill] sm:$0xff] %v10106_v11  ;;  %v10118_v62 = vrot.slane %v10100_v20, %v9283_v16  ;;  %v4039_v11 = vcombine.high %v3483_v60, %v3483_v60  ;;  %v8998_v9 = vpop.f32.mrb[15].mxu0  ;;  %v10135_v20 = vrot.slane %v3483_v60, %v9283_v16 }
 0x130   :  { %13036 = vst [vmem:[#allocation31_spill] sm:$0xff] %v10121_v61  ;;  %13037 = vst [vmem:[#allocation32_spill] sm:$0xff] %v10126_v7  ;;  %v4006_v53 = vcombine.high %v4004_v56, %v4004_v56  ;;  %v10129_v54 = vrot.slane %v4004_v56, %v9283_v16  ;;  %v10132_v63 = vrot.slane %v4005_v1, %v9283_v16 }
 0x131   :  { %13035 = vst [vmem:[#allocation30_spill] sm:$0xff] %v10118_v62  ;;  %13040 = vst [vmem:[#allocation35_spill] sm:$0xff] %v10135_v20  ;;  %v10138_v6 = vrot.slane %v4039_v11, %v9283_v16  ;;  %v4088_v61 = vcombine.high %v3487_v58, %v3487_v58  ;;  %v4095_v62 = vrot.slane %v3487_v58, %v9283_v16 }
 0x132   :  { %13038 = vst [vmem:[#allocation33_spill] sm:$0xff] %v10129_v54  ;;  %13039 = vst [vmem:[#allocation34_spill] sm:$0xff] %v10132_v63  ;;  %v10142_v3 = vrot.slane %v4006_v53, %v9283_v16  ;;  %v4137_v49 = vcombine.high %v3491_v51, %v3491_v51  ;;  %v10145_v56 = vrot.slane %v3491_v51, %v9283_v16 }
 0x133   :  { %13041 = vst [vmem:[#allocation36_spill] sm:$0xff] %v10138_v6  ;;  %v4186_v54 = vcombine.high %v3495_v14, %v3495_v14  ;;  %v10151_v60 = vrot.slane %v10135_v20, %v9283_v16  ;;  %v10155_v11 = vrot.slane %v10138_v6, %v9283_v16  ;;  %v10158_v58 = vrot.slane %v4088_v61, %v9283_v16 }
 0x134   :  { %13042 = vst [vmem:[#allocation37_spill] sm:$0xff] %v10142_v3  ;;  %13043 = vst [vmem:[#allocation38_spill] sm:$0xff] %v10145_v56  ;;  %v4103_v53 = vcombine.high %v4095_v62, %v4095_v62  ;;  %v10161_v9 = vrot.slane %v4095_v62, %v9283_v16  ;;  %v10164_v51 = vrot.slane %v4137_v49, %v9283_v16 }
 0x135   :  { %13044 = vst [vmem:[#allocation39_spill] sm:$0xff] %v10151_v60  ;;  %13045 = vst [vmem:[#allocation40_spill] sm:$0xff] %v10155_v11  ;;  %v10172_v6 = vrot.slane %v10145_v56, %v9283_v16  ;;  %v4193_v61 = vrot.slane %v3495_v14, %v9283_v16  ;;  %v4200_v11 = vrot.slane %v4186_v54, %v9283_v16 }
 0x136   :  { %13046 = vst [vmem:[#allocation41_spill] sm:$0xff] %v10158_v58  ;;  %13047 = vst [vmem:[#allocation42_spill] sm:$0xff] %v10161_v9  ;;  %v10177_v62 = vrot.slane %v4103_v53, %v9283_v16  ;;  %v4235_v9 = vcombine.high %v3499_v39, %v3499_v39  ;;  %v4242_v49 = vrot.slane %v3499_v39, %v9283_v16 }
 0x137   :  { %13048 = vst [vmem:[#allocation43_spill] sm:$0xff] %v10164_v51  ;;  %13049 = vst [vmem:[#allocation44_spill] sm:$0xff] %v10172_v6  ;;  %v10182_v1 = vmul.f32 %v10076_v35, %v9864_v21  ;;  %v4201_v51 = vcombine.high %v4193_v61, %v4193_v61  ;;  %v4202_v60 = vcombine.high %v4200_v11, %v4200_v11 }
 0x138   :  { %13050 = vst [vmem:[#allocation45_spill] sm:$0xff] %v10177_v62  ;;  %v10185_v58 = vrot.slane %v4193_v61, %v9283_v16  ;;  %v10188_v6 = vrot.slane %v4200_v11, %v9283_v16  ;;  %v4249_v14 = vrot.slane %v4235_v9, %v9283_v16  ;;  %v4250_v54 = vcombine.high %v4242_v49, %v4242_v49 }
 0x139   :  { %v10192_v53 = vrot.slane %v4242_v49, %v9283_v16  ;;  %v13054_v39 = vcombine.high %v9867_v15, %v9867_v15  ;;  %v10201_v56 = vrot.slane %v4201_v51, %v9283_v16  ;;  %v10204_v61 = vrot.slane %v4202_v60, %v9283_v16 }
 0x13a   :  { %13051 = vst [vmem:[#allocation46_spill] sm:$0xff] %v10185_v58  ;;  %13052 = vst [vmem:[#allocation47_spill] sm:$0xff] %v10188_v6  ;;  %v13057_v11 = vcombine.high %v9873_v10, %v9873_v10  ;;  %v10214_v49 = vcombine.high %v9994_v36, %v9994_v36  ;;  %v10219_v6 = vrot.slane %v4249_v14, %v9283_v16 }
 0x13b   :  { %13053 = vst [vmem:[#allocation48_spill] sm:$0xff] %v10192_v53  ;;  %v10198_v35 = vmul.f32 %v9994_v36, %v13054_v39  ;;  %13055 = vst [vmem:[#allocation49_spill] sm:$0xff] %v10201_v56  ;;  %v10216_v53 = vpop.f32.mrb[16].mxu0  ;;  %v4251_v39 = vcombine.high %v4249_v14, %v4249_v14  ;;  %v10222_v51 = vrot.slane %v4250_v54, %v9283_v16 }
 0x13c   :  { %13056 = vst [vmem:[#allocation50_spill] sm:$0xff] %v10204_v61  ;;  %v10210_v9 = vmul.f32 %v10011_v38, %v13057_v11  ;;  %13058 = vst [vmem:[#allocation51_spill] sm:$0xff] %v10214_v49  ;;  %v10226_v60 = vcombine.high %v10011_v38, %v10011_v38  ;;  %v9001_v61 = vpop.f32.mrb[17].mxu0  ;;  %v13062_v56 = vcombine.high %v9966_v31, %v9966_v31 }
 0x13d   :  { %13059 = vst [vmem:[#allocation52_spill] sm:$0xff] %v10219_v6  ;;  %13060 = vst [vmem:[#allocation53_spill] sm:$0xff] %v10222_v51  ;;  %v10238_v14 = vcombine.high %v9985_v17, %v9985_v17  ;;  %v4436_v54 = vmul.f32 %v10214_v49, %v9876_v25  ;;  %v10242_v51 = vpop.f32.mrb[18].mxu0  ;;  %v10245_v61 = vrot.slane %v4251_v39, %v9283_v16 }
 0x13e   :  { %13061 = vst [vmem:[#allocation54_spill] sm:$0xff] %v10226_v60  ;;  %v10234_v58 = vrot.slane %v13062_v56, %v9283_v16  ;;  %v4437_v11 = vmul.f32 %v10226_v60, %v9892_v26  ;;  %v13066_v31 = vcombine.high %v9892_v26, %v9892_v26  ;;  %v13068_v6 = vcombine.high %v9895_v28, %v9895_v28  ;;  %v9002_v49 = vpop.f32.mrb[19].mxu0 }
 0x13f   :  { %13064 = vst [vmem:[#allocation56_spill] sm:$0xff] %v10238_v14  ;;  %13065 = vst [vmem:[#allocation57_spill] sm:$0xff] %v10245_v61  ;;  %v4441_v26 = vmul.f32 %v10238_v14, %v9895_v28  ;;  %v2513_v62 = vrot.slane %v9996_v47, %v9283_v16  ;;  %v10277_v49 = vcombine.high %v10000_v12, %v10000_v12 }
 0x140   :  { %13063 = vst [vmem:[#allocation55_spill] sm:$0xff] %v10234_v58  ;;  %v10253_v56 = vmul.f32 %v9985_v17, %v13066_v31  ;;  %v10259_v38 = vmul.f32 %v10000_v12, %v13068_v6  ;;  %v10263_v39 = vcombine.high %v10234_v58, %v10234_v58  ;;  %v4440_v60 = vmul.f32 %v10234_v58, %v9889_v24 }
 0x141   :  { %v2506_v31 = vcombine.high %v9996_v47, %v9996_v47  ;;  %v4851_v61 = vcombine.low %v4436_v54, %v4437_v11  ;;  %v3663_v6 = vcombine.high %v9979_v57, %v9979_v57  ;;  %13071 = vst [vmem:[#allocation61_spill] sm:$0xff] %v10277_v49  ;;  %v13072_v58 = vcombine.high %v9889_v24, %v9889_v24 }
 0x142   :  { %13067 = vst [vmem:[#allocation58_spill] sm:$0xff] %v10253_v56  ;;  %13069 = vst [vmem:[#allocation59_spill] sm:$0xff] %v10259_v38  ;;  %v4853_v28 = vcombine.low %v4440_v60, %v4441_v26  ;;  %v2555_v11 = vcombine.high %v10014_v43, %v10014_v43  ;;  %v2521_v57 = vcombine.high %v2513_v62, %v2513_v62 }
 0x143   :  { %13070 = vst [vmem:[#allocation60_spill] sm:$0xff] %v10263_v39  ;;  %v10283_v20 = vmul.f32 %v10263_v39, %v13072_v58  ;;  %v2520_v14 = vrot.slane %v2506_v31, %v9283_v16  ;;  %v10289_v47 = vrot.slane %v4851_v61, %v9283_v16  ;;  %v2529_v54 = vrot.slane %v2513_v62, %v9283_v16 }
 0x144   :  { %v10293_v12 = vrot.slane %v3663_v6, %v9283_v16  ;;  %v10298_v58 = vrot.slane %v4853_v28, %v9283_v16  ;;  %v2543_v31 = vrot.slane %v2521_v57, %v9283_v16  ;;  %v2562_v24 = vrot.slane %v10014_v43, %v9283_v16 }
 0x145   :  { %13073 = vst [vmem:[#allocation62_spill] sm:$0xff] %v10283_v20  ;;  %13074 = vst [vmem:[#allocation63_spill] sm:$0xff] %v10289_v47  ;;  %v2522_v60 = vcombine.high %v2520_v14, %v2520_v14  ;;  %v10301_v26 = vrot.slane %v2520_v14, %v9283_v16  ;;  %v2551_v61 = vcombine.high %v2529_v54, %v2529_v54 }
 0x146   :  { %13075 = vst [vmem:[#allocation64_spill] sm:$0xff] %v10293_v12  ;;  %13076 = vst [vmem:[#allocation65_spill] sm:$0xff] %v10298_v58  ;;  %v10306_v39 = vcombine.high %v10293_v12, %v10293_v12  ;;  %v4444_v62 = vmul.f32 %v10293_v12, %v2529_v54  ;;  %v2569_v14 = vrot.slane %v2555_v11, %v9283_v16 }
 0x147   :  { %v10310_v6 = vrot.slane %v2522_v60, %v9283_v16  ;;  %v2553_v36 = vcombine.high %v2543_v31, %v2543_v31  ;;  %v4445_v57 = vmul.f32 %v10277_v49, %v2543_v31  ;;  %v10321_v3 = vrot.slane %v9971_v52, %v9283_v16 }
 0x148   :  { %13077 = vst [vmem:[#allocation66_spill] sm:$0xff] %v10306_v39  ;;  %v4446_v58 = vmul.f32 %v10306_v39, %v2551_v61  ;;  %v2570_v60 = vcombine.high %v2562_v24, %v2562_v24  ;;  %v2571_v12 = vcombine.high %v2569_v14, %v2569_v14  ;;  %v2578_v28 = vrot.slane %v2562_v24, %v9283_v16  ;;  %v10336_v39 = vpop.f32.mrb[20].mxu0 }
 0x149   :  { %13078 = vst [vmem:[#allocation67_spill] sm:$0xff] %v10310_v6  ;;  %13079 = vst [vmem:[#allocation68_spill] sm:$0xff] %v10321_v3  ;;  %v4447_v43 = vmul.f32 %v9985_v17, %v2553_v36  ;;  %v4900_v47 = vcombine.low %v4444_v62, %v4445_v57  ;;  %v10328_v11 = vrot.slane %v2569_v14, %v9283_v16  ;;  %v9005_v24 = vpop.f32.mrb[21].mxu0 }
 0x14a   :  { %v13080_v31 = vcombine.high %v9971_v52, %v9971_v52  ;;  %v2592_v54 = vrot.slane %v2570_v60, %v9283_v16  ;;  %v2599_v49 = vrot.slane %v2571_v12, %v9283_v16  ;;  %v2600_v38 = vcombine.high %v2578_v28, %v2578_v28  ;;  %v10353_v60 = vpop.f32.mrb[22].mxu0 }
 0x14b   :  { %v10342_v36 = vcombine.high %v10321_v3, %v10321_v3  ;;  %v4901_v62 = vcombine.low %v4446_v58, %v4447_v43  ;;  %v10345_v14 = vrot.slane %v4900_v47, %v9283_v16  ;;  %v2601_v52 = vcombine.high %v10328_v11, %v10328_v11  ;;  %v9006_v58 = vpop.f32.mrb[23].mxu0 }
 0x14c   :  { %v10334_v61 = vrot.slane %v13080_v31, %v9283_v16  ;;  %v2602_v12 = vcombine.high %v2592_v54, %v2592_v54  ;;  %v2603_v31 = vcombine.high %v2599_v49, %v2599_v49  ;;  %v13085_v17 = vcombine.high %v9974_v42, %v9974_v42 }
 0x14d   :  { %13082 = vst [vmem:[#allocation70_spill] sm:$0xff] %v10342_v36  ;;  %13083 = vst [vmem:[#allocation71_spill] sm:$0xff] %v10345_v14  ;;  %v10363_v47 = vcombine.high %v10008_v46, %v10008_v46  ;;  %v10366_v43 = vrot.slane %v4901_v62, %v9283_v16  ;;  %v4452_v14 = vmul.f32 %v10321_v3, %v2578_v28 }
 0x14e   :  { %13081 = vst [vmem:[#allocation69_spill] sm:$0xff] %v10334_v61  ;;  %v10351_v57 = vcombine.high %v10334_v61, %v10334_v61  ;;  %v10359_v24 = vrot.slane %v13085_v17, %v9283_v16  ;;  %v4453_v20 = vmul.f32 %v10334_v61, %v2592_v54  ;;  %v4454_v56 = vmul.f32 %v10342_v36, %v2600_v38 }
 0x14f   :  { %13087 = vst [vmem:[#allocation74_spill] sm:$0xff] %v10363_v47  ;;  %v10373_v42 = vmul.f32 %v10008_v46, %v2599_v49  ;;  %v10379_v6 = vmul.f32 %v10363_v47, %v2603_v31  ;;  %v3545_v62 = vcombine.high %v9956_v13, %v9956_v13  ;;  %v3515_v28 = vcombine.high %v9949_v41, %v9949_v41  ;;  %v10432_v36 = vpop.f32.mrb[24].mxu0 }
 0x150   :  { %13084 = vst [vmem:[#allocation72_spill] sm:$0xff] %v10351_v57  ;;  %13086 = vst [vmem:[#allocation73_spill] sm:$0xff] %v10359_v24  ;;  %v4455_v63 = vmul.f32 %v10351_v57, %v2602_v12  ;;  %v10376_v17 = vmul.f32 %v10359_v24, %v2601_v52  ;;  %v4949_v58 = vcombine.low %v4452_v14, %v4453_v20  ;;  %v9009_v3 = vpop.f32.mrb[25].mxu0 }
 0x151   :  { %13088 = vst [vmem:[#allocation75_spill] sm:$0xff] %v10379_v6  ;;  %v4412_v38 = vmul.f32 %v9956_v13, %v9784_v27  ;;  %v2604_v52 = vcombine.high %v10108_v29, %v10108_v29  ;;  %v2611_v12 = vrot.slane %v10108_v29, %v9283_v16  ;;  %6933 = vrot.lane.b32.xlu1 %v3545_v62, %s9221_s3  ;;  %13097 = vst [vmem:[#allocation83_spill] sm:$0xff] %v10432_v36  ;;  %v10441_v6 = vpop.f32.mrb[26].mxu0 }
 0x152   :  { %v4950_v54 = vcombine.low %v4454_v56, %v4455_v63  ;;  %v10394_v20 = vrot.slane %v4949_v58, %v9283_v16  ;;  %v13090_v41 = vcombine.high %v9784_v27, %v9784_v27  ;;  %v3537_v13 = vrot.slane %v3515_v28, %v9283_v16 }
 0x153   :  { %v3761_v63 = vcombine.high %v9988_v4, %v9988_v4  ;;  %v2618_v31 = vrot.slane %v2604_v52, %v9283_v16  ;;  %v2619_v29 = vcombine.high %v2611_v12, %v2611_v12  ;;  %v2627_v58 = vrot.slane %v2611_v12, %v9283_v16 }
 0x154   :  { %13089 = vst [vmem:[#allocation76_spill] sm:$0xff] %v10394_v20  ;;  %v4414_v14 = vmul.f32 %v3545_v62, %v13090_v41  ;;  %v10404_v56 = vrot.slane %v4950_v54, %v9283_v16  ;;  %6931 = vrot.lane.b32.xlu0 %v3537_v13, %s9221_s3  ;;  %v4413_v49 = vmul.f32 %v3537_v13, %v9791_v23 }
 0x155   :  { %v10412_v27 = vrot.slane %v9988_v4, %v9283_v16  ;;  %v10415_v62 = vrot.slane %v3761_v63, %v9283_v16  ;;  %v10419_v28 = vcombine.high %v10359_v24, %v10359_v24  ;;  %v2620_v54 = vcombine.high %v2618_v31, %v2618_v31 }
 0x156   :  { %13091 = vst [vmem:[#allocation77_spill] sm:$0xff] %v10404_v56  ;;  %v2634_v52 = vrot.slane %v2618_v31, %v9283_v16  ;;  %v2641_v12 = vrot.slane %v2619_v29, %v9283_v16  ;;  %v2649_v41 = vcombine.high %v2627_v58, %v2627_v58  ;;  %v4704_v57 = vcombine.low %v4412_v38, %v4413_v49 }
 0x157   :  { %13092 = vst [vmem:[#allocation78_spill] sm:$0xff] %v10412_v27  ;;  %13093 = vst [vmem:[#allocation79_spill] sm:$0xff] %v10415_v62  ;;  %v10425_v47 = vcombine.high %v10412_v27, %v10412_v27  ;;  %v10429_v4 = vcombine.high %v10415_v62, %v10415_v62  ;;  %v4460_v63 = vmul.f32 %v10419_v28, %v2627_v58 }
 0x158   :  { %13094 = vst [vmem:[#allocation80_spill] sm:$0xff] %v10419_v28  ;;  %v2648_v24 = vrot.slane %v2620_v54, %v9283_v16  ;;  %v2650_v61 = vcombine.high %v2634_v52, %v2634_v52  ;;  %v2651_v31 = vcombine.high %v2641_v12, %v2641_v12  ;;  %v4461_v29 = vmul.f32 %v10412_v27, %v2641_v12  ;;  %v9010_v12 = vpop.f32.mrb[27].mxu0 }
 0x159   :  { %13095 = vst [vmem:[#allocation81_spill] sm:$0xff] %v10425_v47  ;;  %13096 = vst [vmem:[#allocation82_spill] sm:$0xff] %v10429_v4  ;;  %v10437_v38 = vrot.slane %v4704_v57, %v9283_v16  ;;  %v4462_v49 = vmul.f32 %v10415_v62, %v2649_v41  ;;  %v4464_v20 = vmul.f32 %v10429_v4, %v2634_v52 }
 0x15a   :  { %v3547_v56 = vcombine.high %v3537_v13, %v3537_v13  ;;  %v2652_v58 = vcombine.high %v2648_v24, %v2648_v24  ;;  %v4463_v28 = vmul.f32 %v10425_v47, %v2651_v31  ;;  %v4465_v54 = vmul.f32 %v10008_v46, %v2648_v24 }
 0x15b   :  { %v10446_v36 = vmul.f32 %v10034_v32, %v2650_v61  ;;  %v4998_v3 = vcombine.low %v4460_v63, %v4461_v29  ;;  %v13098_v57 = vcombine.high %v9791_v23, %v9791_v23  ;;  %v2653_v13 = vcombine.high %v10123_v50, %v10123_v50 }
 0x15c   :  { %6935 = vrot.lane.b32.xlu1 %v3547_v56, %s9221_s3  ;;  %v2660_v52 = vrot.slane %v10123_v50, %v9283_v16  ;;  %v10457_v31 = vmul.f32 %v10058_v5, %v2652_v58  ;;  %v4999_v24 = vcombine.low %v4462_v49, %v4463_v28  ;;  %v5000_v61 = vcombine.low %v4464_v20, %v4465_v54 }
 0x15d   :  { %v4415_v41 = vmul.f32 %v3547_v56, %v13098_v57  ;;  %v10461_v63 = vrot.slane %v10031_v0, %v9283_v16  ;;  %v10464_v29 = vrot.slane %v4998_v3, %v9283_v16  ;;  %v2667_v56 = vrot.slane %v2653_v13, %v9283_v16 }
 0x15e   :  { %v2668_v12 = vcombine.high %v2660_v52, %v2660_v52  ;;  %v10470_v50 = vrot.slane %v4999_v24, %v9283_v16  ;;  %v10473_v28 = vrot.slane %v5000_v61, %v9283_v16  ;;  %v2676_v20 = vrot.slane %v2660_v52, %v9283_v16 }
 0x15f   :  { %13099 = vst [vmem:[#allocation84_spill] sm:$0xff] %v10461_v63  ;;  %v4705_v23 = vcombine.low %v4414_v14, %v4415_v41  ;;  %v2669_v58 = vcombine.high %v2667_v56, %v2667_v56  ;;  %v2683_v14 = vrot.slane %v2667_v56, %v9283_v16  ;;  %v13100_v41 = vcombine.high %v10031_v0, %v10031_v0 }
 0x160   :  { %v2690_v54 = vrot.slane %v2668_v12, %v9283_v16  ;;  %v2698_v3 = vcombine.high %v2676_v20, %v2676_v20  ;;  %v10489_v24 = vcombine.high %v10034_v32, %v10034_v32  ;;  %v10493_v52 = vcombine.high %v10461_v63, %v10461_v63 }
 0x161   :  { %v10477_v49 = vrot.slane %v4705_v23, %v9283_v16  ;;  %v10485_v13 = vrot.slane %v13100_v41, %v9283_v16  ;;  %v2697_v61 = vrot.slane %v2669_v58, %v9283_v16  ;;  %v2699_v23 = vcombine.high %v2683_v14, %v2683_v14 }
 0x162   :  { %13102 = vst [vmem:[#allocation86_spill] sm:$0xff] %v10489_v24  ;;  %13103 = vst [vmem:[#allocation87_spill] sm:$0xff] %v10493_v52  ;;  %v2700_v56 = vcombine.high %v2690_v54, %v2690_v54  ;;  %v10498_v12 = vcombine.high %v10058_v5, %v10058_v5  ;;  %v4468_v41 = vmul.f32 %v10489_v24, %v2676_v20  ;;  %v10512_v5 = vpop.f32.mrb[28].mxu0 }
 0x163   :  { %13101 = vst [vmem:[#allocation85_spill] sm:$0xff] %v10485_v13  ;;  %v10502_v0 = vcombine.high %v10485_v13, %v10485_v13  ;;  %v4470_v57 = vmul.f32 %v10461_v63, %v2698_v3  ;;  %v4472_v4 = vmul.f32 %v10493_v52, %v2683_v14  ;;  %v2701_v47 = vcombine.high %v2697_v61, %v2697_v61  ;;  %v9013_v3 = vpop.f32.mrb[29].mxu0 }
 0x164   :  { %13104 = vst [vmem:[#allocation88_spill] sm:$0xff] %v10498_v12  ;;  %v4469_v62 = vmul.f32 %v10498_v12, %v2690_v54  ;;  %v4471_v58 = vmul.f32 %v10485_v13, %v2700_v56  ;;  %v10510_v27 = vmul.f32 %v10034_v32, %v2699_v23  ;;  %13107 = vst [vmem:[#allocation91_spill] sm:$0xff] %v10512_v5 }
 0x165   :  { %13105 = vst [vmem:[#allocation89_spill] sm:$0xff] %v10502_v0  ;;  %v4473_v46 = vmul.f32 %v10502_v0, %v2697_v61  ;;  %v13108_v20 = vcombine.high %v9924_v34, %v9924_v34  ;;  %v3556_v14 = vrot.slane %v9937_v48, %v9283_v16  ;;  %v2702_v54 = vcombine.high %v10216_v53, %v10216_v53  ;;  %v10528_v0 = vpop.f32.mrb[30].mxu0 }
 0x166   :  { %13106 = vst [vmem:[#allocation90_spill] sm:$0xff] %v10510_v27  ;;  %v10524_v56 = vmul.f32 %v10041_v19, %v2701_v47  ;;  %v5047_v23 = vcombine.low %v4468_v41, %v4469_v62  ;;  %v5048_v52 = vcombine.low %v4470_v57, %v4471_v58  ;;  %v2709_v61 = vrot.slane %v10216_v53, %v9283_v16  ;;  %v9014_v12 = vpop.f32.mrb[31].mxu0 }
 0x167   :  { %v3514_v24 = vrot.slane %v13108_v20, %v9283_v16  ;;  %13110 = vst [vmem:[#allocation93_spill] sm:$0xff] %v10528_v0  ;;  %v5049_v13 = vcombine.low %v4472_v4, %v4473_v46  ;;  %v3572_v48 = vrot.slane %v3556_v14, %v9283_v16  ;;  %v2716_v53 = vrot.slane %v2702_v54, %v9283_v16 }
 0x168   :  { %13109 = vst [vmem:[#allocation92_spill] sm:$0xff] %v10524_v56  ;;  %v10535_v47 = vrot.slane %v5047_v23, %v9283_v16  ;;  %v10538_v62 = vrot.slane %v5048_v52, %v9283_v16  ;;  %v2717_v52 = vcombine.high %v2709_v61, %v2709_v61 }
 0x169   :  { %v3530_v34 = vrot.slane %v3514_v24, %v9283_v16  ;;  %v3516_v20 = vcombine.high %v3514_v24, %v3514_v24  ;;  %v10542_v57 = vrot.slane %v5049_v13, %v9283_v16  ;;  %v10550_v12 = vmul.f32 %v3572_v48, %v9816_v40 }
 0x16a   :  { %13111 = vst [vmem:[#allocation94_spill] sm:$0xff] %v10535_v47  ;;  %13112 = vst [vmem:[#allocation95_spill] sm:$0xff] %v10538_v62  ;;  %v10553_v41 = vmul.f32 %v3572_v48, %v9870_v22  ;;  %v2718_v58 = vcombine.high %v2716_v53, %v2716_v53  ;;  %v13114_v13 = vcombine.high %v9788_v18, %v9788_v18 }
 0x16b   :  { %13113 = vst [vmem:[#allocation96_spill] sm:$0xff] %v10542_v57  ;;  %6937 = vrot.lane.b32.xlu0 %v3530_v34, %s9221_s3  ;;  %v10545_v46 = vcombine.high %v3530_v34, %v3530_v34  ;;  %v4416_v4 = vmul.f32 %v3530_v34, %v9788_v18  ;;  %v3544_v24 = vrot.slane %v3516_v20, %v9283_v16 }
 0x16c   :  { %v2725_v20 = vrot.slane %v2709_v61, %v9283_v16  ;;  %v2732_v63 = vrot.slane %v2716_v53, %v9283_v16  ;;  %v2739_v0 = vrot.slane %v2717_v52, %v9283_v16  ;;  %v2746_v18 = vrot.slane %v2718_v58, %v9283_v16 }
 0x16d   :  { %v10559_v54 = vmul.f32 %v10545_v46, %v13114_v13  ;;  %6939 = vrot.lane.b32.xlu1 %v3544_v24, %s9221_s3  ;;  %v10562_v23 = vcombine.high %v3544_v24, %v3544_v24  ;;  %v4417_v34 = vmul.f32 %v3544_v24, %v9803_v33  ;;  %v13115_v13 = vcombine.high %v9803_v33, %v9803_v33 }
 0x16e   :  { %v2747_v24 = vcombine.high %v2725_v20, %v2725_v20  ;;  %v3858_v61 = vcombine.high %v10017_v45, %v10017_v45  ;;  %v2748_v3 = vcombine.high %v2732_v63, %v2732_v63  ;;  %v2749_v57 = vcombine.high %v2739_v0, %v2739_v0 }
 0x16f   :  { %v10575_v5 = vmul.f32 %v10562_v23, %v13115_v13  ;;  %v4706_v32 = vcombine.low %v4416_v4, %v4417_v34  ;;  %6945 = vrot.lane.b32.xlu0 %v3572_v48, %s9221_s3  ;;  %v2750_v53 = vcombine.high %v2746_v18, %v2746_v18  ;;  %v3859_v52 = vcombine.high %v10037_v44, %v10037_v44 }
 0x170   :  { %v10589_v4 = vrot.slane %v10037_v44, %v9283_v16  ;;  %v10592_v34 = vrot.slane %v3858_v61, %v9283_v16  ;;  %v10599_v13 = vcombine.high %v10041_v19, %v10041_v19  ;;  %v10623_v27 = vcombine.high %v3572_v48, %v3572_v48 }
 0x171   :  { %v4707_v58 = vcombine.low %v10559_v54, %v10575_v5  ;;  %v10585_v33 = vrot.slane %v4706_v32, %v9283_v16  ;;  %v10595_v45 = vrot.slane %v3859_v52, %v9283_v16  ;;  %v10602_v47 = vmul.f32 %v10041_v19, %v2750_v53 }
 0x172   :  { %13116 = vst [vmem:[#allocation97_spill] sm:$0xff] %v10589_v4  ;;  %13117 = vst [vmem:[#allocation98_spill] sm:$0xff] %v10592_v34  ;;  %v3564_v5 = vcombine.high %v3556_v14, %v3556_v14  ;;  %v10606_v32 = vcombine.high %v10589_v4, %v10589_v4  ;;  %v10610_v44 = vcombine.high %v10592_v34, %v10592_v34 }
 0x173   :  { %13118 = vst [vmem:[#allocation99_spill] sm:$0xff] %v10595_v45  ;;  %13119 = vst [vmem:[#allocation100_spill] sm:$0xff] %v10599_v13  ;;  %v4476_v54 = vmul.f32 %v10592_v34, %v2725_v20  ;;  %v4479_v61 = vmul.f32 %v10589_v4, %v2749_v57  ;;  %v10616_v52 = vcombine.high %v10595_v45, %v10595_v45  ;;  %v13130_v34 = vld [vmem:[#allocation12_spill] sm:$0xff] }
 0x174   :  { %13120 = vst [vmem:[#allocation101_spill] sm:$0xff] %v10606_v32  ;;  %13121 = vst [vmem:[#allocation102_spill] sm:$0xff] %v10610_v44  ;;  %v4477_v53 = vmul.f32 %v10599_v13, %v2739_v0  ;;  %v4480_v14 = vmul.f32 %v10595_v45, %v2732_v63  ;;  %v3586_v19 = vrot.slane %v3564_v5, %v9283_v16  ;;  %v13129_v13 = vld [vmem:[#allocation25_spill] sm:$0xff] }
 0x175   :  { %13122 = vst [vmem:[#allocation103_spill] sm:$0xff] %v10616_v52  ;;  %v4478_v62 = vmul.f32 %v10610_v44, %v2747_v24  ;;  %v4481_v56 = vmul.f32 %v10606_v32, %v2746_v18  ;;  %v2751_v20 = vcombine.high %v10242_v51, %v10242_v51  ;;  %v10628_v57 = vmul.f32 %v10616_v52, %v2748_v3 }
 0x176   :  { %v5096_v4 = vcombine.low %v4476_v54, %v4477_v53  ;;  %6947 = vrot.lane.b32.xlu1 %v3586_v19, %s9221_s3  ;;  %v10631_v0 = vcombine.high %v3586_v19, %v3586_v19  ;;  %v13123_v63 = vcombine.high %v9799_v30, %v9799_v30  ;;  %v13124_v48 = vcombine.high %v9816_v40, %v9816_v40 }
 0x177   :  { %v5097_v24 = vcombine.low %v4478_v62, %v4479_v61  ;;  %v5098_v45 = vcombine.low %v4480_v14, %v4481_v56  ;;  %v2758_v3 = vrot.slane %v10242_v51, %v9283_v16  ;;  %v4735_v32 = vrot.slane %v4707_v58, %v9283_v16 }
 0x178   :  { %v4422_v5 = vmul.f32 %v3586_v19, %v13123_v63  ;;  %v4423_v18 = vmul.f32 %v10623_v27, %v13124_v48  ;;  %v10645_v53 = vrot.slane %v5096_v4, %v9283_v16  ;;  %v4424_v30 = vmul.f32 %v10631_v0, %v9811_v37 }
 0x179   :  { %v2765_v19 = vrot.slane %v2751_v20, %v9283_v16  ;;  %v10651_v56 = vrot.slane %v5097_v24, %v9283_v16  ;;  %v10654_v40 = vrot.slane %v5098_v45, %v9283_v16  ;;  %v2766_v61 = vcombine.high %v2758_v3, %v2758_v3 }
 0x17a   :  { %v4754_v62 = vcombine.low %v4422_v5, %v4423_v18  ;;  %v4755_v51 = vcombine.low %v4424_v30, %v10045_v2  ;;  %v2774_v63 = vrot.slane %v2758_v3, %v9283_v16  ;;  %v10665_v20 = vcombine.high %v10097_v59, %v10097_v59  ;;  %v13127_v3 = vld [vmem:[#allocation11_spill] sm:$0xff] }
 0x17b   :  { %v2767_v14 = vcombine.high %v2765_v19, %v2765_v19  ;;  %v2781_v4 = vrot.slane %v2765_v19, %v9283_v16  ;;  %v10661_v37 = vrot.slane %v2766_v61, %v9283_v16  ;;  %v10669_v45 = vcombine.high %v10111_v55, %v10111_v55 }
 0x17c   :  { %v4770_v48 = vrot.slane %v4754_v62, %v9283_v16  ;;  %v4777_v2 = vrot.slane %v4755_v51, %v9283_v16  ;;  %v2796_v24 = vcombine.high %v2774_v63, %v2774_v63  ;;  %v10677_v30 = vcombine.high %v10126_v7, %v10126_v7 }
 0x17d   :  { %13125 = vst [vmem:[#allocation104_spill] sm:$0xff] %v10669_v45  ;;  %v2795_v5 = vrot.slane %v2767_v14, %v9283_v16  ;;  %v2797_v18 = vcombine.high %v2781_v4, %v2781_v4  ;;  %v10680_v19 = vmul.f32 %v10097_v59, %v2774_v63  ;;  %v4488_v62 = vmul.f32 %v10111_v55, %v2781_v4 }
 0x17e   :  { %13126 = vst [vmem:[#allocation105_spill] sm:$0xff] %v10677_v30  ;;  %v10684_v54 = vmul.f32 %v10665_v20, %v2796_v24  ;;  %v3605_v52 = vrot.slane %v13127_v3, %v9283_v16  ;;  %v4736_v63 = vcombine.low %v10437_v38, %v10477_v49  ;;  %v13128_v4 = vcombine.low %v10028_v8, %v10550_v12 }
 0x17f   :  { %v2799_v61 = vcombine.high %v2795_v5, %v2795_v5  ;;  %v4489_v51 = vmul.f32 %v10126_v7, %v2795_v5  ;;  %v10688_v14 = vmul.f32 %v10669_v45, %v2797_v18  ;;  %v4786_v18 = vcombine.low %v4777_v2, %v13129_v13 }
 0x180   :  { %v4763_v44 = vrot.slane %v13128_v4, %v9283_v16  ;;  %v3703_v45 = vrot.slane %v13130_v34, %v9283_v16  ;;  %v3621_v3 = vrot.slane %v3605_v52, %v9283_v16  ;;  %v3613_v58 = vcombine.high %v3605_v52, %v3605_v52 }
 0x181   :  { %v10700_v24 = vmul.f32 %v10677_v30, %v2799_v61  ;;  %v5147_v5 = vcombine.low %v4488_v62, %v4489_v51  ;;  %v4737_v7 = vcombine.low %v10585_v33, %v4735_v32  ;;  %v4744_v38 = vrot.slane %v4736_v63, %v9283_v16 }
 0x182   :  { %v4785_v12 = vcombine.low %v4763_v44, %v4770_v48  ;;  %v4800_v62 = vrot.slane %v4786_v18, %v9283_v16  ;;  %v10714_v13 = vcombine.high %v3621_v3, %v3621_v3  ;;  %6961 = vrot.lane.b32.xlu0 %v3621_v3, %s9221_s3  ;;  %v13131_v34 = vcombine.high %v9864_v21, %v9864_v21 }
 0x183   :  { %v10711_v49 = vrot.slane %v5147_v5, %v9283_v16  ;;  %v13132_v33 = vcombine.high %v9876_v25, %v9876_v25  ;;  %v3635_v2 = vrot.slane %v3613_v58, %v9283_v16  ;;  %v4751_v61 = vrot.slane %v4737_v7, %v9283_v16 }
 0x184   :  { %v4430_v52 = vmul.f32 %v3621_v3, %v13131_v34  ;;  %v4793_v44 = vrot.slane %v4785_v12, %v9283_v16  ;;  %v3719_v48 = vrot.slane %v3703_v45, %v9283_v16  ;;  %v4802_v51 = vcombine.low %v10182_v1, %v10553_v41  ;;  %v13138_v34 = vld [vmem:[#allocation28_spill] sm:$0xff] }
 0x185   :  { %v10723_v32 = vmul.f32 %v3621_v3, %v13132_v33  ;;  %v10731_v63 = vcombine.high %v3635_v2, %v3635_v2  ;;  %6963 = vrot.lane.b32.xlu1 %v3635_v2, %s9221_s3  ;;  %v13133_v21 = vcombine.high %v9870_v22, %v9870_v22  ;;  %v4432_v4 = vmul.f32 %v10714_v13, %v9867_v15 }
 0x186   :  { %v13134_v7 = vcombine.low %v10198_v35, %v10210_v9  ;;  %v4752_v18 = vcombine.low %v4744_v38, %v4751_v61  ;;  %v4801_v3 = vcombine.low %v4793_v44, %v4800_v62  ;;  %v10743_v58 = vcombine.high %v3719_v48, %v3719_v48  ;;  %6993 = vrot.lane.b32.xlu0 %v3719_v48, %s9221_s3  ;;  %v13135_v38 = vld [vmem:[#allocation27_spill] sm:$0xff]  ;;  %v13141_v61 = vld [vmem:[#allocation29_spill] sm:$0xff]  ;;  %v13143_v44 = vld [vmem:[#allocation30_spill] sm:$0xff] }
 0x187   :  { %v4431_v25 = vmul.f32 %v3635_v2, %v13133_v21  ;;  %v10746_v1 = vmul.f32 %v3719_v48, %v10301_v26  ;;  %v4433_v41 = vmul.f32 %v10731_v63, %v9873_v10  ;;  %v10752_v15 = vmul.f32 %v3719_v48, %v10328_v11 }
 0x188   :  { %v4833_v5 = vrot.slane %v13134_v7, %v9283_v16  ;;  %v4812_v12 = vrot.slane %v4802_v51, %v9283_v16  ;;  %9035 = vmatprep.mubr.msk.f32.mxu1 %vm2015_vm1, %v4752_v18  ;;  %v2800_v35 = vcombine.high %v10336_v39, %v10336_v39  ;;  %v2807_v9 = vrot.slane %v10336_v39, %v9283_v16 }
 0x189   :  { %v4803_v22 = vcombine.low %v4430_v52, %v4431_v25  ;;  %v13136_v10 = vcombine.high %v13135_v38, %v13135_v38  ;;  %v13139_v11 = vcombine.high %v13138_v34, %v13138_v34  ;;  %9036 = vmatmul.mubr.msk.f32.vlgmr.msra.gmra.mrb[8].mxu1 %vm2015_vm1, %v4801_v3  ;;  %v4804_v2 = vcombine.low %v4432_v4, %v4433_v41 }
 0x18a   :  { %v10776_v39 = vcombine.high %v13141_v61, %v13141_v61  ;;  %v10780_v48 = vcombine.high %v13143_v44, %v13143_v44  ;;  %v2814_v51 = vrot.slane %v2800_v35, %v9283_v16  ;;  %v2815_v21 = vcombine.high %v2807_v9, %v2807_v9  ;;  %7057 = vrot.lane.b32.xlu0 %v10097_v59, %s9221_s3 }
 0x18b   :  { %v10764_v62 = vrot.slane %v13136_v10, %v9283_v16  ;;  %v10770_v52 = vrot.slane %v13139_v11, %v9283_v16  ;;  %v4819_v33 = vrot.slane %v4803_v22, %v9283_v16  ;;  %v2823_v25 = vrot.slane %v2807_v9, %v9283_v16 }
 0x18c   :  { %13142 = vst [vmem:[#allocation12_spill] sm:$0xff] %v10776_v39  ;;  %13144 = vst [vmem:[#allocation27_spill] sm:$0xff] %v10780_v48  ;;  %v4826_v18 = vrot.slane %v4804_v2, %v9283_v16  ;;  %v3711_v3 = vcombine.high %v3703_v45, %v3703_v45  ;;  %v2849_v41 = vcombine.high %v10353_v60, %v10353_v60 }
 0x18d   :  { %13137 = vst [vmem:[#allocation11_spill] sm:$0xff] %v10764_v62  ;;  %13140 = vst [vmem:[#allocation25_spill] sm:$0xff] %v10770_v52  ;;  %v10786_v7 = vcombine.high %v10764_v62, %v10764_v62  ;;  %v4834_v4 = vcombine.low %v4812_v12, %v4819_v33  ;;  %v2816_v22 = vcombine.high %v2814_v51, %v2814_v51 }
 0x18e   :  { %v2830_v35 = vrot.slane %v2814_v51, %v9283_v16  ;;  %v2837_v38 = vrot.slane %v2815_v21, %v9283_v16  ;;  %v2845_v9 = vcombine.high %v2823_v25, %v2823_v25  ;;  %v4835_v10 = vcombine.low %v4826_v18, %v4833_v5  ;;  %6941 = vrot.lane.b32.xlu0 %v10545_v46, %s9221_s3 }
 0x18f   :  { %13145 = vst [vmem:[#allocation28_spill] sm:$0xff] %v10786_v7  ;;  %v4842_v34 = vrot.slane %v4834_v4, %v9283_v16  ;;  %v4492_v11 = vmul.f32 %v10097_v59, %v2823_v25  ;;  %v3733_v12 = vrot.slane %v3711_v3, %v9283_v16  ;;  %v2844_v45 = vrot.slane %v2816_v22, %v9283_v16 }
 0x190   :  { %v2846_v33 = vcombine.high %v2830_v35, %v2830_v35  ;;  %v2847_v2 = vcombine.high %v2837_v38, %v2837_v38  ;;  %v4493_v8 = vmul.f32 %v13141_v61, %v2837_v38  ;;  %v4849_v30 = vrot.slane %v4835_v10, %v9283_v16  ;;  %v13146_v38 = vld [vmem:[#allocation67_spill] sm:$0xff] }
 0x191   :  { %v4494_v51 = vmul.f32 %v10764_v62, %v2845_v9  ;;  %v4496_v21 = vmul.f32 %v10786_v7, %v2830_v35  ;;  %6995 = vrot.lane.b32.xlu1 %v3733_v12, %s9221_s3  ;;  %v10804_v5 = vcombine.high %v3733_v12, %v3733_v12  ;;  %v2848_v18 = vcombine.high %v2844_v45, %v2844_v45 }
 0x192   :  { %v4495_v59 = vmul.f32 %v10776_v39, %v2847_v2  ;;  %v4497_v25 = vmul.f32 %v13143_v44, %v2844_v45  ;;  %v10809_v4 = vmul.f32 %v10770_v52, %v2846_v33  ;;  %v4850_v3 = vcombine.low %v4842_v34, %v4849_v30  ;;  %6949 = vrot.lane.b32.xlu0 %v10623_v27, %s9221_s3  ;;  %v13158_v39 = vld [vmem:[#allocation59_spill] sm:$0xff] }
 0x193   :  { %v5194_v22 = vcombine.low %v4492_v11, %v4493_v8  ;;  %v4449_v9 = vmul.f32 %v3733_v12, %v13146_v38  ;;  %v13147_v35 = vcombine.high %v13146_v38, %v13146_v38  ;;  %v10819_v7 = vmul.f32 %v10780_v48, %v2848_v18  ;;  %v13155_v48 = vld [vmem:[#allocation14_spill] sm:$0xff] }
 0x194   :  { %v5195_v2 = vcombine.low %v4494_v51, %v4495_v59  ;;  %v5196_v45 = vcombine.low %v4496_v21, %v4497_v25  ;;  %v2856_v33 = vrot.slane %v10353_v60, %v9283_v16  ;;  %9038 = vmatprep.mubr.msk.f32.mxu1 %vm2015_vm1, %v4850_v3  ;;  %v2863_v8 = vrot.slane %v2849_v41, %v9283_v16  ;;  %v13151_v25 = vld [vmem:[#allocation31_spill] sm:$0xff] }
 0x195   :  { %v4451_v10 = vmul.f32 %v10804_v5, %v13147_v35  ;;  %v10825_v46 = vrot.slane %v5194_v22, %v9283_v16  ;;  %v4902_v30 = vcombine.low %v10746_v1, %v4449_v9  ;;  %v10831_v34 = vcombine.high %v10770_v52, %v10770_v52  ;;  %v13153_v22 = vld [vmem:[#allocation34_spill] sm:$0xff] }
 0x196   :  { %v10836_v12 = vrot.slane %v5195_v2, %v9283_v16  ;;  %v10839_v60 = vrot.slane %v5196_v45, %v9283_v16  ;;  %v2864_v51 = vcombine.high %v2856_v33, %v2856_v33  ;;  %v2865_v41 = vcombine.high %v2863_v8, %v2863_v8  ;;  %v13154_v9 = vld [vmem:[#allocation58_spill] sm:$0xff]  ;;  %6953 = vrot.lane.b32.xlu0 %v13155_v48, %s9221_s3 }
 0x197   :  { %13148 = vst [vmem:[#allocation29_spill] sm:$0xff] %v10825_v46  ;;  %13149 = vst [vmem:[#allocation67_spill] sm:$0xff] %v10831_v34  ;;  %v4924_v1 = vrot.slane %v4902_v30, %v9283_v16  ;;  %v2872_v21 = vrot.slane %v2856_v33, %v9283_v16  ;;  %v2879_v18 = vrot.slane %v2863_v8, %v9283_v16 }
 0x198   :  { %13150 = vst [vmem:[#allocation106_spill] sm:$0xff] %v10839_v60  ;;  %v2886_v59 = vrot.slane %v2864_v51, %v9283_v16  ;;  %v10849_v3 = vcombine.high %v13151_v25, %v13151_v25  ;;  %v10853_v38 = vcombine.high %v13153_v22, %v13153_v22  ;;  %v4852_v27 = vcombine.low %v10723_v32, %v13154_v9  ;;  %v13161_v60 = vld [vmem:[#allocation37_spill] sm:$0xff] }
 0x199   :  { %v2893_v35 = vrot.slane %v2865_v41, %v9283_v16  ;;  %v2894_v2 = vcombine.high %v2872_v21, %v2872_v21  ;;  %v2895_v45 = vcombine.high %v2879_v18, %v2879_v18  ;;  %v4500_v33 = vmul.f32 %v10831_v34, %v2872_v21  ;;  %v13156_v41 = vld [vmem:[#allocation33_spill] sm:$0xff] }
 0x19a   :  { %13152 = vst [vmem:[#allocation31_spill] sm:$0xff] %v10849_v3  ;;  %v2896_v30 = vcombine.high %v2886_v59, %v2886_v59  ;;  %v4501_v8 = vmul.f32 %v13141_v61, %v2886_v59  ;;  %v4504_v51 = vmul.f32 %v10849_v3, %v2879_v18  ;;  %v4868_v11 = vrot.slane %v4852_v27, %v9283_v16  ;;  %v13157_v59 = vld [vmem:[#allocation62_spill] sm:$0xff]  ;;  %v13160_v27 = vld [vmem:[#allocation63_spill] sm:$0xff] }
 0x19b   :  { %v2897_v52 = vcombine.high %v2893_v35, %v2893_v35  ;;  %v4502_v44 = vmul.f32 %v13151_v25, %v2894_v2  ;;  %v4505_v32 = vmul.f32 %v10853_v38, %v2893_v35  ;;  %v10867_v9 = vmul.f32 %v13156_v41, %v2895_v45  ;;  %v13163_v45 = vld [vmem:[#allocation71_spill] sm:$0xff]  ;;  %6965 = vrot.lane.b32.xlu0 %v10714_v13, %s9221_s3 }
 0x19c   :  { %v4503_v21 = vmul.f32 %v13153_v22, %v2896_v30  ;;  %v5243_v34 = vcombine.low %v4500_v33, %v4501_v8  ;;  %v13159_v18 = vcombine.low %v13157_v59, %v13158_v39  ;;  %v4883_v62 = vcombine.low %v13160_v27, %v4868_v11  ;;  %v13164_v39 = vld [vmem:[#allocation65_spill] sm:$0xff]  ;;  %v13169_v27 = vld [vmem:[#allocation76_spill] sm:$0xff] }
 0x19d   :  { %v10876_v48 = vmul.f32 %v13161_v60, %v2897_v52  ;;  %v5245_v46 = vcombine.low %v4504_v51, %v4505_v32  ;;  %v13162_v35 = vcombine.high %v10301_v26, %v10301_v26  ;;  %v4932_v30 = vcombine.low %v13163_v45, %v10366_v43 }
 0x19e   :  { %v4882_v3 = vrot.slane %v13159_v18, %v9283_v16  ;;  %v5244_v33 = vcombine.low %v4502_v44, %v4503_v21  ;;  %v10885_v8 = vrot.slane %v5243_v34, %v9283_v16  ;;  %v4891_v11 = vrot.slane %v4883_v62, %v9283_v16  ;;  %v13168_v18 = vld [vmem:[#allocation77_spill] sm:$0xff] }
 0x19f   :  { %v4450_v2 = vmul.f32 %v10743_v58, %v13162_v35  ;;  %v10894_v26 = vrot.slane %v5245_v46, %v9283_v16  ;;  %v4940_v43 = vrot.slane %v4932_v30, %v9283_v16  ;;  %v4951_v13 = vcombine.low %v10752_v15, %v10373_v42  ;;  %v13166_v46 = vld [vmem:[#allocation75_spill] sm:$0xff] }
 0x1a0   :  { %v4884_v59 = vcombine.low %v13164_v39, %v4882_v3  ;;  %v10898_v44 = vrot.slane %v5244_v33, %v9283_v16  ;;  %v13165_v3 = vld [vmem:[#allocation26_spill] sm:$0xff]  ;;  %v13167_v21 = vcombine.low %v10376_v17, %v13166_v46  ;;  %v4981_v35 = vcombine.low %v13169_v27, %v13168_v18  ;;  %v13171_v39 = vld [vmem:[#allocation15_spill] sm:$0xff] }
 0x1a1   :  { %v4903_v51 = vcombine.low %v4450_v2, %v4451_v10  ;;  %v3907_v62 = vcombine.high %v13165_v3, %v13165_v3  ;;  %v13170_v2 = vcombine.low %v10446_v36, %v10457_v31  ;;  %v4973_v42 = vrot.slane %v4951_v13, %v9283_v16  ;;  %6969 = vrot.lane.b32.xlu0 %v13171_v39, %s9221_s3  ;;  %v13172_v3 = vld [vmem:[#allocation83_spill] sm:$0xff] }
 0x1a2   :  { %v4898_v34 = vrot.slane %v4884_v59, %v9283_v16  ;;  %v4980_v10 = vrot.slane %v13167_v21, %v9283_v16  ;;  %v5030_v15 = vcombine.low %v10464_v29, %v10470_v50  ;;  %v4989_v59 = vrot.slane %v4981_v35, %v9283_v16 }
 0x1a3   :  { %v4931_v32 = vrot.slane %v4903_v51, %v9283_v16  ;;  %v5029_v45 = vrot.slane %v13170_v2, %v9283_v16  ;;  %v3929_v33 = vrot.slane %v3907_v62, %v9283_v16  ;;  %v2898_v36 = vcombine.high %v13172_v3, %v13172_v3 }
 0x1a4   :  { %v4899_v30 = vcombine.low %v4891_v11, %v4898_v34  ;;  %v4982_v29 = vcombine.low %v4973_v42, %v4980_v10  ;;  %v13173_v62 = vcombine.high %v10661_v37, %v10661_v37  ;;  %v13174_v10 = vld [vmem:[#allocation13_spill] sm:$0xff] }
 0x1a5   :  { %v4933_v17 = vcombine.low %v4924_v1, %v4931_v32  ;;  %v5031_v51 = vcombine.low %v10473_v28, %v5029_v45  ;;  %7059 = vrot.lane.b32.xlu1 %v3929_v33, %s9221_s3  ;;  %v10928_v31 = vcombine.high %v3929_v33, %v3929_v33  ;;  %v4485_v11 = vmul.f32 %v3929_v33, %v10661_v37 }
 0x1a6   :  { %9039 = vmatmul.mubr.msk.f32.gmra.mrb[10].mxu1 %vm2015_vm1, %v4899_v30  ;;  %v5038_v1 = vrot.slane %v5030_v15, %v9283_v16  ;;  %v2905_v28 = vrot.slane %v13172_v3, %v9283_v16  ;;  %v4996_v46 = vrot.slane %v4982_v29, %v9283_v16  ;;  %v2912_v21 = vrot.slane %v2898_v36, %v9283_v16  ;;  %v13178_v3 = vld [vmem:[#allocation39_spill] sm:$0xff] }
 0x1a7   :  { %v4947_v50 = vrot.slane %v4933_v17, %v9283_v16  ;;  %v5045_v34 = vrot.slane %v5031_v51, %v9283_v16  ;;  %v10940_v13 = vmul.f32 %v10928_v31, %v13173_v62  ;;  %v5145_v32 = vcombine.low %v10680_v19, %v4485_v11  ;;  %6977 = vrot.lane.b32.xlu0 %v13174_v10, %s9221_s3 }
 0x1a8   :  { %v2913_v35 = vcombine.high %v2905_v28, %v2905_v28  ;;  %v2921_v2 = vrot.slane %v2905_v28, %v9283_v16  ;;  %v4997_v30 = vcombine.low %v4989_v59, %v4996_v46  ;;  %v2914_v19 = vcombine.high %v2912_v21, %v2912_v21 }
 0x1a9   :  { %v4948_v18 = vcombine.low %v4940_v43, %v4947_v50  ;;  %v5046_v27 = vcombine.low %v5038_v1, %v5045_v34  ;;  %v10951_v45 = vrot.slane %v5145_v32, %v9283_v16  ;;  %6943 = vrot.lane.b32.xlu1 %v10562_v23, %s9221_s3  ;;  %v2928_v33 = vrot.slane %v2912_v21, %v9283_v16  ;;  %v13176_v23 = vld [vmem:[#allocation35_spill] sm:$0xff] }
 0x1aa   :  { %v2935_v43 = vrot.slane %v2913_v35, %v9283_v16  ;;  %v2943_v42 = vcombine.high %v2921_v2, %v2921_v2  ;;  %v10960_v15 = vcombine.high %v13156_v41, %v13156_v41  ;;  %v2942_v39 = vrot.slane %v2914_v19, %v9283_v16  ;;  %v13181_v35 = vld [vmem:[#allocation40_spill] sm:$0xff] }
 0x1ab   :  { %9041 = vmatprep.mubr.msk.f32.mxu1 %vm2015_vm1, %v4948_v18  ;;  %v10966_v17 = vcombine.high %v13161_v60, %v13161_v60  ;;  %v13177_v59 = vcombine.high %v13176_v23, %v13176_v23  ;;  %v10976_v36 = vcombine.high %v13178_v3, %v13178_v3  ;;  %v2944_v11 = vcombine.high %v2928_v33, %v2928_v33 }
 0x1ac   :  { %9042 = vmatmul.mubr.msk.f32.gmra.mrb[12].mxu1 %vm2015_vm1, %v4997_v30  ;;  %v2945_v29 = vcombine.high %v2935_v43, %v2935_v43  ;;  %v4508_v50 = vmul.f32 %v10960_v15, %v2921_v2  ;;  %v4510_v1 = vmul.f32 %v13151_v25, %v2943_v42  ;;  %v2946_v34 = vcombine.high %v2942_v39, %v2942_v39  ;;  %v13182_v30 = vld [vmem:[#allocation36_spill] sm:$0xff] }
 0x1ad   :  { %13175 = vst [vmem:[#allocation34_spill] sm:$0xff] %v10966_v17  ;;  %v10972_v51 = vrot.slane %v13177_v59, %v9283_v16  ;;  %13179 = vst [vmem:[#allocation58_spill] sm:$0xff] %v10976_v36  ;;  %9044 = vmatprep.mubr.msk.f32.mxu1 %vm2015_vm1, %v5046_v27  ;;  %v4509_v62 = vmul.f32 %v10966_v17, %v2935_v43  ;;  %6951 = vrot.lane.b32.xlu1 %v10631_v0, %s9221_s3  ;;  %v13195_v17 = vld [vmem:[#allocation94_spill] sm:$0xff] }
 0x1ae   :  { %v4511_v46 = vmul.f32 %v13178_v3, %v2945_v29  ;;  %v4513_v21 = vmul.f32 %v10976_v36, %v2942_v39  ;;  %v2947_v10 = vcombine.high %v10441_v6, %v10441_v6  ;;  %v2954_v18 = vrot.slane %v10441_v6, %v9283_v16  ;;  %6997 = vrot.lane.b32.xlu0 %v10743_v58, %s9221_s3 }
 0x1af   :  { %v10983_v28 = vcombine.high %v10972_v51, %v10972_v51  ;;  %v4512_v32 = vmul.f32 %v10972_v51, %v2928_v33  ;;  %v11001_v2 = vmul.f32 %v13181_v35, %v2946_v34  ;;  %v5292_v0 = vcombine.low %v4508_v50, %v4509_v62  ;;  %v13185_v62 = vld [vmem:[#allocation68_spill] sm:$0xff] }
 0x1b0   :  { %v4055_v19 = vcombine.high %v13182_v30, %v13182_v30  ;;  %v5293_v33 = vcombine.low %v4510_v1, %v4511_v46  ;;  %v2961_v42 = vrot.slane %v2947_v10, %v9283_v16  ;;  %v2962_v39 = vcombine.high %v2954_v18, %v2954_v18  ;;  %v13188_v30 = vld [vmem:[#allocation42_spill] sm:$0xff] }
 0x1b1   :  { %13180 = vst [vmem:[#allocation14_spill] sm:$0xff] %v10983_v28  ;;  %v10998_v27 = vmul.f32 %v10983_v28, %v2944_v11  ;;  %v5294_v43 = vcombine.low %v4512_v32, %v4513_v21  ;;  %v11009_v58 = vrot.slane %v5292_v0, %v9283_v16  ;;  %v2970_v23 = vrot.slane %v2954_v18, %v9283_v16  ;;  %v13184_v11 = vld [vmem:[#allocation19_spill] sm:$0xff]  ;;  %v13190_v28 = vld [vmem:[#allocation17_spill] sm:$0xff] }
 0x1b2   :  { %v11013_v59 = vrot.slane %v4055_v19, %v9283_v16  ;;  %6955 = vrot.lane.b32.xlu1 %v13184_v11, %s9221_s3  ;;  %v11018_v29 = vrot.slane %v5293_v33, %v9283_v16  ;;  %v2963_v1 = vcombine.high %v2961_v42, %v2961_v42  ;;  %v2977_v34 = vrot.slane %v2961_v42, %v9283_v16  ;;  %v13189_v33 = vld [vmem:[#allocation45_spill] sm:$0xff] }
 0x1b3   :  { %v11021_v50 = vrot.slane %v5294_v43, %v9283_v16  ;;  %7001 = vrot.lane.b32.xlu0 %v13185_v62, %s9221_s3  ;;  %v2984_v32 = vrot.slane %v2962_v39, %v9283_v16  ;;  %v2992_v46 = vcombine.high %v2970_v23, %v2970_v23  ;;  %v11029_v21 = vcombine.high %v13181_v35, %v13181_v35 }
 0x1b4   :  { %13183 = vst [vmem:[#allocation33_spill] sm:$0xff] %v11013_v59  ;;  %v11033_v10 = vcombine.high %v11013_v59, %v11013_v59  ;;  %v2991_v18 = vrot.slane %v2963_v1, %v9283_v16  ;;  %v2993_v0 = vcombine.high %v2977_v34, %v2977_v34  ;;  %v11038_v19 = vcombine.high %v13188_v30, %v13188_v30 }
 0x1b5   :  { %13186 = vst [vmem:[#allocation62_spill] sm:$0xff] %v11029_v21  ;;  %v11042_v43 = vcombine.high %v13189_v33, %v13189_v33  ;;  %v2994_v42 = vcombine.high %v2984_v32, %v2984_v32  ;;  %v4516_v39 = vmul.f32 %v11013_v59, %v2970_v23  ;;  %v4517_v11 = vmul.f32 %v11029_v21, %v2984_v32  ;;  %v13191_v32 = vld [vmem:[#allocation90_spill] sm:$0xff] }
 0x1b6   :  { %13187 = vst [vmem:[#allocation59_spill] sm:$0xff] %v11033_v10  ;;  %v4518_v62 = vmul.f32 %v11033_v10, %v2992_v46  ;;  %6967 = vrot.lane.b32.xlu1 %v10731_v63, %s9221_s3  ;;  %v2995_v1 = vcombine.high %v2991_v18, %v2991_v18  ;;  %v4520_v6 = vmul.f32 %v13188_v30, %v2977_v34  ;;  %v13192_v46 = vld [vmem:[#allocation92_spill] sm:$0xff]  ;;  %v13194_v63 = vld [vmem:[#allocation95_spill] sm:$0xff] }
 0x1b7   :  { %v4521_v52 = vmul.f32 %v13189_v33, %v2991_v18  ;;  %v11052_v37 = vmul.f32 %v11038_v19, %v2993_v0  ;;  %7009 = vrot.lane.b32.xlu0 %v13190_v28, %s9221_s3  ;;  %v4519_v23 = vmul.f32 %v13178_v3, %v2994_v42  ;;  %v5341_v59 = vcombine.low %v4516_v39, %v4517_v11 }
 0x1b8   :  { %v13193_v10 = vcombine.low %v13191_v32, %v13192_v46  ;;  %v5079_v35 = vcombine.low %v13195_v17, %v13194_v63  ;;  %v11064_v34 = vmul.f32 %v11042_v43, %v2995_v1  ;;  %v13196_v0 = vcombine.low %v10628_v57, %v10602_v47  ;;  %v13198_v1 = vld [vmem:[#allocation18_spill] sm:$0xff] }
 0x1b9   :  { %v5343_v18 = vcombine.low %v4520_v6, %v4521_v52  ;;  %v5128_v42 = vcombine.low %v10645_v53, %v10651_v56  ;;  %v5342_v39 = vcombine.low %v4518_v62, %v4519_v23  ;;  %v11073_v11 = vrot.slane %v5341_v59, %v9283_v16  ;;  %v13199_v56 = vld [vmem:[#allocation21_spill] sm:$0xff]  ;;  %v13200_v59 = vld [vmem:[#allocation91_spill] sm:$0xff] }
 0x1ba   :  { %v5078_v21 = vrot.slane %v13193_v10, %v9283_v16  ;;  %v5127_v28 = vrot.slane %v13196_v0, %v9283_v16  ;;  %v13197_v10 = vld [vmem:[#allocation96_spill] sm:$0xff]  ;;  %v5087_v17 = vrot.slane %v5079_v35, %v9283_v16  ;;  %6971 = vrot.lane.b32.xlu1 %v13198_v1, %s9221_s3  ;;  %v3003_v62 = vrot.slane %v13200_v59, %v9283_v16  ;;  %v13203_v0 = vld [vmem:[#allocation38_spill] sm:$0xff] }
 0x1bb   :  { %v11082_v47 = vrot.slane %v5343_v18, %v9283_v16  ;;  %v5136_v53 = vrot.slane %v5128_v42, %v9283_v16  ;;  %7025 = vrot.lane.b32.xlu0 %v13199_v56, %s9221_s3  ;;  %v11089_v6 = vrot.slane %v5342_v39, %v9283_v16 }
 0x1bc   :  { %v5080_v32 = vcombine.low %v13197_v10, %v5078_v21  ;;  %v5129_v57 = vcombine.low %v10654_v40, %v5127_v28  ;;  %v2996_v21 = vcombine.high %v13200_v59, %v13200_v59  ;;  %v13201_v40 = vld [vmem:[#allocation41_spill] sm:$0xff]  ;;  %v13204_v28 = vcombine.high %v13203_v0, %v13203_v0 }
 0x1bd   :  { %v11099_v46 = vrot.slane %v13201_v40, %v9283_v16  ;;  %v13202_v63 = vcombine.high %v13201_v40, %v13201_v40  ;;  %v3019_v1 = vrot.slane %v3003_v62, %v9283_v16  ;;  %v13209_v0 = vcombine.low %v10684_v54, %v10940_v13 }
 0x1be   :  { %v5094_v35 = vrot.slane %v5080_v32, %v9283_v16  ;;  %v5143_v23 = vrot.slane %v5129_v57, %v9283_v16  ;;  %v11111_v42 = vrot.slane %v13204_v28, %v9283_v16  ;;  %v3010_v10 = vrot.slane %v2996_v21, %v9283_v16  ;;  %v13205_v57 = vld [vmem:[#allocation55_spill] sm:$0xff] }
 0x1bf   :  { %v11105_v18 = vrot.slane %v13202_v63, %v9283_v16  ;;  %v3011_v32 = vcombine.high %v3003_v62, %v3003_v62  ;;  %6979 = vrot.lane.b32.xlu1 %v13205_v57, %s9221_s3  ;;  %v11119_v59 = vcombine.high %v11099_v46, %v11099_v46  ;;  %v13207_v63 = vld [vmem:[#allocation44_spill] sm:$0xff]  ;;  %7061 = vrot.lane.b32.xlu0 %v10665_v20, %s9221_s3  ;;  %v13211_v57 = vld [vmem:[#allocation93_spill] sm:$0xff] }
 0x1c0   :  { %v5095_v39 = vcombine.low %v5087_v17, %v5094_v35  ;;  %v5144_v56 = vcombine.low %v5136_v53, %v5143_v23  ;;  %v11127_v17 = vcombine.high %v13207_v63, %v13207_v63  ;;  %v3012_v35 = vcombine.high %v3010_v10, %v3010_v10 }
 0x1c1   :  { %v11123_v40 = vcombine.high %v11105_v18, %v11105_v18  ;;  %v3026_v53 = vrot.slane %v3010_v10, %v9283_v16  ;;  %v3033_v21 = vrot.slane %v3011_v32, %v9283_v16  ;;  %v3041_v62 = vcombine.high %v3019_v1, %v3019_v1 }
 0x1c2   :  { %13208 = vst [vmem:[#allocation37_spill] sm:$0xff] %v11127_v17  ;;  %9045 = vmatmul.mubr.msk.f32.gmra.mrb[14].mxu1 %vm2015_vm1, %v5095_v39  ;;  %v4524_v23 = vmul.f32 %v11099_v46, %v3019_v1  ;;  %v5162_v28 = vrot.slane %v13209_v0, %v9283_v16  ;;  %v13210_v20 = vcombine.low %v10688_v14, %v10700_v24 }
 0x1c3   :  { %13206 = vst [vmem:[#allocation63_spill] sm:$0xff] %v11123_v40  ;;  %9047 = vmatprep.mubr.msk.f32.mxu1 %vm2015_vm1, %v5144_v56  ;;  %v3045_v10 = vcombine.high %v13211_v57, %v13211_v57  ;;  %v3040_v32 = vrot.slane %v3012_v35, %v9283_v16  ;;  %v3042_v52 = vcombine.high %v3026_v53, %v3026_v53 }
 0x1c4   :  { %v5176_v39 = vrot.slane %v13210_v20, %v9283_v16  ;;  %v3043_v36 = vcombine.high %v3033_v21, %v3033_v21  ;;  %v4525_v56 = vmul.f32 %v11105_v18, %v3033_v21  ;;  %6999 = vrot.lane.b32.xlu1 %v10804_v5, %s9221_s3  ;;  %v4526_v54 = vmul.f32 %v11119_v59, %v3041_v62  ;;  %v13212_v20 = vld [vmem:[#allocation69_spill] sm:$0xff] }
 0x1c5   :  { %v4528_v13 = vmul.f32 %v13188_v30, %v3026_v53  ;;  %v5177_v1 = vcombine.low %v10951_v45, %v5162_v28  ;;  %7065 = vrot.lane.b32.xlu0 %v10111_v55, %s9221_s3  ;;  %v3044_v24 = vcombine.high %v3040_v32, %v3040_v32  ;;  %v4529_v0 = vmul.f32 %v13207_v63, %v3040_v32 }
 0x1c6   :  { %v5178_v14 = vcombine.low %v10711_v49, %v5176_v39  ;;  %v4527_v35 = vmul.f32 %v11123_v40, %v3043_v36  ;;  %v11159_v21 = vmul.f32 %v11111_v42, %v3042_v52  ;;  %v5390_v5 = vcombine.low %v4524_v23, %v4525_v56  ;;  %v13220_v40 = vld [vmem:[#allocation106_spill] sm:$0xff] }
 0x1c7   :  { %v5185_v62 = vrot.slane %v5177_v1, %v9283_v16  ;;  %v3052_v45 = vrot.slane %v13211_v57, %v9283_v16  ;;  %v11166_v49 = vmul.f32 %v11127_v17, %v3044_v24  ;;  %v5392_v28 = vcombine.low %v4528_v13, %v4529_v0  ;;  %v13213_v24 = vld [vmem:[#allocation43_spill] sm:$0xff] }
 0x1c8   :  { %v5192_v53 = vrot.slane %v5178_v14, %v9283_v16  ;;  %v5391_v55 = vcombine.low %v4526_v54, %v4527_v35  ;;  %v3059_v36 = vrot.slane %v3045_v10, %v9283_v16  ;;  %7003 = vrot.lane.b32.xlu1 %v13212_v20, %s9221_s3  ;;  %v11172_v52 = vrot.slane %v5390_v5, %v9283_v16 }
 0x1c9   :  { %v3060_v39 = vcombine.high %v3052_v45, %v3052_v45  ;;  %v3068_v32 = vrot.slane %v3052_v45, %v9283_v16  ;;  %7073 = vrot.lane.b32.xlu0 %v13141_v61, %s9221_s3  ;;  %v5393_v57 = vcombine.low %v11159_v21, %v11166_v49  ;;  %v11183_v10 = vrot.slane %v5392_v28, %v9283_v16  ;;  %v13217_v28 = vld [vmem:[#allocation29_spill] sm:$0xff] }
 0x1ca   :  { %v5193_v23 = vcombine.low %v5185_v62, %v5192_v53  ;;  %v11180_v56 = vrot.slane %v5391_v55, %v9283_v16  ;;  %v3061_v54 = vcombine.high %v3059_v36, %v3059_v36  ;;  %v3075_v13 = vrot.slane %v3059_v36, %v9283_v16  ;;  %v13216_v53 = vld [vmem:[#allocation73_spill] sm:$0xff] }
 0x1cb   :  { %v3082_v1 = vrot.slane %v3060_v39, %v9283_v16  ;;  %v3090_v14 = vcombine.high %v3068_v32, %v3068_v32  ;;  %v4153_v61 = vcombine.high %v13213_v24, %v13213_v24  ;;  %v11193_v0 = vrot.slane %v13213_v24, %v9283_v16  ;;  %v13218_v24 = vld [vmem:[#allocation46_spill] sm:$0xff] }
 0x1cc   :  { %9048 = vmatmul.mubr.msk.f32.gmra.mrb[16].mxu1 %vm2015_vm1, %v5193_v23  ;;  %v3089_v35 = vrot.slane %v3061_v54, %v9283_v16  ;;  %v11197_v21 = vcombine.high %v11111_v42, %v11111_v42  ;;  %v13215_v5 = vcombine.low %v10809_v4, %v10819_v7  ;;  %7011 = vrot.lane.b32.xlu1 %v13216_v53, %s9221_s3 }
 0x1cd   :  { %v3091_v45 = vcombine.high %v3075_v13, %v3075_v13  ;;  %v3092_v49 = vcombine.high %v3082_v1, %v3082_v1  ;;  %v11206_v55 = vrot.slane %v4153_v61, %v9283_v16  ;;  %v5226_v36 = vcombine.low %v13217_v28, %v10836_v12  ;;  %7089 = vrot.lane.b32.xlu0 %v13151_v25, %s9221_s3 }
 0x1ce   :  { %13214 = vst [vmem:[#allocation71_spill] sm:$0xff] %v11197_v21  ;;  %v5225_v62 = vrot.slane %v13215_v5, %v9283_v16  ;;  %v3093_v20 = vcombine.high %v3089_v35, %v3089_v35  ;;  %v11214_v23 = vcombine.high %v11193_v0, %v11193_v0  ;;  %v4532_v7 = vmul.f32 %v11197_v21, %v3068_v32  ;;  %v13219_v5 = vld [vmem:[#allocation49_spill] sm:$0xff]  ;;  %v13221_v32 = vld [vmem:[#allocation23_spill] sm:$0xff] }
 0x1cf   :  { %v4533_v4 = vmul.f32 %v11193_v0, %v3082_v1  ;;  %v11220_v39 = vcombine.high %v11206_v55, %v11206_v55  ;;  %v4534_v54 = vmul.f32 %v11206_v55, %v3090_v14  ;;  %v4537_v12 = vmul.f32 %v13207_v63, %v3089_v35 }
 0x1d0   :  { %v4538_v61 = vmul.f32 %v13218_v24, %v3091_v45  ;;  %v4535_v25 = vmul.f32 %v11214_v23, %v3092_v49  ;;  %v4539_v53 = vmul.f32 %v13219_v5, %v3093_v20  ;;  %v5227_v17 = vcombine.low %v13220_v40, %v5225_v62  ;;  %7027 = vrot.lane.b32.xlu1 %v13221_v32, %s9221_s3 }
 0x1d1   :  { %v5439_v28 = vcombine.low %v4532_v7, %v4533_v4  ;;  %v4536_v1 = vmul.f32 %v11220_v39, %v3075_v13  ;;  %v5234_v21 = vrot.slane %v5226_v36, %v9283_v16  ;;  %v13222_v14 = vcombine.low %v10867_v9, %v10876_v48  ;;  %7121 = vrot.lane.b32.xlu0 %v13188_v30, %s9221_s3 }
 0x1d2   :  { %v5275_v45 = vcombine.low %v10885_v8, %v10898_v44  ;;  %v5440_v49 = vcombine.low %v4534_v54, %v4535_v25  ;;  %v5442_v40 = vcombine.low %v4538_v61, %v4539_v53  ;;  %v5241_v20 = vrot.slane %v5227_v17, %v9283_v16 }
 0x1d3   :  { %v5274_v35 = vrot.slane %v13222_v14, %v9283_v16  ;;  %v5449_v62 = vrot.slane %v5439_v28, %v9283_v16  ;;  %v5441_v13 = vcombine.low %v4536_v1, %v4537_v12  ;;  %v13223_v9 = vcombine.low %v10998_v27, %v11001_v2  ;;  %v13227_v28 = vld [vmem:[#allocation47_spill] sm:$0xff] }
 0x1d4   :  { %v5283_v7 = vrot.slane %v5275_v45, %v9283_v16  ;;  %v5456_v8 = vrot.slane %v5440_v49, %v9283_v16  ;;  %v5242_v44 = vcombine.low %v5234_v21, %v5241_v20  ;;  %v5324_v30 = vcombine.low %v11009_v58, %v11018_v29  ;;  %7063 = vrot.lane.b32.xlu1 %v10928_v31, %s9221_s3  ;;  %v13225_v21 = vld [vmem:[#allocation20_spill] sm:$0xff]  ;;  %v13228_v45 = vld [vmem:[#allocation51_spill] sm:$0xff] }
 0x1d5   :  { %v5276_v36 = vcombine.low %v10894_v26, %v5274_v35  ;;  %v5323_v48 = vrot.slane %v13223_v9, %v9283_v16  ;;  %v13224_v17 = vcombine.low %v11052_v37, %v11064_v34  ;;  %v5463_v26 = vrot.slane %v5441_v13, %v9283_v16  ;;  %6957 = vrot.lane.b32.xlu0 %v13225_v21, %s9221_s3  ;;  %v13230_v20 = vld [vmem:[#allocation3_spill] sm:$0xff] }
 0x1d6   :  { %v5373_v2 = vcombine.low %v11073_v11, %v11089_v6  ;;  %9050 = vmatprep.mubr.msk.f32.mxu1 %vm2015_vm1, %v5242_v44  ;;  %v5332_v37 = vrot.slane %v5324_v30, %v9283_v16  ;;  %v5421_v31 = vrot.slane %v5393_v57, %v9283_v16  ;;  %v5422_v29 = vcombine.low %v11172_v52, %v11180_v56 }
 0x1d7   :  { %v5372_v4 = vrot.slane %v13224_v17, %v9283_v16  ;;  %v5290_v54 = vrot.slane %v5276_v36, %v9283_v16  ;;  %v5325_v27 = vcombine.low %v11021_v50, %v5323_v48  ;;  %v5470_v11 = vrot.slane %v5442_v40, %v9283_v16  ;;  %v13229_v40 = vld [vmem:[#allocation50_spill] sm:$0xff]  ;;  %v13232_v48 = vld [vmem:[#allocation5_spill] sm:$0xff]  ;;  %v13234_v17 = vld [vmem:[#allocation4_spill] sm:$0xff] }
 0x1d8   :  { %v5381_v12 = vrot.slane %v5373_v2, %v9283_v16  ;;  %v5423_v61 = vcombine.low %v11183_v10, %v5421_v31  ;;  %v5430_v25 = vrot.slane %v5422_v29, %v9283_v16  ;;  %v5471_v53 = vcombine.low %v5449_v62, %v5456_v8  ;;  %v13239_v31 = vld [vmem:[#allocation48_spill] sm:$0xff] }
 0x1d9   :  { %v5374_v58 = vcombine.low %v11082_v47, %v5372_v4  ;;  %v5291_v34 = vcombine.low %v5283_v7, %v5290_v54  ;;  %v5339_v50 = vrot.slane %v5325_v27, %v9283_v16  ;;  %v13226_v47 = vld [vmem:[#allocation32_spill] sm:$0xff]  ;;  %v5472_v57 = vcombine.low %v5463_v26, %v5470_v11  ;;  %6973 = vrot.lane.b32.xlu0 %v13228_v45, %s9221_s3  ;;  %v13235_v26 = vld [vmem:[#allocation11_spill] sm:$0xff]  ;;  %v13236_v27 = vld [vmem:[#allocation6_spill] sm:$0xff] }
 0x1da   :  { %7067 = vrot.lane.b32.xlu1 %v13226_v47, %s9221_s3  ;;  %v11281_v56 = vcombine.high %v13218_v24, %v13218_v24  ;;  %v11285_v32 = vcombine.high %v13227_v28, %v13227_v28  ;;  %v5437_v10 = vrot.slane %v5423_v61, %v9283_v16  ;;  %v5479_v14 = vrot.slane %v5471_v53, %v9283_v16  ;;  %v13240_v11 = vld [vmem:[#allocation52_spill] sm:$0xff]  ;;  %v13241_v53 = vld [vmem:[#allocation53_spill] sm:$0xff]  ;;  %v13244_v45 = vld [vmem:[#allocation7_spill] sm:$0xff] }
 0x1db   :  { %v5388_v6 = vrot.slane %v5374_v58, %v9283_v16  ;;  %9051 = vmatmul.mubr.msk.f32.gmra.mrb[18].mxu1 %vm2015_vm1, %v5291_v34  ;;  %v5340_v52 = vcombine.low %v5332_v37, %v5339_v50  ;;  %v11291_v35 = vcombine.high %v13219_v5, %v13219_v5  ;;  %v5486_v49 = vrot.slane %v5472_v57, %v9283_v16 }
 0x1dc   :  { %v11299_v62 = vcombine.high %v13229_v40, %v13229_v40  ;;  %v4540_v13 = vmul.f32 %v11281_v56, %v13230_v20  ;;  %v13231_v36 = vcombine.high %v13230_v20, %v13230_v20  ;;  %v5438_v9 = vcombine.low %v5430_v25, %v5437_v10  ;;  %v13245_v20 = vld [vmem:[#allocation9_spill] sm:$0xff] }
 0x1dd   :  { %v5389_v1 = vcombine.low %v5381_v12, %v5388_v6  ;;  %9053 = vmatprep.mubr.msk.f32.mxu1 %vm2015_vm1, %v5340_v52  ;;  %v4541_v8 = vmul.f32 %v11291_v35, %v13232_v48  ;;  %v13233_v44 = vcombine.high %v13232_v48, %v13232_v48  ;;  %v4544_v4 = vmul.f32 %v11285_v32, %v13234_v17  ;;  %v13242_v52 = vld [vmem:[#allocation57_spill] sm:$0xff] }
 0x1de   :  { %v4542_v7 = vmul.f32 %v13227_v28, %v13231_v36  ;;  %7075 = vrot.lane.b32.xlu1 %v13235_v26, %s9221_s3  ;;  %v5487_v54 = vcombine.low %v5479_v14, %v5486_v49  ;;  %v4545_v2 = vmul.f32 %v11299_v62, %v13236_v27  ;;  %v13237_v21 = vcombine.high %v13234_v17, %v13234_v17  ;;  %v13248_v17 = vld [vmem:[#allocation8_spill] sm:$0xff] }
 0x1df   :  { %v4543_v30 = vmul.f32 %v13229_v40, %v13233_v44  ;;  %9054 = vmatmul.mubr.msk.f32.gmra.mrb[20].mxu1 %vm2015_vm1, %v5389_v1  ;;  %v13238_v58 = vcombine.high %v13236_v27, %v13236_v27  ;;  %v5488_v34 = vcombine.low %v4540_v13, %v4541_v8  ;;  %v11331_v12 = vcombine.high %v13239_v31, %v13239_v31  ;;  %v13243_v1 = vld [vmem:[#allocation56_spill] sm:$0xff] }
 0x1e0   :  { %v4546_v37 = vmul.f32 %v13218_v24, %v13237_v21  ;;  %9056 = vmatprep.mubr.msk.f32.mxu1 %vm2015_vm1, %v5438_v9  ;;  %v11335_v6 = vcombine.high %v13240_v11, %v13240_v11  ;;  %v5490_v61 = vcombine.low %v4544_v4, %v4545_v2  ;;  %v11339_v47 = vcombine.high %v13241_v53, %v13241_v53  ;;  %v13249_v4 = vld [vmem:[#allocation10_spill] sm:$0xff] }
 0x1e1   :  { %v4547_v29 = vmul.f32 %v13239_v31, %v13238_v58  ;;  %v5489_v50 = vcombine.low %v4542_v7, %v4543_v30  ;;  %v11343_v57 = vcombine.high %v13242_v52, %v13242_v52  ;;  %6981 = vrot.lane.b32.xlu0 %v13243_v1, %s9221_s3  ;;  %v5498_v10 = vrot.slane %v5488_v34, %v9283_v16  ;;  %v13252_v34 = vld [vmem:[#allocation16_spill] sm:$0xff] }
 0x1e2   :  { %v4548_v49 = vmul.f32 %v13241_v53, %v13244_v45  ;;  %v4549_v13 = vmul.f32 %v11331_v12, %v13245_v20  ;;  %7091 = vrot.lane.b32.xlu1 %v13153_v22, %s9221_s3  ;;  %v5512_v36 = vrot.slane %v5490_v61, %v9283_v16  ;;  %v13246_v9 = vcombine.high %v13244_v45, %v13244_v45 }
 0x1e3   :  { %v5491_v25 = vcombine.low %v4546_v37, %v4547_v29  ;;  %v5505_v14 = vrot.slane %v5489_v50, %v9283_v16  ;;  %9057 = vmatmul.mubr.msk.f32.gmra.mrb[22].mxu1 %vm2015_vm1, %v5487_v54  ;;  %v13247_v8 = vcombine.high %v13245_v20, %v13245_v20  ;;  %v4552_v22 = vmul.f32 %v13242_v52, %v13248_v17  ;;  %v11380_v50 = vpop.permute.xlu0 %6929 }
 0x1e4   :  { %v4550_v48 = vmul.f32 %v11339_v47, %v13246_v9  ;;  %v4553_v26 = vmul.f32 %v11335_v6, %v13249_v4  ;;  %v13250_v54 = vcombine.high %v13248_v17, %v13248_v17  ;;  %v13251_v21 = vcombine.high %v13249_v4, %v13249_v4  ;;  %v13254_v9 = vld [vmem:[#allocation24_spill] sm:$0xff]  ;;  %v13256_v17 = vld [vmem:[#allocation54_spill] sm:$0xff] }
 0x1e5   :  { %v5519_v7 = vrot.slane %v5491_v25, %v9283_v16  ;;  %v4551_v44 = vmul.f32 %v13240_v11, %v13247_v8  ;;  %v5520_v30 = vcombine.low %v5498_v10, %v5505_v14  ;;  %v5537_v58 = vcombine.low %v4548_v49, %v4549_v13  ;;  %6985 = vrot.lane.b32.xlu0 %v13252_v34, %s9221_s3  ;;  %v13257_v4 = vld [vmem:[#allocation78_spill] sm:$0xff] }
 0x1e6   :  { %v4554_v27 = vmul.f32 %v11343_v57, %v13250_v54  ;;  %v4555_v37 = vmul.f32 %v13239_v31, %v13251_v21  ;;  %v5539_v25 = vcombine.low %v4552_v22, %v4553_v26  ;;  %7123 = vrot.lane.b32.xlu1 %v13189_v33, %s9221_s3  ;;  %v13258_v54 = vld [vmem:[#allocation60_spill] sm:$0xff]  ;;  %v13263_v34 = vld [vmem:[#allocation22_spill] sm:$0xff] }
 0x1e7   :  { %v5521_v2 = vcombine.low %v5512_v36, %v5519_v7  ;;  %v5538_v29 = vcombine.low %v4550_v48, %v4551_v44  ;;  %v5528_v61 = vrot.slane %v5520_v30, %v9283_v16  ;;  %v5547_v14 = vrot.slane %v5537_v58, %v9283_v16  ;;  %v13253_v7 = vld [vmem:[#allocation70_spill] sm:$0xff]  ;;  %v11395_v48 = vpop.permute.xlu0 %6931  ;;  %v13261_v58 = vld [vmem:[#allocation84_spill] sm:$0xff] }
 0x1e8   :  { %v5540_v10 = vcombine.low %v4554_v27, %v4555_v37  ;;  %v5561_v20 = vrot.slane %v5539_v25, %v9283_v16  ;;  %v13255_v30 = vld [vmem:[#allocation74_spill] sm:$0xff]  ;;  %v11416_v37 = vpop.permute.xlu1 %6933  ;;  %v13264_v25 = vld [vmem:[#allocation80_spill] sm:$0xff] }
 0x1e9   :  { %v5535_v1 = vrot.slane %v5521_v2, %v9283_v16  ;;  %v5554_v45 = vrot.slane %v5538_v29, %v9283_v16  ;;  %7005 = vrot.lane.b32.xlu0 %v13253_v7, %s9221_s3  ;;  %v13259_v27 = vld [vmem:[#allocation86_spill] sm:$0xff]  ;;  %v13260_v2 = vld [vmem:[#allocation64_spill] sm:$0xff] }
 0x1ea   :  { %v5568_v13 = vrot.slane %v5540_v10, %v9283_v16  ;;  %6959 = vrot.lane.b32.xlu1 %v13254_v9, %s9221_s3  ;;  %v13262_v29 = vld [vmem:[#allocation72_spill] sm:$0xff]  ;;  %v13271_v7 = vld [vmem:[#allocation30_spill] sm:$0xff]  ;;  %v13272_v9 = vld [vmem:[#allocation85_spill] sm:$0xff] }
 0x1eb   :  { %v5536_v49 = vcombine.low %v5528_v61, %v5535_v1  ;;  %v5569_v36 = vcombine.low %v5547_v14, %v5554_v45  ;;  %v11406_v26 = vpop.permute.xlu0 %6937  ;;  %v13265_v10 = vld [vmem:[#allocation104_spill] sm:$0xff]  ;;  %v13267_v45 = vld [vmem:[#allocation79_spill] sm:$0xff] }
 0x1ec   :  { %v5570_v33 = vcombine.low %v5561_v20, %v5568_v13  ;;  %v11428_v1 = vpop.permute.xlu1 %6935  ;;  %v13268_v20 = vld [vmem:[#allocation12_spill] sm:$0xff] }
 0x1ed   :  { %9059 = vmatprep.mubr.msk.f32.mxu1 %vm2015_vm1, %v5536_v49  ;;  %v5577_v8 = vrot.slane %v5569_v36, %v9283_v16  ;;  %7013 = vrot.lane.b32.xlu0 %v13255_v30, %s9221_s3  ;;  %v13270_v36 = vld [vmem:[#allocation88_spill] sm:$0xff]  ;;  %v13274_v30 = vld [vmem:[#allocation98_spill] sm:$0xff] }
 0x1ee   :  { %v5584_v44 = vrot.slane %v5570_v33, %v9283_v16  ;;  %6975 = vrot.lane.b32.xlu1 %v13256_v17, %s9221_s3 }
 0x1ef   :  { %v11414_v21 = vpop.permute.xlu0 %6945 }
 0x1f0   :  { %v5585_v22 = vcombine.low %v5577_v8, %v5584_v44  ;;  %v11436_v49 = vpop.permute.xlu1 %6939  ;;  %v13273_v44 = vld [vmem:[#allocation31_spill] sm:$0xff] }
 0x1f1   :  { %7017 = vrot.lane.b32.xlu0 %v13257_v4, %s9221_s3  ;;  %v13275_v4 = vld [vmem:[#allocation105_spill] sm:$0xff] }
 0x1f2   :  { %9060 = vmatmul.mubr.msk.f32.gmra.mrb[24].mxu1 %vm2015_vm1, %v5585_v22  ;;  %6983 = vrot.lane.b32.xlu1 %v13258_v54, %s9221_s3 }
 0x1f4   :  { %v11424_v61 = vpop.permute.xlu0 %6961  ;;  %v11448_v33 = vpop.permute.xlu1 %6947 }
 0x1f5   :  { %7029 = vrot.lane.b32.xlu0 %v13259_v27, %s9221_s3  ;;  %v13276_v27 = vld [vmem:[#allocation28_spill] sm:$0xff] }
 0x1f6   :  { %6987 = vrot.lane.b32.xlu1 %v13260_v2, %s9221_s3 }
 0x1f8   :  { %v11432_v14 = vpop.permute.xlu0 %6993  ;;  %v11458_v22 = vpop.permute.xlu1 %6963 }
 0x1f9   :  { %7033 = vrot.lane.b32.xlu0 %v13261_v58, %s9221_s3  ;;  %13266 = vst [vmem:[#allocation65_spill] sm:$0xff] %v11432_v14 }
 0x1fa   :  { %7007 = vrot.lane.b32.xlu1 %v13262_v29, %s9221_s3 }
 0x1fc   :  { %v11440_v13 = vpop.permute.xlu0 %7057 }
 0x1fd   :  { %7041 = vrot.lane.b32.xlu0 %v13263_v34, %s9221_s3  ;;  %13269 = vst [vmem:[#allocation26_spill] sm:$0xff] %v11440_v13 }
 0x1fe   :  { %7015 = vrot.lane.b32.xlu1 %v13264_v25, %s9221_s3 }
 0x200   :  { %v11450_v8 = vpop.permute.xlu0 %6941 }
 0x201   :  { %7069 = vrot.lane.b32.xlu0 %v13265_v10, %s9221_s3 }
 0x202   :  { %7019 = vrot.lane.b32.xlu1 %v13267_v45, %s9221_s3 }
 0x203   :  { %v11470_v2 = vpop.permute.xlu1 %6995 }
 0x204   :  { %v11456_v17 = vpop.permute.xlu0 %6949  ;;  %13277 = vst [vmem:[#allocation75_spill] sm:$0xff] %v11470_v2 }
 0x205   :  { %7077 = vrot.lane.b32.xlu0 %v13268_v20, %s9221_s3  ;;  %v13285_v20 = vld [vmem:[#allocation87_spill] sm:$0xff] }
 0x206   :  { %7031 = vrot.lane.b32.xlu1 %v13270_v36, %s9221_s3 }
 0x208   :  { %v11464_v54 = vpop.permute.xlu0 %6953 }
 0x209   :  { %7081 = vrot.lane.b32.xlu0 %v13271_v7, %s9221_s3  ;;  %v13286_v7 = vld [vmem:[#allocation100_spill] sm:$0xff] }
 0x20a   :  { %7035 = vrot.lane.b32.xlu1 %v13272_v9, %s9221_s3 }
 0x20d   :  { %7093 = vrot.lane.b32.xlu0 %v13273_v44, %s9221_s3  ;;  %v11472_v58 = vpop.permute.xlu0 %6965  ;;  %v13289_v44 = vld [vmem:[#allocation97_spill] sm:$0xff] }
 0x20e   :  { %7043 = vrot.lane.b32.xlu1 %v13274_v30, %s9221_s3 }
 0x211   :  { %7097 = vrot.lane.b32.xlu0 %v13156_v41, %s9221_s3  ;;  %v13278_v41 = vld [vmem:[#allocation25_spill] sm:$0xff] }
 0x212   :  { %7071 = vrot.lane.b32.xlu1 %v13275_v4, %s9221_s3  ;;  %v13291_v4 = vld [vmem:[#allocation66_spill] sm:$0xff] }
 0x213   :  { %v11478_v29 = vpop.permute.xlu0 %6969 }
 0x215   :  { %7105 = vrot.lane.b32.xlu0 %v13178_v3, %s9221_s3 }
 0x216   :  { %7079 = vrot.lane.b32.xlu1 %v13276_v27, %s9221_s3  ;;  %v13293_v27 = vld [vmem:[#allocation27_spill] sm:$0xff] }
 0x217   :  { %v11480_v34 = vpop.permute.xlu1 %7059 }
 0x218   :  { %13279 = vst [vmem:[#allocation77_spill] sm:$0xff] %v11480_v34 }
 0x219   :  { %7125 = vrot.lane.b32.xlu0 %v11038_v19, %s9221_s3  ;;  %v11486_v3 = vpop.permute.xlu0 %6977 }
 0x21a   :  { %7083 = vrot.lane.b32.xlu1 %v13278_v41, %s9221_s3 }
 0x21b   :  { %v11488_v25 = vpop.permute.xlu1 %6943 }
 0x21d   :  { %7129 = vrot.lane.b32.xlu0 %v11099_v46, %s9221_s3  ;;  %v13281_v46 = vld [vmem:[#allocation61_spill] sm:$0xff] }
 0x21e   :  { %7095 = vrot.lane.b32.xlu1 %v10853_v38, %s9221_s3 }
 0x21f   :  { %v11494_v19 = vpop.permute.xlu1 %6951 }
 0x220   :  { %v11498_v10 = vpop.permute.xlu0 %6997 }
 0x221   :  { %7137 = vrot.lane.b32.xlu0 %v13207_v63, %s9221_s3  ;;  %13280 = vst [vmem:[#allocation76_spill] sm:$0xff] %v11498_v10  ;;  %v13283_v63 = vld [vmem:[#allocation81_spill] sm:$0xff] }
 0x222   :  { %7099 = vrot.lane.b32.xlu1 %v13161_v60, %s9221_s3 }
 0x224   :  { %v11502_v38 = vpop.permute.xlu1 %6955 }
 0x225   :  { %7153 = vrot.lane.b32.xlu0 %v13218_v24, %s9221_s3  ;;  %v11506_v45 = vpop.permute.xlu0 %7001 }
 0x226   :  { %7107 = vrot.lane.b32.xlu1 %v10972_v51, %s9221_s3  ;;  %13282 = vst [vmem:[#allocation15_spill] sm:$0xff] %v11506_v45 }
 0x228   :  { %v11510_v60 = vpop.permute.xlu1 %6967 }
 0x229   :  { %6989 = vrot.lane.b32.xlu0 %v13281_v46, %s9221_s3  ;;  %v11514_v24 = vpop.permute.xlu0 %7009  ;;  %v13295_v46 = vld [vmem:[#allocation82_spill] sm:$0xff] }
 0x22a   :  { %7127 = vrot.lane.b32.xlu1 %v11042_v43, %s9221_s3  ;;  %13284 = vst [vmem:[#allocation83_spill] sm:$0xff] %v11514_v24 }
 0x22c   :  { %v11518_v51 = vpop.permute.xlu1 %6971 }
 0x22d   :  { %7021 = vrot.lane.b32.xlu0 %v13283_v63, %s9221_s3  ;;  %v11522_v36 = vpop.permute.xlu0 %7025 }
 0x22e   :  { %7131 = vrot.lane.b32.xlu1 %v11105_v18, %s9221_s3 }
 0x231   :  { %7037 = vrot.lane.b32.xlu0 %v13285_v20, %s9221_s3  ;;  %v11526_v43 = vpop.permute.xlu1 %6979  ;;  %v11530_v9 = vpop.permute.xlu0 %7061  ;;  %v13298_v20 = vld [vmem:[#allocation89_spill] sm:$0xff] }
 0x232   :  { %7139 = vrot.lane.b32.xlu1 %v11111_v42, %s9221_s3  ;;  %13287 = vst [vmem:[#allocation13_spill] sm:$0xff] %v11530_v9  ;;  %v13304_v9 = vld [vmem:[#allocation99_spill] sm:$0xff] }
 0x235   :  { %7045 = vrot.lane.b32.xlu0 %v13286_v7, %s9221_s3 }
 0x236   :  { %7155 = vrot.lane.b32.xlu1 %v13219_v5, %s9221_s3  ;;  %v11534_v18 = vpop.permute.xlu1 %6999 }
 0x237   :  { %13288 = vst [vmem:[#allocation35_spill] sm:$0xff] %v11534_v18  ;;  %v11538_v30 = vpop.permute.xlu0 %7065 }
 0x238   :  { %13290 = vst [vmem:[#allocation39_spill] sm:$0xff] %v11538_v30  ;;  %v13303_v30 = vld [vmem:[#allocation40_spill] sm:$0xff] }
 0x239   :  { %7049 = vrot.lane.b32.xlu0 %v13289_v44, %s9221_s3  ;;  %v13299_v44 = vld [vmem:[#allocation58_spill] sm:$0xff] }
 0x23a   :  { %6991 = vrot.lane.b32.xlu1 %v13291_v4, %s9221_s3  ;;  %v11542_v42 = vpop.permute.xlu1 %7003 }
 0x23b   :  { %13292 = vst [vmem:[#allocation36_spill] sm:$0xff] %v11542_v42  ;;  %v11546_v41 = vpop.permute.xlu0 %7073 }
 0x23c   :  { %13294 = vst [vmem:[#allocation19_spill] sm:$0xff] %v11546_v41 }
 0x23d   :  { %7085 = vrot.lane.b32.xlu0 %v13293_v27, %s9221_s3  ;;  %v13301_v27 = vld [vmem:[#allocation102_spill] sm:$0xff] }
 0x23e   :  { %7023 = vrot.lane.b32.xlu1 %v13295_v46, %s9221_s3  ;;  %v11550_v5 = vpop.permute.xlu1 %7011 }
 0x23f   :  { %13296 = vst [vmem:[#allocation68_spill] sm:$0xff] %v11550_v5  ;;  %v11554_v63 = vpop.permute.xlu0 %7089 }
 0x240   :  { %13297 = vst [vmem:[#allocation42_spill] sm:$0xff] %v11554_v63 }
 0x241   :  { %7101 = vrot.lane.b32.xlu0 %v10960_v15, %s9221_s3 }
 0x242   :  { %7039 = vrot.lane.b32.xlu1 %v13298_v20, %s9221_s3  ;;  %v11558_v7 = vpop.permute.xlu1 %7027 }
 0x243   :  { %v11562_v4 = vpop.permute.xlu0 %7121 }
 0x244   :  { %13300 = vst [vmem:[#allocation45_spill] sm:$0xff] %v11562_v4 }
 0x245   :  { %7109 = vrot.lane.b32.xlu0 %v13299_v44, %s9221_s3  ;;  %v13306_v44 = vld [vmem:[#allocation67_spill] sm:$0xff] }
 0x246   :  { %7047 = vrot.lane.b32.xlu1 %v13301_v27, %s9221_s3  ;;  %v11566_v46 = vpop.permute.xlu1 %7063 }
 0x247   :  { %13302 = vst [vmem:[#allocation17_spill] sm:$0xff] %v11566_v46  ;;  %v11570_v15 = vpop.permute.xlu0 %6957  ;;  %v13308_v46 = vld [vmem:[#allocation37_spill] sm:$0xff] }
 0x249   :  { %7113 = vrot.lane.b32.xlu0 %v13303_v30, %s9221_s3  ;;  %v13309_v30 = vld [vmem:[#allocation34_spill] sm:$0xff] }
 0x24a   :  { %7051 = vrot.lane.b32.xlu1 %v13304_v9, %s9221_s3 }
 0x24b   :  { %v11580_v34 = vpop.permute.xlu0 %6973 }
 0x24c   :  { %v11574_v20 = vpop.permute.xlu1 %7067 }
 0x24d   :  { %13305 = vst [vmem:[#allocation90_spill] sm:$0xff] %v11574_v20  ;;  %7133 = vrot.lane.b32.xlu0 %v11119_v59, %s9221_s3  ;;  %v13311_v59 = vld [vmem:[#allocation14_spill] sm:$0xff] }
 0x24e   :  { %7087 = vrot.lane.b32.xlu1 %v13306_v44, %s9221_s3 }
 0x250   :  { %v11582_v27 = vpop.permute.xlu1 %7075 }
 0x251   :  { %13307 = vst [vmem:[#allocation92_spill] sm:$0xff] %v11582_v27  ;;  %7141 = vrot.lane.b32.xlu0 %v13308_v46, %s9221_s3  ;;  %v13313_v46 = vld [vmem:[#allocation33_spill] sm:$0xff] }
 0x252   :  { %7103 = vrot.lane.b32.xlu1 %v13309_v30, %s9221_s3 }
 0x253   :  { %v11588_v13 = vpop.permute.xlu0 %6981 }
 0x254   :  { %v11590_v9 = vpop.permute.xlu1 %7091 }
 0x255   :  { %13310 = vst [vmem:[#allocation95_spill] sm:$0xff] %v11590_v9  ;;  %7145 = vrot.lane.b32.xlu0 %v11193_v0, %s9221_s3  ;;  %v13316_v0 = vld [vmem:[#allocation63_spill] sm:$0xff] }
 0x256   :  { %7111 = vrot.lane.b32.xlu1 %v13311_v59, %s9221_s3 }
 0x257   :  { %v11596_v44 = vpop.permute.xlu0 %6985 }
 0x258   :  { %v11598_v20 = vpop.permute.xlu1 %7123 }
 0x259   :  { %13312 = vst [vmem:[#allocation94_spill] sm:$0xff] %v11598_v20  ;;  %7157 = vrot.lane.b32.xlu0 %v11281_v56, %s9221_s3  ;;  %v13318_v56 = vld [vmem:[#allocation71_spill] sm:$0xff] }
 0x25a   :  { %7115 = vrot.lane.b32.xlu1 %v13313_v46, %s9221_s3 }
 0x25b   :  { %v11604_v30 = vpop.permute.xlu0 %7005 }
 0x25c   :  { %13314 = vst [vmem:[#allocation96_spill] sm:$0xff] %v11604_v30  ;;  %v11606_v27 = vpop.permute.xlu1 %6959  ;;  %v9037_v30 = vpop.f32.mrb[8].mxu1 }
 0x25d   :  { %13315 = vst [vmem:[#allocation18_spill] sm:$0xff] %v11606_v27  ;;  %7161 = vrot.lane.b32.xlu0 %v13227_v28, %s9221_s3  ;;  %v13319_v28 = vld [vmem:[#allocation101_spill] sm:$0xff]  ;;  %v8926_v42 = vmul.f32 -1.442695, %v9037_v30 }
 0x25e   :  { %7135 = vrot.lane.b32.xlu1 %v13316_v0, %s9221_s3  ;;  %v5688_v0 = vpop.f32.mrb[9].mxu1 }
 0x25f   :  { %v11612_v59 = vpop.permute.xlu0 %7013  ;;  %v8925_v45 = vmul.f32 -1.442695, %v5688_v0  ;;  %9098 = vpow2.f32 %v8926_v42 }
 0x260   :  { %13317 = vst [vmem:[#allocation21_spill] sm:$0xff] %v11612_v59  ;;  %v11614_v63 = vpop.permute.xlu1 %6975 }
 0x261   :  { %7169 = vrot.lane.b32.xlu0 %v13239_v31, %s9221_s3  ;;  %9100 = vpow2.f32 %v8925_v45 }
 0x262   :  { %7143 = vrot.lane.b32.xlu1 %v13318_v56, %s9221_s3  ;;  %v13321_v56 = vld [vmem:[#allocation62_spill] sm:$0xff] }
 0x263   :  { %v11620_v46 = vpop.permute.xlu0 %7017 }
 0x264   :  { %v11622_v41 = vpop.permute.xlu1 %6983 }
 0x265   :  { %7053 = vrot.lane.b32.xlu0 %v13319_v28, %s9221_s3 }
 0x266   :  { %7147 = vrot.lane.b32.xlu1 %v11206_v55, %s9221_s3 }
 0x267   :  { %v11628_v18 = vpop.permute.xlu0 %7029 }
 0x268   :  { %13320 = vst [vmem:[#allocation91_spill] sm:$0xff] %v11628_v18  ;;  %v11630_v31 = vpop.permute.xlu1 %6987 }
 0x269   :  { %7117 = vrot.lane.b32.xlu0 %v13321_v56, %s9221_s3  ;;  %v9099_v45 = vpop.eup %9098 }
 0x26a   :  { %7159 = vrot.lane.b32.xlu1 %v11291_v35, %s9221_s3  ;;  %v5832_v35 = vadd.f32 1.0, %v9099_v45 }
 0x26b   :  { %v11636_v10 = vpop.permute.xlu0 %7033  ;;  %v9101_v28 = vpop.eup %9100 }
 0x26c   :  { %v11638_v30 = vpop.permute.xlu1 %7007  ;;  %v5831_v0 = vadd.f32 1.0, %v9101_v28  ;;  %9102 = vrcp.f32 %v5832_v35 }
 0x26d   :  { %13322 = vst [vmem:[#allocation41_spill] sm:$0xff] %v11638_v30  ;;  %7149 = vrot.lane.b32.xlu0 %v11214_v23, %s9221_s3 }
 0x26e   :  { %7163 = vrot.lane.b32.xlu1 %v13229_v40, %s9221_s3  ;;  %9104 = vrcp.f32 %v5831_v0  ;;  %v13324_v40 = vld [vmem:[#allocation103_spill] sm:$0xff] }
 0x26f   :  { %v11644_v55 = vpop.permute.xlu0 %7041 }
 0x270   :  { %v11646_v42 = vpop.permute.xlu1 %7015 }
 0x271   :  { %7165 = vrot.lane.b32.xlu0 %v11285_v32, %s9221_s3 }
 0x272   :  { %7171 = vrot.lane.b32.xlu1 %v13241_v53, %s9221_s3  ;;  %v13327_v53 = vld [vmem:[#allocation59_spill] sm:$0xff] }
 0x273   :  { %v11652_v56 = vpop.permute.xlu0 %7069 }
 0x274   :  { %13323 = vst [vmem:[#allocation38_spill] sm:$0xff] %v11652_v56  ;;  %v11654_v23 = vpop.permute.xlu1 %7019 }
 0x275   :  { %7173 = vrot.lane.b32.xlu0 %v11331_v12, %s9221_s3 }
 0x276   :  { %7055 = vrot.lane.b32.xlu1 %v13324_v40, %s9221_s3  ;;  %v9103_v12 = vpop.eup %9102 }
 0x277   :  { %v11660_v18 = vpop.permute.xlu0 %7077  ;;  %v5952_v2 = vcombine.high %v9103_v12, %v9103_v12 }
 0x278   :  { %13325 = vst [vmem:[#allocation55_spill] sm:$0xff] %v11660_v18  ;;  %v11662_v32 = vpop.permute.xlu1 %7031  ;;  %v9105_v18 = vpop.eup %9104 }
 0x279   :  { %13326 = vst [vmem:[#allocation44_spill] sm:$0xff] %v11662_v32  ;;  %7177 = vrot.lane.b32.xlu0 %v13240_v11, %s9221_s3  ;;  %v9040_v35 = vpop.f32.mrb[10].mxu1  ;;  %v5903_v32 = vcombine.high %v9105_v18, %v9105_v18 }
 0x27a   :  { %7119 = vrot.lane.b32.xlu1 %v13327_v53, %s9221_s3  ;;  %v8928_v0 = vmul.f32 -1.442695, %v9040_v35  ;;  %v5698_v40 = vpop.f32.mrb[11].mxu1  ;;  %v5910_v53 = vrot.slane %v9105_v18, %v9283_v16 }
 0x27b   :  { %v11668_v45 = vpop.permute.xlu0 %7081  ;;  %v8927_v56 = vmul.f32 -1.442695, %v5698_v40  ;;  %v5917_v35 = vrot.slane %v5903_v32, %v9283_v16 }
 0x27c   :  { %13328 = vst [vmem:[#allocation93_spill] sm:$0xff] %v11668_v45  ;;  %v11670_v28 = vpop.permute.xlu1 %7035  ;;  %9106 = vpow2.f32 %v8928_v0  ;;  %v5918_v9 = vcombine.high %v5910_v53, %v5910_v53 }
 0x27d   :  { %7181 = vrot.lane.b32.xlu0 %v11335_v6, %s9221_s3  ;;  %9108 = vpow2.f32 %v8927_v56  ;;  %v5959_v6 = vrot.slane %v9103_v12, %v9283_v16  ;;  %v5919_v18 = vcombine.high %v5917_v35, %v5917_v35  ;;  %v5933_v0 = vrot.slane %v5917_v35, %v9283_v16 }
 0x27e   :  { %7151 = vrot.lane.b32.xlu1 %v11220_v39, %s9221_s3  ;;  %v5926_v39 = vrot.slane %v5910_v53, %v9283_v16  ;;  %v5940_v56 = vrot.slane %v5918_v9, %v9283_v16  ;;  %v5966_v12 = vrot.slane %v5952_v2, %v9283_v16 }
 0x27f   :  { %v11676_v11 = vpop.permute.xlu0 %7093  ;;  %v9043_v40 = vpop.f32.mrb[12].mxu1  ;;  %v5967_v20 = vcombine.high %v5959_v6, %v5959_v6  ;;  %v5949_v53 = vcombine.high %v5933_v0, %v5933_v0 }
 0x280   :  { %13329 = vst [vmem:[#allocation69_spill] sm:$0xff] %v11676_v11  ;;  %v11679_v30 = vpop.permute.xlu1 %7043  ;;  %v8930_v59 = vmul.f32 -1.442695, %v9043_v40  ;;  %v5708_v5 = vpop.f32.mrb[13].mxu1  ;;  %v5948_v27 = vcombine.high %v5926_v39, %v5926_v39  ;;  %v5950_v40 = vcombine.high %v5940_v56, %v5940_v56  ;;  %v7314_v4 = vmul.f32 %v11395_v48, %v5940_v56 }
 0x281   :  { %v8929_v24 = vmul.f32 -1.442695, %v5708_v5 }
 0x282   :  { %7167 = vrot.lane.b32.xlu1 %v11299_v62, %s9221_s3  ;;  %v5947_v62 = vrot.slane %v5919_v18, %v9283_v16  ;;  %v7316_v2 = vmul.f32 %v11428_v1, %v5950_v40  ;;  %v5989_v18 = vrot.slane %v5967_v20, %v9283_v16  ;;  %v5982_v1 = vrot.slane %v5966_v12, %v9283_v16 }
 0x283   :  { %v11691_v32 = vpop.permute.xlu0 %7097  ;;  %9110 = vpow2.f32 %v8929_v24  ;;  %v7317_v24 = vmul.f32 %v11406_v26, %v5933_v0 }
 0x284   :  { %v11686_v45 = vpop.permute.xlu1 %7071  ;;  %13331 = vst [vmem:[#allocation73_spill] sm:$0xff] %v11691_v32  ;;  %9112 = vpow2.f32 %v8930_v59  ;;  %v5951_v9 = vcombine.high %v5947_v62, %v5947_v62  ;;  %v7318_v5 = vmul.f32 %v11436_v49, %v5947_v62  ;;  %v7315_v32 = vmul.f32 %v11416_v37, %v5948_v27 }
 0x285   :  { %13330 = vst [vmem:[#allocation43_spill] sm:$0xff] %v11686_v45  ;;  %v5975_v45 = vrot.slane %v5959_v6, %v9283_v16  ;;  %v7319_v59 = vmul.f32 %v11450_v8, %v5949_v53  ;;  %v7313_v37 = vmul.f32 %v11380_v50, %v5926_v39  ;;  %v5999_v20 = vcombine.high %v5989_v18, %v5989_v18 }
 0x286   :  { %7175 = vrot.lane.b32.xlu1 %v11339_v47, %s9221_s3  ;;  %v5968_v47 = vcombine.high %v5966_v12, %v5966_v12  ;;  %v9107_v11 = vpop.eup %9106  ;;  %v7320_v6 = vmul.f32 %v11488_v25, %v5951_v9  ;;  %v7602_v27 = vcombine.low %v7315_v32, %v7316_v2  ;;  %v5998_v12 = vcombine.high %v5982_v1, %v5982_v1 }
 0x287   :  { %v9109_v49 = vpop.eup %9108  ;;  %v5834_v62 = vadd.f32 1.0, %v9107_v11  ;;  %v11710_v48 = vpop.permute.xlu0 %7105  ;;  %v5997_v26 = vcombine.high %v5975_v45, %v5975_v45  ;;  %v7601_v8 = vcombine.low %v7313_v37, %v7314_v4  ;;  %v7321_v11 = vmul.f32 %v11380_v50, %v5975_v45 }
 0x288   :  { %v11697_v35 = vpop.permute.xlu1 %7079  ;;  %13333 = vst [vmem:[#allocation46_spill] sm:$0xff] %v11710_v48  ;;  %v5833_v56 = vadd.f32 1.0, %v9109_v49  ;;  %v7618_v39 = vrot.slane %v7602_v27, %v9283_v16  ;;  %v5996_v0 = vrot.slane %v5968_v47, %v9283_v16  ;;  %v7324_v32 = vmul.f32 %v11456_v17, %v5999_v20 }
 0x289   :  { %13332 = vst [vmem:[#allocation29_spill] sm:$0xff] %v11697_v35  ;;  %v7604_v35 = vcombine.low %v7319_v59, %v7320_v6  ;;  %9114 = vrcp.f32 %v5834_v62  ;;  %v7322_v4 = vmul.f32 %v11414_v21, %v5989_v18  ;;  %v7323_v2 = vmul.f32 %v11448_v33, %v5997_v26 }
 0x28a   :  { %7179 = vrot.lane.b32.xlu1 %v13242_v52, %s9221_s3  ;;  %v7603_v52 = vcombine.low %v7317_v24, %v7318_v5  ;;  %9116 = vrcp.f32 %v5833_v56  ;;  %v7611_v50 = vrot.slane %v7601_v8, %v9283_v16  ;;  %v7325_v45 = vmul.f32 %v11494_v19, %v5982_v1 }
 0x28b   :  { %v7632_v25 = vrot.slane %v7604_v35, %v9283_v16  ;;  %v11727_v5 = vpop.permute.xlu0 %7125  ;;  %v7656_v17 = vrot.slane %v7321_v11, %v9283_v16  ;;  %v7326_v6 = vmul.f32 %v11464_v54, %v5996_v0  ;;  %v7327_v49 = vmul.f32 %v11502_v38, %v5998_v12 }
 0x28c   :  { %v11713_v40 = vpop.permute.xlu1 %7083  ;;  %v7625_v9 = vrot.slane %v7603_v52, %v9283_v16  ;;  %v7633_v59 = vcombine.low %v7611_v50, %v7618_v39  ;;  %v7665_v18 = vcombine.low %v7324_v32, %v7325_v45  ;;  %v7664_v62 = vcombine.low %v7322_v4, %v7323_v2 }
 0x28d   :  { %13334 = vst [vmem:[#allocation49_spill] sm:$0xff] %v11713_v40  ;;  %v7663_v19 = vrot.slane %v7656_v17, %v9283_v16  ;;  %v6000_v52 = vcombine.high %v5996_v0, %v5996_v0  ;;  %v7666_v38 = vcombine.low %v7326_v6, %v7327_v49 }
 0x28e   :  { %7183 = vrot.lane.b32.xlu1 %v11343_v57, %s9221_s3  ;;  %v9111_v57 = vpop.eup %9110  ;;  %v7634_v24 = vcombine.low %v7625_v9, %v7632_v25  ;;  %v7641_v54 = vrot.slane %v7633_v59, %v9283_v16  ;;  %v7681_v26 = vrot.slane %v7665_v18, %v9283_v16  ;;  %v7674_v9 = vrot.slane %v7664_v62, %v9283_v16 }
 0x28f   :  { %v9113_v35 = vpop.eup %9112  ;;  %v5835_v47 = vadd.f32 1.0, %v9111_v57  ;;  %v11738_v56 = vpop.permute.xlu0 %7129  ;;  %v11760_v62 = vsel %vm8645_vm9, %v7663_v19, 0.0 }
 0x290   :  { %v11722_v53 = vpop.permute.xlu1 %7095  ;;  %v5836_v37 = vadd.f32 1.0, %v9113_v35  ;;  %v7648_v27 = vrot.slane %v7634_v24, %v9283_v16  ;;  %13335 = vst [vmem:[#allocation106_spill] sm:$0xff] %v11738_v56  ;;  %v7696_v24 = vcombine.low %v7674_v9, %v7681_v26 }
 0x291   :  { %9118 = vrcp.f32 %v5835_v47 }
 0x292   :  { %9120 = vrcp.f32 %v5836_v37  ;;  %v7649_v50 = vcombine.low %v7641_v54, %v7648_v27  ;;  %v11763_v27 = vmul.f32 %v11570_v15, %v6000_v52  ;;  %v11781_v52 = vrot.slane %v7696_v24, %v9283_v16 }
 0x293   :  { %v9115_v1 = vpop.eup %9114  ;;  %v11756_v49 = vpop.permute.xlu0 %7137 }
 0x294   :  { %v11734_v33 = vpop.permute.xlu1 %7099  ;;  %v9117_v8 = vpop.eup %9116  ;;  %v6050_v25 = vcombine.high %v9115_v1, %v9115_v1  ;;  %v6057_v32 = vrot.slane %v9115_v1, %v9283_v16  ;;  %13337 = vst [vmem:[#allocation20_spill] sm:$0xff] %v11756_v49  ;;  %v8642_v54 = vsel %vm8641_vm10, %v7649_v50, 0.0  ;;  %13338 = vst [vmem:[#allocation32_spill] sm:$0xff] %v11781_v52 }
 0x295   :  { %v9046_v20 = vpop.f32.mrb[14].mxu1  ;;  %v6001_v4 = vcombine.high %v9117_v8, %v9117_v8  ;;  %v6008_v57 = vrot.slane %v9117_v8, %v9283_v16  ;;  %v11772_v8 = vrot.slane %v7666_v38, %v9283_v16 }
 0x296   :  { %v8932_v11 = vmul.f32 -1.442695, %v9046_v20  ;;  %v5718_v39 = vpop.f32.mrb[15].mxu1  ;;  %v11748_v0 = vrot.slane %v6050_v25, %v9283_v16  ;;  %v6073_v45 = vrot.slane %v6057_v32, %v9283_v16  ;;  %v6065_v6 = vcombine.high %v6057_v32, %v6057_v32 }
 0x297   :  { %v8931_v2 = vmul.f32 -1.442695, %v5718_v39  ;;  %v6015_v35 = vrot.slane %v6001_v4, %v9283_v16  ;;  %v6016_v47 = vcombine.high %v6008_v57, %v6008_v57  ;;  %v11777_v19 = vrot.slane %v6008_v57, %v9283_v16 }
 0x298   :  { %v11742_v12 = vpop.permute.xlu1 %7107  ;;  %9122 = vpow2.f32 %v8932_v11  ;;  %v6066_v59 = vcombine.high %v11748_v0, %v11748_v0  ;;  %v6095_v37 = vcombine.high %v6073_v45, %v6073_v45  ;;  %v11789_v9 = vrot.slane %v6065_v6, %v9283_v16 }
 0x299   :  { %13336 = vst [vmem:[#allocation23_spill] sm:$0xff] %v11742_v12  ;;  %9124 = vpow2.f32 %v8931_v2  ;;  %v6038_v18 = vrot.slane %v6016_v47, %v9283_v16  ;;  %v6017_v26 = vcombine.high %v6015_v35, %v6015_v35  ;;  %v6031_v38 = vrot.slane %v6015_v35, %v9283_v16 }
 0x29a   :  { %v11768_v20 = vrot.slane %v6066_v59, %v9283_v16  ;;  %v11792_v4 = vmul.f32 %v11580_v34, %v6073_v45  ;;  %v7339_v47 = vmul.f32 %v11424_v61, %v6095_v37 }
 0x29b   :  { %v11765_v1 = vpop.eup %9118  ;;  %v7330_v15 = vmul.f32 %v11414_v21, %v6038_v18  ;;  %v6045_v35 = vrot.slane %v6017_v26, %v9283_v16  ;;  %v7338_v26 = vmul.f32 %v11614_v63, %v11789_v9  ;;  %v7333_v40 = vmul.f32 %v11472_v58, %v6031_v38 }
 0x29c   :  { %v11752_v17 = vpop.permute.xlu1 %7127  ;;  %v6106_v25 = vrot.slane %v11765_v1, %v9283_v16  ;;  %v6098_v32 = vcombine.high %v11768_v20, %v11768_v20  ;;  %v9121_v6 = vpop.eup %9120  ;;  %v7782_v63 = vrot.slane %v7339_v47, %v9283_v16 }
 0x29d   :  { %v7719_v50 = vrot.slane %v7330_v15, %v9283_v16  ;;  %v6049_v12 = vcombine.high %v6045_v35, %v6045_v35  ;;  %v7730_v47 = vcombine.low %v11792_v4, %v7338_v26 }
 0x29e   :  { %v6114_v21 = vcombine.high %v6106_v25, %v6106_v25  ;;  %v6122_v59 = vrot.slane %v6106_v25, %v9283_v16  ;;  %v11798_v56 = vmul.f32 %v11596_v44, %v6098_v32  ;;  %v6046_v44 = vcombine.high %v11777_v19, %v11777_v19 }
 0x29f   :  { %v9049_v11 = vpop.f32.mrb[16].mxu1  ;;  %v7726_v45 = vrot.slane %v7719_v50, %v9283_v16  ;;  %v6047_v50 = vcombine.high %v6031_v38, %v6031_v38 }
 0x2a0   :  { %v11783_v39 = vpop.permute.xlu1 %7131  ;;  %v8934_v2 = vmul.f32 -1.442695, %v9049_v11  ;;  %v5728_v57 = vpop.f32.mrb[17].mxu1  ;;  %v6136_v34 = vrot.slane %v6114_v21, %v9283_v16  ;;  %v6048_v11 = vcombine.high %v6038_v18, %v6038_v18  ;;  %v11808_v25 = vmul.f32 %v11630_v31, %v6122_v59 }
 0x2a1   :  { %13339 = vst [vmem:[#allocation47_spill] sm:$0xff] %v11783_v39  ;;  %v8933_v24 = vmul.f32 -1.442695, %v5728_v57  ;;  %v11801_v39 = vpop.permute.xlu0 %7153  ;;  %v8652_v21 = vsel %vm8645_vm9, %v7726_v45, 0.0  ;;  %v11816_v18 = vrot.slane %v9121_v6, %v9283_v16  ;;  %v7331_v45 = vmul.f32 %v11424_v61, %v6046_v44 }
 0x2a2   :  { %9126 = vpow2.f32 %v8934_v2  ;;  %13340 = vst [vmem:[#allocation51_spill] sm:$0xff] %v11801_v39  ;;  %v9123_v15 = vpop.eup %9122  ;;  %v6146_v57 = vcombine.high %v6136_v34, %v6136_v34  ;;  %8653 = vadd.xlane.f32.xlu0 %v8652_v21  ;;  %v7792_v31 = vcombine.low %v11798_v56, %v11808_v25  ;;  %v7335_v25 = vmul.f32 %v11478_v29, %v6047_v50 }
 0x2a3   :  { %9128 = vpow2.f32 %v8933_v24  ;;  %v9125_v32 = vpop.eup %9124  ;;  %v5838_v2 = vadd.f32 1.0, %v9123_v15  ;;  %v7332_v15 = vmul.f32 %v11458_v22, %v6048_v11  ;;  %v6099_v22 = vcombine.high %v11765_v1, %v11765_v1 }
 0x2a4   :  { %v11805_v37 = vpop.permute.xlu1 %7139  ;;  %v5837_v24 = vadd.f32 1.0, %v9125_v32  ;;  %v7348_v48 = vmul.f32 %v11486_v3, %v6146_v57  ;;  %v7334_v32 = vmul.f32 %v11510_v60, %v6045_v35  ;;  %v6148_v61 = vcombine.high %v9121_v6, %v9121_v6 }
 0x2a5   :  { %9130 = vrcp.f32 %v5838_v2  ;;  %v6990_v21 = vpop.permute.xlu0 %6989  ;;  %v7336_v2 = vmul.f32 %v11518_v51, %v6049_v12  ;;  %v7727_v11 = vcombine.low %v7331_v45, %v7332_v15  ;;  %v6144_v60 = vcombine.high %v6122_v59, %v6122_v59 }
 0x2a6   :  { %9132 = vrcp.f32 %v5837_v24  ;;  %v7845_v56 = vrot.slane %v7348_v48, %v9283_v16  ;;  %8643 = vadd.xlane.f32.xlu0 %v8642_v54  ;;  %v7728_v57 = vcombine.low %v7333_v40, %v7334_v32  ;;  %v7346_v35 = vmul.f32 %v6990_v21, %v6136_v34 }
 0x2a7   :  { %v7729_v48 = vcombine.low %v7335_v25, %v7336_v2  ;;  %v7789_v51 = vrot.slane %v7782_v63, %v9283_v16  ;;  %v11840_v12 = vrot.slane %v11748_v0, %v9283_v16  ;;  %v6097_v1 = vcombine.high %v11789_v9, %v11789_v9 }
 0x2a8   :  { %v11823_v52 = vpop.permute.xlu1 %7155  ;;  %v7852_v38 = vrot.slane %v7845_v56, %v9283_v16  ;;  %v11849_v6 = vrot.slane %v7730_v47, %v9283_v16  ;;  %v7737_v0 = vrot.slane %v7727_v11, %v9283_v16  ;;  %v7744_v50 = vrot.slane %v7728_v57, %v9283_v16 }
 0x2a9   :  { %v11846_v59 = vrot.slane %v7729_v48, %v9283_v16  ;;  %v11854_v9 = vrot.slane %v6148_v61, %v9283_v16  ;;  %v11859_v21 = vrot.slane %v6099_v22, %v9283_v16  ;;  %v8658_v25 = vsel %vm8645_vm9, %v7789_v51, 0.0 }
 0x2aa   :  { %v8664_v4 = vsel %vm8645_vm9, %v7852_v38, 0.0  ;;  %v11863_v47 = vrot.slane %v7792_v31, %v9283_v16  ;;  %v11871_v61 = vmul.f32 %v11486_v3, %v6097_v1  ;;  %v7022_v38 = vpop.permute.xlu0 %7021 }
 0x2ab   :  { %8665 = vadd.xlane.f32.xlu0 %v8664_v4  ;;  %v7760_v32 = vcombine.low %v11846_v59, %v11849_v6  ;;  %v11876_v31 = vrot.slane %v11854_v9, %v9283_v16 }
 0x2ac   :  { %v6992_v29 = vpop.permute.xlu1 %6991  ;;  %v9127_v40 = vpop.eup %9126 }
 0x2ad   :  { %v7347_v54 = vmul.f32 %v6992_v29, %v6144_v60  ;;  %v9129_v34 = vpop.eup %9128  ;;  %v5840_v44 = vadd.f32 1.0, %v9127_v40 }
 0x2ae   :  { %v9052_v26 = vpop.f32.mrb[18].mxu1  ;;  %v5839_v24 = vadd.f32 1.0, %v9129_v34 }
 0x2af   :  { %v8936_v63 = vmul.f32 -1.442695, %v9052_v26  ;;  %v5738_v15 = vpop.f32.mrb[19].mxu1  ;;  %v7793_v45 = vcombine.low %v7346_v35, %v7347_v54  ;;  %9134 = vrcp.f32 %v5840_v44  ;;  %v9131_v2 = vpop.eup %9130  ;;  %v7759_v35 = vcombine.low %v7737_v0, %v7744_v50 }
 0x2b0   :  { %v8935_v56 = vmul.f32 -1.442695, %v5738_v15  ;;  %v9133_v60 = vpop.eup %9132  ;;  %v6246_v48 = vcombine.high %v9131_v2, %v9131_v2  ;;  %v7024_v1 = vpop.permute.xlu1 %7023  ;;  %v6253_v59 = vrot.slane %v9131_v2, %v9283_v16  ;;  %v11894_v50 = vmul.f32 %v11432_v14, %v11876_v31 }
 0x2b1   :  { %v11866_v11 = vrot.slane %v7793_v45, %v9283_v16  ;;  %9136 = vpow2.f32 %v8936_v63  ;;  %v6204_v3 = vrot.slane %v9133_v60, %v9283_v16  ;;  %v6197_v54 = vcombine.high %v9133_v60, %v9133_v60 }
 0x2b2   :  { %v9055_v22 = vpop.f32.mrb[20].mxu1  ;;  %8647 = vadd.xlane.f32.xlu1 %v11760_v62  ;;  %9138 = vrcp.f32 %v5839_v24  ;;  %v6260_v4 = vrot.slane %v6246_v48, %v9283_v16  ;;  %v11884_v62 = vmul.f32 %v11526_v43, %v11840_v12  ;;  %v11890_v0 = vrot.slane %v7759_v35, %v9283_v16 }
 0x2b3   :  { %v8938_v29 = vmul.f32 -1.442695, %v9055_v22  ;;  %v5748_v51 = vpop.f32.mrb[21].mxu1  ;;  %9140 = vpow2.f32 %v8935_v56  ;;  %v6212_v6 = vcombine.high %v6204_v3, %v6204_v3  ;;  %v6220_v34 = vrot.slane %v6204_v3, %v9283_v16  ;;  %v7038_v22 = vpop.permute.xlu0 %7037 }
 0x2b4   :  { %v6211_v26 = vrot.slane %v6197_v54, %v9283_v16  ;;  %v8937_v24 = vmul.f32 -1.442695, %v5748_v51  ;;  %v6276_v48 = vrot.slane %v6260_v4, %v9283_v16  ;;  %v6261_v35 = vcombine.high %v6253_v59, %v6253_v59 }
 0x2b5   :  { %9142 = vpow2.f32 %v8938_v29  ;;  %v6234_v45 = vrot.slane %v6212_v6, %v9283_v16  ;;  %v6242_v56 = vcombine.high %v6220_v34, %v6220_v34  ;;  %v7040_v29 = vpop.permute.xlu1 %7039  ;;  %v7774_v3 = vrot.slane %v7760_v32, %v9283_v16 }
 0x2b6   :  { %v9058_v44 = vpop.f32.mrb[22].mxu1  ;;  %8659 = vadd.xlane.f32.xlu1 %v8658_v25  ;;  %v6213_v60 = vcombine.high %v6211_v26, %v6211_v26  ;;  %v6227_v25 = vrot.slane %v6211_v26, %v9283_v16  ;;  %v6262_v40 = vcombine.high %v6260_v4, %v6260_v4  ;;  %v6292_v57 = vcombine.high %v6276_v48, %v6276_v48 }
 0x2b7   :  { %v8940_v63 = vmul.f32 -1.442695, %v9058_v44  ;;  %v5758_v15 = vpop.f32.mrb[23].mxu1  ;;  %v7362_v6 = vmul.f32 %v11620_v46, %v6234_v45  ;;  %v7363_v44 = vmul.f32 %v11654_v23, %v6242_v56  ;;  %v6244_v26 = vcombine.high %v6234_v45, %v6234_v45 }
 0x2b8   :  { %v8939_v2 = vmul.f32 -1.442695, %v5758_v15  ;;  %v11907_v15 = vrot.slane %v6213_v60, %v9283_v16  ;;  %v6243_v58 = vcombine.high %v6227_v25, %v6227_v25  ;;  %v7365_v43 = vmul.f32 %v7024_v1, %v6227_v25 }
 0x2b9   :  { %9144 = vpow2.f32 %v8940_v63  ;;  %v9135_v54 = vpop.eup %9134  ;;  %v11910_v32 = vrot.slane %v6253_v59, %v9283_v16  ;;  %v7364_v45 = vmul.f32 %v7022_v38, %v6244_v26  ;;  %v11920_v1 = vmul.f32 %v11646_v42, %v6220_v34  ;;  %v7048_v26 = vpop.permute.xlu1 %7047 }
 0x2ba   :  { %9146 = vpow2.f32 %v8939_v2  ;;  %v7908_v2 = vrot.slane %v11894_v50, %v9283_v16  ;;  %v6344_v46 = vcombine.high %v9135_v54, %v9135_v54  ;;  %v11917_v23 = vrot.slane %v9135_v54, %v9283_v16  ;;  %v7046_v50 = vpop.permute.xlu0 %7045 }
 0x2bb   :  { %v9137_v63 = vpop.eup %9136  ;;  %9148 = vpow2.f32 %v8937_v24  ;;  %v7918_v4 = vcombine.low %v7362_v6, %v7363_v44  ;;  %v6245_v59 = vcombine.high %v11907_v15, %v11907_v15  ;;  %v11925_v24 = vrot.slane %v6261_v35, %v9283_v16 }
 0x2bc   :  { %v11914_v51 = vpop.eup %9138  ;;  %13341 = vst [vmem:[#allocation50_spill] sm:$0xff] %v11917_v23  ;;  %v5842_v56 = vadd.f32 1.0, %v9137_v63  ;;  %v11928_v14 = vmul.f32 %v11522_v36, %v6243_v58  ;;  %v7919_v54 = vcombine.low %v7364_v45, %v7365_v43  ;;  %v6290_v38 = vrot.slane %v6262_v40, %v9283_v16 }
 0x2bd   :  { %v9141_v60 = vpop.eup %9140  ;;  %13342 = vst [vmem:[#allocation3_spill] sm:$0xff] %v11925_v24  ;;  %v7373_v42 = vmul.f32 %v7038_v22, %v6276_v48  ;;  %v11932_v34 = vmul.f32 %v11522_v36, %v6292_v57  ;;  %v6293_v6 = vcombine.high %v11925_v24, %v11925_v24  ;;  %v11937_v35 = vrot.slane %v6344_v46, %v9283_v16 }
 0x2be   :  { %9150 = vrcp.f32 %v5842_v56  ;;  %v5841_v58 = vadd.f32 1.0, %v9141_v60  ;;  %v6291_v43 = vcombine.high %v11910_v32, %v11910_v32  ;;  %v6294_v40 = vcombine.high %v6290_v38, %v6290_v38  ;;  %v11956_v44 = vpop.permute.xlu0 %7049 }
 0x2bf   :  { %v9143_v25 = vpop.eup %9142  ;;  %13343 = vst [vmem:[#allocation5_spill] sm:$0xff] %v11937_v35  ;;  %v7374_v56 = vmul.f32 %v7040_v29, %v6290_v38  ;;  %v6302_v36 = vrot.slane %v11914_v51, %v9283_v16  ;;  %v11946_v22 = vmul.f32 %v11558_v7, %v6245_v59  ;;  %v11949_v48 = vrot.slane %v7918_v4, %v9283_v16  ;;  %v11961_v35 = vpop.permute.xlu1 %7051 }
 0x2c0   :  { %v5844_v63 = vadd.f32 1.0, %v9143_v25  ;;  %v11952_v46 = vrot.slane %v7919_v54, %v9283_v16  ;;  %v7775_v45 = vcombine.low %v11890_v0, %v7774_v3  ;;  %v7372_v29 = vmul.f32 %v11670_v28, %v6293_v6 }
 0x2c1   :  { %v6310_v38 = vcombine.high %v6302_v36, %v6302_v36  ;;  %v7915_v23 = vrot.slane %v7908_v2, %v9283_v16  ;;  %v6318_v54 = vrot.slane %v6302_v36, %v9283_v16  ;;  %v7371_v3 = vmul.f32 %v11636_v10, %v6291_v43 }
 0x2c2   :  { %9152 = vrcp.f32 %v5844_v63  ;;  %v8655_v4 = vsel %vm8641_vm10, %v7775_v45, 0.0  ;;  %v7376_v28 = vmul.f32 %v11644_v55, %v6294_v40  ;;  %v7982_v6 = vcombine.low %v7373_v42, %v7374_v56 }
 0x2c3   :  { %v9145_v57 = vpop.eup %9144  ;;  %9154 = vrcp.f32 %v5841_v58  ;;  %8656 = vadd.xlane.f32.xlu0 %v8655_v4  ;;  %v11966_v2 = vrot.slane %v6310_v38, %v9283_v16  ;;  %v6340_v58 = vcombine.high %v6318_v54, %v6318_v54  ;;  %v8670_v36 = vsel %vm8645_vm9, %v7915_v23, 0.0  ;;  %v11990_v38 = vpop.permute.xlu0 %7085 }
 0x2c4   :  { %v9147_v60 = vpop.eup %9146  ;;  %v5846_v25 = vadd.f32 1.0, %v9145_v57  ;;  %v7377_v57 = vmul.f32 %v11679_v30, %v6318_v54  ;;  %8671 = vadd.xlane.f32.xlu1 %v8670_v36 }
 0x2c5   :  { %v9061_v63 = vpop.f32.mrb[24].mxu1  ;;  %v5845_v7 = vadd.f32 1.0, %v9147_v60  ;;  %v9149_v0 = vpop.eup %9148  ;;  %v7981_v60 = vcombine.low %v7371_v3, %v7372_v29  ;;  %v7378_v42 = vmul.f32 %v7046_v50, %v11966_v2  ;;  %v7379_v43 = vmul.f32 %v7048_v26, %v6340_v58 }
 0x2c6   :  { %v5768_v59 = vpop.f32.mrb[25].mxu1  ;;  %9156 = vrcp.f32 %v5846_v25  ;;  %v8942_v45 = vmul.f32 -1.442695, %v9061_v63  ;;  %v7342_v25 = vmul.f32 %v11588_v13, %v11768_v20  ;;  %v8042_v40 = vcombine.low %v7376_v28, %v7377_v57 }
 0x2c7   :  { %9158 = vrcp.f32 %v5845_v7  ;;  %v5843_v56 = vadd.f32 1.0, %v9149_v0  ;;  %v11980_v63 = vrot.slane %v7982_v6, %v9283_v16  ;;  %v13345_v13 = vcombine.high %v11840_v12, %v11840_v12  ;;  %v11992_v7 = vpop.permute.xlu1 %7087  ;;  %v13351_v6 = vld [vmem:[#allocation73_spill] sm:$0xff] }
 0x2c8   :  { %v11972_v24 = vpop.eup %9150  ;;  %v8941_v23 = vmul.f32 -1.442695, %v5768_v59  ;;  %v8043_v50 = vcombine.low %v7378_v42, %v7379_v43  ;;  %v7790_v26 = vcombine.low %v11871_v61, %v11884_v62  ;;  %9160 = vpow2.f32 %v8942_v45 }
 0x2c9   :  { %v6442_v30 = vcombine.high %v11972_v24, %v11972_v24  ;;  %13344 = vst [vmem:[#allocation4_spill] sm:$0xff] %v11980_v63  ;;  %v7343_v20 = vmul.f32 %v11622_v41, %v13345_v13  ;;  %v11998_v12 = vrot.slane %v7981_v60, %v9283_v16  ;;  %v12003_v0 = vrot.slane %v8042_v40, %v9283_v16 }
 0x2ca   :  { %v12006_v61 = vrot.slane %v8043_v50, %v9283_v16  ;;  %v6295_v62 = vcombine.high %v11914_v51, %v11914_v51  ;;  %9162 = vrcp.f32 %v5843_v56  ;;  %v7800_v60 = vrot.slane %v7790_v26, %v9283_v16  ;;  %v12031_v50 = vpop.permute.xlu0 %7101 }
 0x2cb   :  { %v6456_v54 = vrot.slane %v6442_v30, %v9283_v16  ;;  %v7791_v41 = vcombine.low %v7342_v25, %v7343_v20  ;;  %13346 = vst [vmem:[#allocation11_spill] sm:$0xff] %v12003_v0  ;;  %9164 = vpow2.f32 %v8941_v23  ;;  %v6342_v43 = vcombine.high %v11966_v2, %v11966_v2  ;;  %v12033_v26 = vpop.permute.xlu1 %7103  ;;  %v13353_v0 = vld [vmem:[#allocation94_spill] sm:$0xff] }
 0x2cc   :  { %v11994_v4 = vpop.eup %9152  ;;  %13347 = vst [vmem:[#allocation6_spill] sm:$0xff] %v12006_v61  ;;  %v6309_v20 = vrot.slane %v6295_v62, %v9283_v16 }
 0x2cd   :  { %v6540_v59 = vcombine.high %v11994_v4, %v11994_v4  ;;  %v6472_v3 = vrot.slane %v6456_v54, %v9283_v16  ;;  %v6458_v28 = vcombine.high %v6456_v54, %v6456_v54  ;;  %v12013_v58 = vpop.eup %9154  ;;  %v7807_v36 = vrot.slane %v7791_v41, %v9283_v16  ;;  %v13350_v54 = vld [vmem:[#allocation69_spill] sm:$0xff] }
 0x2cf   :  { %v6554_v57 = vrot.slane %v6540_v59, %v9283_v16  ;;  %v6488_v51 = vcombine.high %v6472_v3, %v6472_v3  ;;  %v6486_v42 = vrot.slane %v6458_v28, %v9283_v16  ;;  %v12036_v41 = vmul.f32 %v13350_v54, %v6472_v3 }
 0x2d0   :  { %v12020_v25 = vpop.eup %9156  ;;  %v7822_v62 = vcombine.low %v7800_v60, %v7807_v36 }
 0x2d1   :  { %13348 = vst [vmem:[#allocation48_spill] sm:$0xff] %v12020_v25  ;;  %v12025_v40 = vpop.eup %9158  ;;  %v6570_v30 = vrot.slane %v6554_v57, %v9283_v16  ;;  %v6556_v56 = vcombine.high %v6554_v57, %v6554_v57  ;;  %v6638_v13 = vcombine.high %v12020_v25, %v12020_v25  ;;  %v6490_v23 = vcombine.high %v6486_v42, %v6486_v42 }
 0x2d2   :  { %13349 = vst [vmem:[#allocation52_spill] sm:$0xff] %v12025_v40  ;;  %v12039_v2 = vmul.f32 %v11722_v53, %v6486_v42  ;;  %v6589_v59 = vcombine.high %v12025_v40, %v12025_v40  ;;  %v7407_v10 = vmul.f32 %v13351_v6, %v6488_v51  ;;  %v13352_v53 = vld [vmem:[#allocation45_spill] sm:$0xff]  ;;  %v9161_v63 = vpop.eup %9160 }
 0x2d3   :  { %v6586_v28 = vcombine.high %v6570_v30, %v6570_v30  ;;  %v6584_v57 = vrot.slane %v6556_v56, %v9283_v16  ;;  %v6652_v45 = vrot.slane %v6638_v13, %v9283_v16  ;;  %v7408_v29 = vmul.f32 %v11734_v33, %v6490_v23  ;;  %v12063_v23 = vpop.permute.xlu0 %7109 }
 0x2d4   :  { %v6603_v54 = vrot.slane %v6589_v59, %v9283_v16  ;;  %v7421_v42 = vmul.f32 %v13352_v53, %v6570_v30  ;;  %v6311_v59 = vcombine.high %v6309_v20, %v6309_v20  ;;  %v5848_v3 = vadd.f32 1.0, %v9161_v63 }
 0x2d5   :  { %v6588_v61 = vcombine.high %v6584_v57, %v6584_v57  ;;  %v7422_v25 = vmul.f32 %v13353_v0, %v6584_v57  ;;  %v6654_v40 = vcombine.high %v6652_v45, %v6652_v45  ;;  %v8233_v56 = vcombine.low %v7407_v10, %v7408_v29  ;;  %v12065_v0 = vpop.permute.xlu1 %7111  ;;  %v12067_v10 = vpop.eup %9162 }
 0x2d6   :  { %v7423_v13 = vmul.f32 %v11727_v5, %v6586_v28  ;;  %v6605_v60 = vcombine.high %v6603_v54, %v6603_v54  ;;  %v12054_v6 = vrot.slane %v6603_v54, %v9283_v16  ;;  %v12061_v30 = vrot.slane %v6652_v45, %v9283_v16  ;;  %v13357_v28 = vld [vmem:[#allocation18_spill] sm:$0xff]  ;;  %v9165_v54 = vpop.eup %9164 }
 0x2d7   :  { %v7424_v33 = vmul.f32 %v11752_v17, %v6588_v61  ;;  %v8357_v36 = vcombine.low %v7421_v42, %v7422_v25  ;;  %v12058_v51 = vrot.slane %v6654_v40, %v9283_v16  ;;  %v13356_v17 = vcombine.low %v11863_v47, %v11866_v11 }
 0x2d8   :  { %13355 = vst [vmem:[#allocation57_spill] sm:$0xff] %v12061_v30  ;;  %v12070_v5 = vrot.slane %v6605_v60, %v9283_v16  ;;  %v6635_v29 = vcombine.high %v12054_v6, %v12054_v6  ;;  %v6393_v45 = vcombine.high %v12013_v58, %v12013_v58  ;;  %v6684_v40 = vcombine.high %v12061_v30, %v12061_v30 }
 0x2d9   :  { %13354 = vst [vmem:[#allocation53_spill] sm:$0xff] %v12058_v51  ;;  %v7837_v61 = vrot.slane %v13356_v17, %v9283_v16  ;;  %v8358_v25 = vcombine.low %v7423_v13, %v7424_v33  ;;  %v7329_v57 = vmul.f32 %v13357_v28, %v11777_v19  ;;  %v6686_v47 = vcombine.high %v12058_v51, %v12058_v51  ;;  %v12106_v51 = vpop.permute.xlu0 %7113 }
 0x2da   :  { %v7430_v42 = vmul.f32 %v11756_v49, %v12070_v5  ;;  %v7431_v60 = vmul.f32 %v11805_v37, %v6635_v29  ;;  %v12090_v11 = vrot.slane %v8357_v36, %v9283_v16  ;;  %v7380_v33 = vmul.f32 %v11956_v44, %v6342_v43  ;;  %v12108_v44 = vpop.permute.xlu1 %7115 }
 0x2db   :  { %v12093_v13 = vrot.slane %v8358_v25, %v9283_v16  ;;  %v7830_v19 = vrot.slane %v7822_v62, %v9283_v16  ;;  %v7439_v28 = vmul.f32 %v11801_v39, %v6684_v40  ;;  %v7440_v49 = vmul.f32 %v11823_v52, %v6686_v47  ;;  %v13361_v52 = vld [vmem:[#allocation83_spill] sm:$0xff]  ;;  %v13379_v39 = vld [vmem:[#allocation76_spill] sm:$0xff] }
 0x2dc   :  { %13358 = vst [vmem:[#allocation56_spill] sm:$0xff] %v12090_v11  ;;  %v8420_v17 = vcombine.low %v7430_v42, %v7431_v60  ;;  %v12100_v37 = vrot.slane %v6309_v20, %v9283_v16  ;;  %v6407_v29 = vrot.slane %v6393_v45, %v9283_v16  ;;  %v7667_v25 = vcombine.low %v11763_v27, %v7329_v57 }
 0x2dd   :  { %13359 = vst [vmem:[#allocation7_spill] sm:$0xff] %v12093_v13  ;;  %v7838_v36 = vcombine.low %v7830_v19, %v7837_v61  ;;  %9166 = vrcp.f32 %v5848_v3  ;;  %v8483_v43 = vcombine.low %v7439_v28, %v7440_v49  ;;  %v12111_v62 = vrot.slane %v6311_v59, %v9283_v16  ;;  %v13381_v13 = vld [vmem:[#allocation15_spill] sm:$0xff] }
 0x2de   :  { %13360 = vst [vmem:[#allocation9_spill] sm:$0xff] %v12100_v37  ;;  %v7366_v20 = vmul.f32 %v13361_v52, %v11907_v15  ;;  %v6409_v42 = vcombine.high %v6407_v29, %v6407_v29  ;;  %v12117_v61 = vrot.slane %v6407_v29, %v9283_v16  ;;  %v7695_v27 = vrot.slane %v7667_v25, %v9283_v16  ;;  %v13362_v29 = vld [vmem:[#allocation93_spill] sm:$0xff] }
 0x2df   :  { %v8661_v40 = vsel %vm8641_vm10, %v7838_v36, 0.0  ;;  %v12121_v45 = vrot.slane %v8233_v56, %v9283_v16  ;;  %v7381_v49 = vmul.f32 %v11961_v35, %v12100_v37  ;;  %v6449_v15 = vrot.slane %v11972_v24, %v9283_v16  ;;  %v13380_v37 = vld [vmem:[#allocation35_spill] sm:$0xff] }
 0x2e0   :  { %8662 = vadd.xlane.f32.xlu0 %v8661_v40  ;;  %v7971_v3 = vrot.slane %v7366_v20, %v9283_v16  ;;  %v5847_v59 = vadd.f32 1.0, %v9165_v54  ;;  %v6437_v57 = vrot.slane %v6409_v42, %v9283_v16  ;;  %v6439_v60 = vcombine.high %v12117_v61, %v12117_v61  ;;  %v13363_v54 = vld [vmem:[#allocation49_spill] sm:$0xff]  ;;  %v12141_v40 = vpop.permute.xlu0 %7133  ;;  %v12143_v42 = vpop.permute.xlu1 %7135 }
 0x2e1   :  { %v7697_v47 = vcombine.low %v11772_v8, %v7695_v27  ;;  %v6457_v19 = vcombine.high %v6449_v15, %v6449_v15  ;;  %v12134_v28 = vrot.slane %v6449_v15, %v9283_v16  ;;  %v6498_v35 = vrot.slane %v12067_v10, %v9283_v16 }
 0x2e2   :  { %v7978_v56 = vrot.slane %v7971_v3, %v9283_v16  ;;  %v6441_v36 = vcombine.high %v6437_v57, %v6437_v57  ;;  %v7398_v24 = vmul.f32 %v13362_v29, %v6437_v57  ;;  %v7399_v25 = vmul.f32 %v13363_v54, %v6439_v60  ;;  %v13365_v29 = vld [vmem:[#allocation32_spill] sm:$0xff] }
 0x2e3   :  { %v7711_v20 = vrot.slane %v7697_v47, %v9283_v16  ;;  %v8044_v8 = vcombine.low %v7380_v33, %v7381_v49  ;;  %v12147_v3 = vrot.slane %v6457_v19, %v9283_v16  ;;  %v7401_v15 = vmul.f32 %v11992_v7, %v12134_v28 }
 0x2e4   :  { %v8676_v27 = vsel %vm8645_vm9, %v7978_v56, 0.0  ;;  %v12153_v57 = vmul.f32 %v13352_v53, %v12054_v6  ;;  %v7400_v60 = vmul.f32 %v11990_v38, %v6441_v36  ;;  %v8170_v47 = vcombine.low %v7398_v24, %v7399_v25 }
 0x2e5   :  { %v7712_v54 = vcombine.low %v13365_v29, %v7711_v20  ;;  %8677 = vadd.xlane.f32.xlu0 %v8676_v27  ;;  %9168 = vrcp.f32 %v5847_v59  ;;  %v12158_v33 = vrot.slane %v6498_v35, %v9283_v16  ;;  %v8034_v49 = vrot.slane %v11932_v34, %v9283_v16 }
 0x2e6   :  { %13364 = vst [vmem:[#allocation8_spill] sm:$0xff] %v12153_v57  ;;  %v13366_v7 = vcombine.high %v11854_v9, %v11854_v9  ;;  %v12167_v53 = vrot.slane %v8420_v17, %v9283_v16  ;;  %v12170_v38 = vrot.slane %v8483_v43, %v9283_v16  ;;  %v8171_v59 = vcombine.low %v7400_v60, %v7401_v15  ;;  %v12192_v15 = vpop.permute.xlu0 %7141  ;;  %v12194_v60 = vpop.permute.xlu1 %7143 }
 0x2e7   :  { %v8649_v6 = vsel %vm8641_vm10, %v7712_v54, 0.0  ;;  %v12173_v19 = vpop.eup %9166  ;;  %v12176_v36 = vrot.slane %v8044_v8, %v9283_v16  ;;  %v6489_v34 = vcombine.high %v12147_v3, %v12147_v3  ;;  %v8041_v9 = vrot.slane %v8034_v49, %v9283_v16  ;;  %v13372_v8 = vld [vmem:[#allocation68_spill] sm:$0xff]  ;;  %v13373_v49 = vld [vmem:[#allocation21_spill] sm:$0xff] }
 0x2e8   :  { %v6192_v56 = vrot.slane %v13366_v7, %v9283_v16  ;;  %13367 = vst [vmem:[#allocation10_spill] sm:$0xff] %v12170_v38  ;;  %8650 = vadd.xlane.f32.xlu1 %v8649_v6  ;;  %v12182_v17 = vrot.slane %v8170_v47, %v9283_v16  ;;  %v12185_v43 = vrot.slane %v8171_v59, %v9283_v16  ;;  %v13377_v47 = vld [vmem:[#allocation75_spill] sm:$0xff] }
 0x2e9   :  { %13368 = vst [vmem:[#allocation16_spill] sm:$0xff] %v12176_v36  ;;  %v13371_v20 = vcombine.high %v11876_v31, %v11876_v31  ;;  %v8682_v54 = vsel %vm8645_vm9, %v8041_v9, 0.0  ;;  %v6491_v6 = vcombine.high %v12067_v10, %v12067_v10  ;;  %v6171_v9 = vrot.slane %v11816_v18, %v9283_v16 }
 0x2ea   :  { %v6196_v24 = vcombine.high %v6192_v56, %v6192_v56  ;;  %13369 = vst [vmem:[#allocation70_spill] sm:$0xff] %v12182_v17  ;;  %13370 = vst [vmem:[#allocation24_spill] sm:$0xff] %v12185_v43  ;;  %v7358_v25 = vmul.f32 %v13361_v52, %v6192_v56  ;;  %v6506_v56 = vcombine.high %v6498_v35, %v6498_v35  ;;  %v12230_v63 = vpop.permute.xlu1 %7147 }
 0x2eb   :  { %v7359_v27 = vmul.f32 %v13372_v8, %v13371_v20  ;;  %v6115_v20 = vcombine.high %v11859_v21, %v11859_v21  ;;  %v6129_v8 = vrot.slane %v11859_v21, %v9283_v16 }
 0x2ec   :  { %v7360_v7 = vmul.f32 %v13373_v49, %v6196_v24  ;;  %8683 = vadd.xlane.f32.xlu1 %v8682_v54  ;;  %v13374_v24 = vld [vmem:[#allocation95_spill] sm:$0xff]  ;;  %v6528_v35 = vrot.slane %v6506_v56, %v9283_v16  ;;  %v6193_v56 = vcombine.high %v6171_v9, %v6171_v9 }
 0x2ed   :  { %v7916_v31 = vcombine.low %v7358_v25, %v7359_v27  ;;  %v12214_v49 = vmul.f32 %v13374_v24, %v6489_v34  ;;  %v6505_v25 = vrot.slane %v6491_v6, %v9283_v16  ;;  %v6143_v21 = vrot.slane %v6115_v20, %v9283_v16  ;;  %v12228_v6 = vpop.permute.xlu0 %7145 }
 0x2ee   :  { %v7917_v59 = vcombine.low %v7360_v7, %v11920_v1  ;;  %v13375_v1 = vcombine.high %v11816_v18, %v11816_v18  ;;  %v6145_v7 = vcombine.high %v6129_v8, %v6129_v8  ;;  %v7409_v34 = vmul.f32 %v12031_v50, %v12158_v33 }
 0x2ef   :  { %v7926_v27 = vrot.slane %v7916_v31, %v9283_v16  ;;  %v7410_v24 = vmul.f32 %v12033_v26, %v6528_v35  ;;  %v12232_v18 = vpop.eup %9168  ;;  %v13376_v31 = vcombine.low %v11949_v48, %v11952_v46  ;;  %v6147_v20 = vcombine.high %v6143_v21, %v6143_v21  ;;  %v13378_v26 = vld [vmem:[#allocation65_spill] sm:$0xff]  ;;  %v13383_v46 = vld [vmem:[#allocation96_spill] sm:$0xff] }
 0x2f0   :  { %v6185_v10 = vrot.slane %v13375_v1, %v9283_v16  ;;  %v7933_v54 = vrot.slane %v7917_v59, %v9283_v16  ;;  %v7350_v29 = vmul.f32 %v13377_v47, %v6143_v21  ;;  %v6507_v43 = vcombine.high %v6505_v25, %v6505_v25  ;;  %v13384_v21 = vld [vmem:[#allocation41_spill] sm:$0xff] }
 0x2f1   :  { %v7963_v59 = vrot.slane %v13376_v31, %v9283_v16  ;;  %v8234_v50 = vcombine.low %v7409_v34, %v7410_v24  ;;  %v7349_v17 = vmul.f32 %v13378_v26, %v6129_v8  ;;  %v7351_v36 = vmul.f32 %v13379_v39, %v6145_v7  ;;  %v13387_v26 = vld [vmem:[#allocation3_spill] sm:$0xff] }
 0x2f2   :  { %v6195_v52 = vcombine.high %v6185_v10, %v6185_v10  ;;  %v7948_v1 = vcombine.low %v7926_v27, %v7933_v54  ;;  %v7352_v38 = vmul.f32 %v13380_v37, %v6147_v20  ;;  %v7353_v27 = vmul.f32 %v13381_v13, %v6171_v9  ;;  %v13382_v54 = vld [vmem:[#allocation36_spill] sm:$0xff]  ;;  %v13386_v20 = vld [vmem:[#allocation91_spill] sm:$0xff] }
 0x2f3   :  { %v7354_v11 = vmul.f32 %v13382_v54, %v6185_v10  ;;  %v6538_v57 = vcombine.high %v6528_v35, %v6528_v35  ;;  %v12246_v48 = vrot.slane %v8234_v50, %v9283_v16  ;;  %v7355_v47 = vmul.f32 %v13383_v46, %v6193_v56  ;;  %v12255_v35 = vpop.permute.xlu0 %7157  ;;  %v12257_v10 = vpop.permute.xlu1 %7159 }
 0x2f4   :  { %v7956_v30 = vrot.slane %v7948_v1, %v9283_v16  ;;  %v7356_v34 = vmul.f32 %v13384_v21, %v6195_v52  ;;  %v7853_v8 = vcombine.low %v7349_v17, %v7350_v29  ;;  %v7854_v31 = vcombine.low %v7351_v36, %v7352_v38 }
 0x2f5   :  { %v7855_v39 = vcombine.low %v7353_v27, %v7354_v11  ;;  %v6343_v13 = vcombine.high %v12111_v62, %v12111_v62  ;;  %v6521_v9 = vrot.slane %v6505_v25, %v9283_v16  ;;  %v13385_v25 = vld [vmem:[#allocation46_spill] sm:$0xff]  ;;  %v7369_v50 = vmul.f32 %v13386_v20, %v11910_v32 }
 0x2f6   :  { %v7964_v24 = vcombine.low %v7956_v30, %v7963_v59  ;;  %v7856_v37 = vcombine.low %v7355_v47, %v7356_v34  ;;  %v6535_v30 = vrot.slane %v6507_v43, %v9283_v16  ;;  %v7863_v38 = vrot.slane %v7853_v8, %v9283_v16  ;;  %v13388_v43 = vld [vmem:[#allocation44_spill] sm:$0xff] }
 0x2f7   :  { %v7870_v11 = vrot.slane %v7854_v31, %v9283_v16  ;;  %v7877_v36 = vrot.slane %v7855_v39, %v9283_v16  ;;  %v7384_v29 = vmul.f32 %v11644_v55, %v6343_v13  ;;  %v6537_v52 = vcombine.high %v6521_v9, %v6521_v9  ;;  %v13389_v55 = vld [vmem:[#allocation23_spill] sm:$0xff]  ;;  %v12282_v13 = vpop.permute.xlu0 %7161 }
 0x2f8   :  { %v8673_v56 = vsel %vm8641_vm10, %v7964_v24, 0.0  ;;  %v7884_v17 = vrot.slane %v7856_v37, %v9283_v16  ;;  %v7412_v1 = vmul.f32 %v13385_v25, %v6538_v57  ;;  %v7370_v27 = vmul.f32 %v13388_v43, %v13387_v26 }
 0x2f9   :  { %8674 = vadd.xlane.f32.xlu0 %v8673_v56  ;;  %v7885_v59 = vcombine.low %v7863_v38, %v7870_v11  ;;  %v7414_v54 = vmul.f32 %v12063_v23, %v6535_v30  ;;  %v8097_v47 = vrot.slane %v7384_v29, %v9283_v16  ;;  %v7415_v21 = vmul.f32 %v12065_v0, %v6537_v52  ;;  %v12284_v56 = vpop.permute.xlu1 %7163  ;;  %v13394_v52 = vld [vmem:[#allocation52_spill] sm:$0xff] }
 0x2fa   :  { %v7886_v46 = vcombine.low %v7877_v36, %v7884_v17  ;;  %v7413_v24 = vmul.f32 %v13389_v55, %v6521_v9  ;;  %v7980_v8 = vcombine.low %v7369_v50, %v7370_v27  ;;  %v13390_v57 = vcombine.low %v11928_v14, %v11946_v22  ;;  %v13391_v9 = vld [vmem:[#allocation19_spill] sm:$0xff] }
 0x2fb   :  { %v7893_v34 = vrot.slane %v7885_v59, %v9283_v16  ;;  %v8104_v39 = vrot.slane %v8097_v47, %v9283_v16  ;;  %v8295_v23 = vcombine.low %v7414_v54, %v7415_v21  ;;  %v6539_v37 = vcombine.high %v6535_v30, %v6535_v30  ;;  %v13392_v30 = vld [vmem:[#allocation4_spill] sm:$0xff]  ;;  %v13396_v21 = vld [vmem:[#allocation42_spill] sm:$0xff] }
 0x2fc   :  { %v7989_v32 = vrot.slane %v13390_v57, %v9283_v16  ;;  %v7900_v31 = vrot.slane %v7886_v46, %v9283_v16  ;;  %v8294_v0 = vcombine.low %v7412_v1, %v7413_v24  ;;  %v7996_v38 = vrot.slane %v7980_v8, %v9283_v16  ;;  %v12337_v8 = vpop.permute.xlu0 %7169 }
 0x2fd   :  { %v7402_v11 = vmul.f32 %v13391_v9, %v12147_v3  ;;  %v12291_v14 = vrot.slane %v11994_v4, %v9283_v16  ;;  %v8688_v36 = vsel %vm8645_vm9, %v8104_v39, 0.0  ;;  %v13393_v17 = vcombine.low %v11998_v12, %v13392_v30 }
 0x2fe   :  { %v7901_v22 = vcombine.low %v7893_v34, %v7900_v31  ;;  %v6596_v1 = vrot.slane %v13394_v52, %v9283_v16  ;;  %8689 = vadd.xlane.f32.xlu0 %v8688_v36  ;;  %v8011_v59 = vcombine.low %v7989_v32, %v7996_v38  ;;  %v12307_v4 = vrot.slane %v12013_v58, %v9283_v16  ;;  %v13397_v31 = vld [vmem:[#allocation26_spill] sm:$0xff] }
 0x2ff   :  { %v8026_v29 = vrot.slane %v13393_v17, %v9283_v16  ;;  %v8223_v20 = vrot.slane %v7402_v11, %v9283_v16  ;;  %v12303_v3 = vrot.slane %v12291_v14, %v9283_v16  ;;  %v12311_v12 = vrot.slane %v8295_v23, %v9283_v16  ;;  %v13398_v23 = vld [vmem:[#allocation29_spill] sm:$0xff]  ;;  %v13410_v36 = vld [vmem:[#allocation38_spill] sm:$0xff] }
 0x300   :  { %v8667_v50 = vsel %vm8641_vm10, %v7901_v22, 0.0  ;;  %v12314_v26 = vmul.f32 %v12106_v51, %v6539_v37  ;;  %v6604_v43 = vcombine.high %v6596_v1, %v6596_v1  ;;  %v8019_v27 = vrot.slane %v8011_v59, %v9283_v16  ;;  %v13402_v59 = vld [vmem:[#allocation50_spill] sm:$0xff] }
 0x301   :  { %8668 = vadd.xlane.f32.xlu1 %v8667_v50  ;;  %v8230_v54 = vrot.slane %v8223_v20, %v9283_v16  ;;  %v12320_v46 = vmul.f32 %v12108_v44, %v12303_v3  ;;  %v12324_v58 = vrot.slane %v12307_v4, %v9283_v16  ;;  %v13395_v47 = vcombine.high %v12134_v28, %v12134_v28  ;;  %v12339_v44 = vpop.permute.xlu1 %7171  ;;  %v13403_v50 = vld [vmem:[#allocation106_spill] sm:$0xff] }
 0x302   :  { %v12333_v34 = vrot.slane %v8294_v0, %v9283_v16  ;;  %v6612_v55 = vrot.slane %v6596_v1, %v9283_v16  ;;  %v6626_v24 = vrot.slane %v6604_v43, %v9283_v16  ;;  %v8027_v57 = vcombine.low %v8019_v27, %v8026_v29  ;;  %v13401_v1 = vld [vmem:[#allocation5_spill] sm:$0xff] }
 0x303   :  { %v12330_v51 = vmul.f32 %v13396_v21, %v13395_v47  ;;  %v8700_v32 = vsel %vm8645_vm9, %v8230_v54, 0.0  ;;  %v8296_v28 = vcombine.low %v12314_v26, %v12320_v46  ;;  %v7393_v39 = vmul.f32 %v13397_v31, %v12324_v58 }
 0x304   :  { %v12348_v37 = vmul.f32 %v13398_v23, %v12117_v61  ;;  %v13399_v38 = vcombine.high %v12158_v33, %v12158_v33  ;;  %8701 = vadd.xlane.f32.xlu0 %v8700_v32  ;;  %v6636_v22 = vcombine.high %v6626_v24, %v6626_v24  ;;  %v8679_v30 = vsel %vm8641_vm10, %v8027_v57, 0.0  ;;  %v13400_v61 = vld [vmem:[#allocation47_spill] sm:$0xff] }
 0x305   :  { %v8231_v0 = vcombine.low %v12330_v51, %v12214_v49  ;;  %v8160_v17 = vrot.slane %v7393_v39, %v9283_v16  ;;  %v7426_v29 = vmul.f32 %v13400_v61, %v6626_v24  ;;  %8680 = vadd.xlane.f32.xlu1 %v8679_v30  ;;  %v6634_v52 = vcombine.high %v6612_v55, %v6612_v55  ;;  %v12380_v24 = vpop.permute.xlu0 %7053  ;;  %v13405_v30 = vld [vmem:[#allocation77_spill] sm:$0xff] }
 0x306   :  { %v12356_v11 = vmul.f32 %v13396_v21, %v13399_v38  ;;  %v7428_v49 = vmul.f32 %v12143_v42, %v6636_v22  ;;  %v6360_v33 = vcombine.high %v13401_v1, %v13401_v1  ;;  %v6367_v20 = vrot.slane %v13402_v59, %v9283_v16 }
 0x307   :  { %v7425_v26 = vmul.f32 %v13403_v50, %v6612_v55  ;;  %v8167_v43 = vrot.slane %v8160_v17, %v9283_v16  ;;  %v6374_v27 = vrot.slane %v13401_v1, %v9283_v16  ;;  %v13404_v54 = vcombine.high %v13402_v59, %v13402_v59  ;;  %v12382_v55 = vpop.permute.xlu1 %7055  ;;  %v13409_v50 = vld [vmem:[#allocation90_spill] sm:$0xff] }
 0x308   :  { %v7427_v42 = vmul.f32 %v12141_v40, %v6634_v52  ;;  %v6637_v47 = vcombine.high %v12070_v5, %v12070_v5  ;;  %v6388_v21 = vrot.slane %v6360_v33, %v9283_v16  ;;  %v6389_v51 = vcombine.high %v6367_v20, %v6367_v20  ;;  %v13406_v5 = vld [vmem:[#allocation13_spill] sm:$0xff]  ;;  %v13408_v33 = vld [vmem:[#allocation39_spill] sm:$0xff] }
 0x309   :  { %v6381_v46 = vrot.slane %v13404_v54, %v9283_v16  ;;  %v8694_v57 = vsel %vm8645_vm9, %v8167_v43, 0.0  ;;  %v8359_v32 = vcombine.low %v7425_v26, %v7426_v29  ;;  %v6390_v39 = vcombine.high %v6374_v27, %v6374_v27  ;;  %v13407_v52 = vld [vmem:[#allocation17_spill] sm:$0xff]  ;;  %v13411_v29 = vld [vmem:[#allocation43_spill] sm:$0xff] }
 0x30a   :  { %8695 = vadd.xlane.f32.xlu1 %v8694_v57  ;;  %v8360_v38 = vcombine.low %v7427_v42, %v7428_v49  ;;  %v6392_v22 = vcombine.high %v6388_v21, %v6388_v21  ;;  %v7385_v40 = vmul.f32 %v13397_v31, %v6367_v20  ;;  %v7387_v61 = vmul.f32 %v13406_v5, %v6389_v51  ;;  %v13412_v49 = vld [vmem:[#allocation48_spill] sm:$0xff] }
 0x30b   :  { %v6391_v23 = vcombine.high %v6381_v46, %v6381_v46  ;;  %v7386_v17 = vmul.f32 %v13405_v30, %v6381_v46  ;;  %v7389_v59 = vmul.f32 %v13408_v33, %v6374_v27  ;;  %v7390_v54 = vmul.f32 %v13409_v50, %v6388_v21 }
 0x30c   :  { %v7391_v43 = vmul.f32 %v13410_v36, %v6390_v39  ;;  %v7392_v26 = vmul.f32 %v13411_v29, %v6392_v22  ;;  %v6645_v42 = vrot.slane %v13412_v49, %v9283_v16  ;;  %v6408_v31 = vcombine.high %v12307_v4, %v12307_v4  ;;  %v12402_v39 = vpop.permute.xlu0 %7117 }
 0x30d   :  { %v7388_v1 = vmul.f32 %v13407_v52, %v6391_v23  ;;  %v8105_v7 = vcombine.low %v7385_v40, %v7386_v17  ;;  %v7432_v20 = vmul.f32 %v12192_v15, %v6637_v47  ;;  %v8107_v51 = vcombine.low %v7389_v59, %v7390_v54  ;;  %v12404_v23 = vpop.permute.xlu1 %7119 }
 0x30e   :  { %v8388_v57 = vrot.slane %v8360_v38, %v9283_v16  ;;  %v8108_v27 = vcombine.low %v7391_v43, %v7392_v26  ;;  %v6661_v21 = vrot.slane %v6645_v42, %v9283_v16  ;;  %v8286_v36 = vrot.slane %v12356_v11, %v9283_v16 }
 0x30f   :  { %v8106_v46 = vcombine.low %v7387_v61, %v7388_v1  ;;  %v8115_v22 = vrot.slane %v8105_v7, %v9283_v16  ;;  %v6653_v30 = vcombine.high %v6645_v42, %v6645_v42  ;;  %v6694_v15 = vrot.slane %v12232_v18, %v9283_v16 }
 0x310   :  { %v8381_v47 = vrot.slane %v8359_v32, %v9283_v16  ;;  %v8129_v38 = vrot.slane %v8107_v51, %v9283_v16  ;;  %v8136_v17 = vrot.slane %v8108_v27, %v9283_v16  ;;  %v7433_v11 = vmul.f32 %v12194_v60, %v6661_v21  ;;  %v12434_v42 = vpop.permute.xlu0 %7149 }
 0x311   :  { %v8122_v40 = vrot.slane %v8106_v46, %v9283_v16  ;;  %v12415_v5 = vrot.slane %v8296_v28, %v9283_v16  ;;  %v6438_v7 = vcombine.high %v12324_v58, %v12324_v58  ;;  %v8241_v52 = vrot.slane %v8231_v0, %v9283_v16 }
 0x312   :  { %v8390_v1 = vcombine.low %v8381_v47, %v8388_v57  ;;  %v8138_v33 = vcombine.low %v8129_v38, %v8136_v17  ;;  %v8421_v59 = vcombine.low %v7432_v20, %v7433_v11  ;;  %v8293_v32 = vrot.slane %v8286_v36, %v9283_v16  ;;  %v7152_v20 = vpop.permute.xlu1 %7151 }
 0x313   :  { %v8137_v61 = vcombine.low %v8115_v22, %v8122_v40  ;;  %v12422_v50 = vrot.slane %v6653_v30, %v9283_v16  ;;  %v6710_v54 = vrot.slane %v6694_v15, %v9283_v16  ;;  %v13413_v60 = vcombine.low %v12036_v41, %v12039_v2 }
 0x314   :  { %v6702_v43 = vcombine.high %v6694_v15, %v6694_v15  ;;  %v8152_v0 = vrot.slane %v8138_v33, %v9283_v16  ;;  %v12432_v26 = vrot.slane %v8421_v59, %v9283_v16  ;;  %v6683_v49 = vcombine.high %v6661_v21, %v6661_v21 }
 0x315   :  { %v8248_v28 = vrot.slane %v13413_v60, %v9283_v16  ;;  %v8145_v29 = vrot.slane %v8137_v61, %v9283_v16  ;;  %v13414_v51 = vcombine.low %v12121_v45, %v12246_v48  ;;  %v6687_v2 = vcombine.high %v12232_v18, %v12232_v18  ;;  %v13417_v61 = vld [vmem:[#allocation7_spill] sm:$0xff] }
 0x316   :  { %v6724_v41 = vrot.slane %v6702_v43, %v9283_v16  ;;  %v8452_v36 = vcombine.low %v12167_v53, %v12432_v26  ;;  %v7434_v21 = vmul.f32 %v12228_v6, %v12422_v50  ;;  %v7441_v22 = vmul.f32 %v12255_v35, %v6710_v54  ;;  %v13415_v35 = vld [vmem:[#allocation8_spill] sm:$0xff]  ;;  %v7168_v43 = vpop.permute.xlu1 %7167 }
 0x317   :  { %v8263_v46 = vcombine.low %v8241_v52, %v8248_v28  ;;  %v8278_v57 = vrot.slane %v13414_v51, %v9283_v16  ;;  %v8153_v27 = vcombine.low %v8145_v29, %v8152_v0  ;;  %v7435_v40 = vmul.f32 %v12230_v63, %v6683_v49  ;;  %v13416_v63 = vld [vmem:[#allocation56_spill] sm:$0xff]  ;;  %v7166_v28 = vpop.permute.xlu0 %7165 }
 0x318   :  { %v7442_v45 = vmul.f32 %v12257_v10, %v6724_v41  ;;  %v6732_v48 = vcombine.high %v6710_v54, %v6710_v54  ;;  %v6734_v47 = vcombine.high %v6724_v41, %v6724_v41  ;;  %v6701_v18 = vrot.slane %v6687_v2, %v9283_v16  ;;  %v13420_v2 = vld [vmem:[#allocation9_spill] sm:$0xff] }
 0x319   :  { %v8271_v30 = vrot.slane %v8263_v46, %v9283_v16  ;;  %v8691_v15 = vsel %vm8641_vm10, %v8153_v27, 0.0  ;;  %v6736_v38 = vcombine.high %v12173_v19, %v12173_v19  ;;  %v8412_v11 = vrot.slane %v13415_v35, %v9283_v16 }
 0x31a   :  { %8692 = vadd.xlane.f32.xlu1 %v8691_v15  ;;  %v8484_v6 = vcombine.low %v7441_v22, %v7442_v45  ;;  %v13418_v52 = vcombine.low %v13416_v63, %v13417_v61  ;;  %v7444_v33 = vmul.f32 %v12284_v56, %v6734_v47  ;;  %v6703_v59 = vcombine.high %v6701_v18, %v6701_v18 }
 0x31b   :  { %v8279_v17 = vcombine.low %v8271_v30, %v8278_v57  ;;  %v12465_v54 = vrot.slane %v8390_v1, %v9283_v16  ;;  %v6743_v60 = vrot.slane %v12173_v19, %v9283_v16  ;;  %v8706_v29 = vsel %vm8645_vm9, %v8293_v32, 0.0  ;;  %v13419_v19 = vld [vmem:[#allocation10_spill] sm:$0xff] }
 0x31c   :  { %v12461_v10 = vrot.slane %v13418_v52, %v9283_v16  ;;  %v8422_v0 = vcombine.low %v7434_v21, %v7435_v40  ;;  %v12471_v49 = vrot.slane %v8484_v6, %v9283_v16  ;;  %v7443_v46 = vmul.f32 %v12282_v13, %v6732_v48 }
 0x31d   :  { %v6731_v51 = vrot.slane %v6703_v59, %v9283_v16  ;;  %v6750_v56 = vrot.slane %v6736_v38, %v9283_v16  ;;  %v6759_v57 = vrot.slane %v6743_v60, %v9283_v16  ;;  %v8419_v32 = vrot.slane %v8412_v11, %v9283_v16  ;;  %v7174_v11 = vpop.permute.xlu0 %7173 }
 0x31e   :  { %v8405_v1 = vcombine.low %v12461_v10, %v12465_v54  ;;  %8707 = vadd.xlane.f32.xlu1 %v8706_v29  ;;  %v8515_v41 = vcombine.low %v13419_v19, %v12471_v49  ;;  %v6341_v27 = vcombine.high %v13420_v2, %v13420_v2  ;;  %v6555_v13 = vcombine.high %v12291_v14, %v12291_v14 }
 0x31f   :  { %v8703_v21 = vsel %vm8641_vm10, %v8279_v17, 0.0  ;;  %v8485_v22 = vcombine.low %v7443_v46, %v7444_v33  ;;  %v6735_v40 = vcombine.high %v6731_v51, %v6731_v51  ;;  %v7449_v30 = vmul.f32 %v12339_v44, %v6759_v57  ;;  %v13421_v17 = vld [vmem:[#allocation57_spill] sm:$0xff]  ;;  %v7176_v44 = vpop.permute.xlu1 %7175 }
 0x320   :  { %v7382_v45 = vmul.f32 %v12380_v24, %v12111_v62  ;;  %v7383_v48 = vmul.f32 %v12382_v55, %v6341_v27  ;;  %v6577_v15 = vrot.slane %v6555_v13, %v9283_v16  ;;  %v6585_v47 = vcombine.high %v12303_v3, %v12303_v3  ;;  %v13423_v27 = vld [vmem:[#allocation11_spill] sm:$0xff]  ;;  %v13424_v13 = vld [vmem:[#allocation6_spill] sm:$0xff] }
 0x321   :  { %v6752_v38 = vcombine.high %v6750_v56, %v6750_v56  ;;  %v7448_v6 = vmul.f32 %v12337_v8, %v6735_v40  ;;  %v6685_v14 = vcombine.high %v12422_v50, %v12422_v50  ;;  %v7437_v35 = vmul.f32 %v7152_v20, %v13421_v17 }
 0x322   :  { %8704 = vadd.xlane.f32.xlu1 %v8703_v21  ;;  %v8045_v63 = vcombine.low %v7382_v45, %v7383_v48  ;;  %v6587_v62 = vcombine.high %v6577_v15, %v6577_v15  ;;  %v7418_v24 = vmul.f32 %v12402_v39, %v6577_v15  ;;  %v7419_v55 = vmul.f32 %v12404_v23, %v6585_v47 }
 0x323   :  { %v12501_v61 = vrot.slane %v8422_v0, %v9283_v16  ;;  %v8546_v3 = vcombine.low %v7448_v6, %v7449_v30  ;;  %v7436_v52 = vmul.f32 %v12434_v42, %v6685_v14  ;;  %v6717_v10 = vrot.slane %v6701_v18, %v9283_v16  ;;  %v13422_v0 = vld [vmem:[#allocation16_spill] sm:$0xff]  ;;  %v7180_v45 = vpop.permute.xlu1 %7179 }
 0x324   :  { %v8718_v50 = vsel %vm8645_vm9, %v8419_v32, 0.0  ;;  %v8073_v20 = vrot.slane %v8045_v63, %v9283_v16  ;;  %v7420_v33 = vmul.f32 %v13385_v25, %v6587_v62  ;;  %v8297_v59 = vcombine.low %v7418_v24, %v7419_v55 }
 0x325   :  { %v8507_v54 = vrot.slane %v8485_v22, %v9283_v16  ;;  %v12510_v39 = vrot.slane %v6752_v38, %v9283_v16  ;;  %v8423_v23 = vcombine.low %v7436_v52, %v7437_v35  ;;  %v7445_v29 = vmul.f32 %v7166_v28, %v6717_v10  ;;  %v7178_v22 = vpop.permute.xlu0 %7177  ;;  %v13426_v35 = vld [vmem:[#allocation51_spill] sm:$0xff] }
 0x326   :  { %8719 = vadd.xlane.f32.xlu1 %v8718_v50  ;;  %v8075_v46 = vcombine.low %v13422_v0, %v8073_v20  ;;  %v8325_v42 = vrot.slane %v8297_v59, %v9283_v16  ;;  %v7446_v18 = vmul.f32 %v7168_v43, %v6731_v51  ;;  %v6751_v2 = vcombine.high %v6743_v60, %v6743_v60  ;;  %v13427_v50 = vld [vmem:[#allocation92_spill] sm:$0xff] }
 0x327   :  { %v6733_v32 = vcombine.high %v6717_v10, %v6717_v10  ;;  %v13425_v25 = vcombine.low %v13423_v27, %v13424_v13  ;;  %v6781_v40 = vcombine.high %v6759_v57, %v6759_v57  ;;  %v8349_v30 = vrot.slane %v7420_v33, %v9283_v16  ;;  %v7184_v33 = vpop.permute.xlu1 %7183 }
 0x328   :  { %v8327_v28 = vcombine.low %v12415_v5, %v8325_v42  ;;  %v8486_v48 = vcombine.low %v7445_v29, %v7446_v18  ;;  %v6773_v15 = vrot.slane %v6751_v2, %v9283_v16  ;;  %v8089_v47 = vrot.slane %v8075_v46, %v9283_v16  ;;  %v13429_v18 = vld [vmem:[#allocation53_spill] sm:$0xff]  ;;  %v13430_v2 = vld [vmem:[#allocation20_spill] sm:$0xff] }
 0x329   :  { %v8082_v21 = vrot.slane %v13425_v25, %v9283_v16  ;;  %v8715_v60 = vsel %vm8641_vm10, %v8405_v1, 0.0  ;;  %v8451_v43 = vrot.slane %v8423_v23, %v9283_v16  ;;  %v7451_v51 = vmul.f32 %v7176_v44, %v6781_v40  ;;  %v7182_v10 = vpop.permute.xlu0 %7181  ;;  %v13428_v23 = vld [vmem:[#allocation55_spill] sm:$0xff] }
 0x32a   :  { %v8356_v38 = vrot.slane %v8349_v30, %v9283_v16  ;;  %8716 = vadd.xlane.f32.xlu1 %v8715_v60  ;;  %v8514_v57 = vrot.slane %v8486_v48, %v9283_v16  ;;  %v7450_v6 = vmul.f32 %v7174_v11, %v6773_v15  ;;  %v6766_v17 = vrot.slane %v6750_v56, %v9283_v16  ;;  %v13433_v60 = vld [vmem:[#allocation24_spill] sm:$0xff] }
 0x32b   :  { %v8090_v14 = vcombine.low %v8082_v21, %v8089_v47  ;;  %v8556_v5 = vrot.slane %v8546_v3, %v9283_v16  ;;  %v7447_v63 = vmul.f32 %v13426_v35, %v6733_v32  ;;  %v6783_v62 = vcombine.high %v6773_v15, %v6773_v15  ;;  %v13432_v47 = vld [vmem:[#allocation70_spill] sm:$0xff] }
 0x32c   :  { %v6430_v1 = vrot.slane %v6408_v31, %v9283_v16  ;;  %v8516_v44 = vcombine.low %v8507_v54, %v8514_v57  ;;  %v8547_v55 = vcombine.low %v7450_v6, %v7451_v51  ;;  %v7453_v52 = vmul.f32 %v7180_v45, %v6766_v17 }
 0x32d   :  { %v8685_v24 = vsel %vm8641_vm10, %v8090_v14, 0.0  ;;  %v8453_v11 = vcombine.low %v12501_v61, %v8451_v43  ;;  %v7395_v20 = vmul.f32 %v13427_v50, %v6438_v7  ;;  %v7452_v31 = vmul.f32 %v7178_v22, %v6783_v62 }
 0x32e   :  { %8686 = vadd.xlane.f32.xlu0 %v8685_v24  ;;  %v6440_v56 = vcombine.high %v6430_v1, %v6430_v1  ;;  %v7394_v3 = vmul.f32 %v13391_v9, %v6430_v1  ;;  %v8563_v4 = vrot.slane %v8547_v55, %v9283_v16  ;;  %v8712_v59 = vsel %vm8645_vm9, %v8356_v38, 0.0  ;;  %v13435_v1 = vld [vmem:[#allocation2_spill] sm:$0xff] }
 0x32f   :  { %v6782_v54 = vcombine.high %v6766_v17, %v6766_v17  ;;  %v8523_v9 = vrot.slane %v8515_v41, %v9283_v16  ;;  %v8530_v0 = vrot.slane %v8516_v44, %v9283_v16  ;;  %v8548_v46 = vcombine.low %v7452_v31, %v7453_v52  ;;  %v8654_v57 = vpop.xlane.xlu0 %8653 }
 0x330   :  { %v7396_v29 = vmul.f32 %v13428_v23, %v6440_v56  ;;  %v8168_v61 = vcombine.low %v7394_v3, %v7395_v20  ;;  %v8578_v58 = vcombine.low %v8556_v5, %v8563_v4  ;;  %v7454_v7 = vmul.f32 %v7182_v10, %v12510_v39  ;;  %v9171_v56 = vld [vmem:[%s12848_s0] sm:$0xff]  ;;  %v9172_v4 = vld [vmem:[%s12848_s0 + $0x38] sm:$0x1] }
 0x331   :  { %v7455_v42 = vmul.f32 %v7184_v33, %v6782_v54  ;;  %v7438_v32 = vmul.f32 %v13430_v2, %v13429_v18  ;;  %v8531_v25 = vcombine.low %v8523_v9, %v8530_v0  ;;  %v13431_v49 = vcombine.low %v12333_v34, %v12311_v12  ;;  %v9173_v9 = vld [vmem:[%s12848_s0 + $0x8] sm:$0x1] }
 0x332   :  { %8713 = vadd.xlane.f32.xlu0 %v8712_v59  ;;  %v8169_v27 = vcombine.low %v7396_v29, %v12348_v37  ;;  %v8178_v13 = vrot.slane %v8168_v61, %v9283_v16  ;;  %v8341_v41 = vrot.slane %v8327_v28, %v9283_v16  ;;  %v8538_v40 = vrot.slane %v7447_v63, %v9283_v16  ;;  %v9170_v63 = vld [vmem:[%s12848_s0 + $0x18] sm:$0x1] }
 0x333   :  { %v8549_v21 = vcombine.low %v7454_v7, %v7455_v42  ;;  %v8334_v19 = vrot.slane %v13431_v49, %v9283_v16  ;;  %v8727_v30 = vsel %vm8641_vm10, %v8531_v25, 0.0  ;;  %v8460_v37 = vrot.slane %v8452_v36, %v9283_v16  ;;  %v8644_v44 = vpop.xlane.xlu0 %8643  ;;  %v9175_v49 = vld [vmem:[%s12848_s0 + $0x20] sm:$0xff] }
 0x334   :  { %v8185_v22 = vrot.slane %v8169_v27, %v9283_v16  ;;  %v8467_v45 = vrot.slane %v8453_v11, %v9283_v16  ;;  %v8570_v48 = vrot.slane %v8548_v46, %v9283_v16  ;;  %8728 = vadd.xlane.f32.xlu1 %v8727_v30  ;;  %v8545_v28 = vrot.slane %v8538_v40, %v9283_v16 }
 0x335   :  { %v8577_v12 = vrot.slane %v8549_v21, %v9283_v16  ;;  %v8342_v34 = vcombine.low %v8334_v19, %v8341_v41  ;;  %v13434_v43 = vcombine.low %v13432_v47, %v13433_v60  ;;  %v8475_v26 = vrot.slane %v7438_v32, %v9283_v16 }
 0x336   :  { %v8200_v15 = vcombine.low %v8178_v13, %v8185_v22  ;;  %v8468_v38 = vcombine.low %v8460_v37, %v8467_v45  ;;  %v8730_v6 = vsel %vm8645_vm9, %v8545_v28, 0.0  ;;  %v8742_v14 = vmax.f32 %v8654_v57, 0.0  ;;  %v9177_v45 = vld [vmem:[%s12848_s0 + $0x30] sm:$0xff] }
 0x337   :  { %v8215_v51 = vrot.slane %v13434_v43, %v9283_v16  ;;  %v8579_v53 = vcombine.low %v8570_v48, %v8577_v12  ;;  %v8586_v17 = vrot.slane %v8578_v58, %v9283_v16  ;;  %vm8774_vm12 = vcmp.eq.s32.totalorder %v13435_v1, 0 }
 0x338   :  { %v8208_v36 = vrot.slane %v8200_v15, %v9283_v16  ;;  %8731 = vadd.xlane.f32.xlu1 %v8730_v6  ;;  %v8811_v62 = vmul.f32 %v9170_v63, %v8742_v14  ;;  %v8739_v55 = vmax.f32 %v8644_v44, 0.0  ;;  %v8482_v11 = vrot.slane %v8475_v26, %v9283_v16  ;;  %v8666_v50 = vpop.xlane.xlu0 %8665  ;;  %v9178_v15 = vld [vmem:[%s12848_s0 + $0x58] sm:$0x1]  ;;  %v9180_v26 = vld [vmem:[%s12848_s0 + $0x68] sm:$0x1] }
 0x339   :  { %v8593_v5 = vrot.slane %v8579_v53, %v9283_v16  ;;  %v8746_v20 = vmax.f32 %v8666_v50, 0.0  ;;  %v6784_v59 = vcombine.high %v12510_v39, %v12510_v39  ;;  %v8709_v61 = vsel %vm8641_vm10, %v8342_v34, 0.0 }
 0x33a   :  { %v8216_v35 = vcombine.low %v8208_v36, %v8215_v51  ;;  %8844 = vst.msk [vmem:[%s12851_s4 + $0x18] sm:$0x1] %vm8841_vm11, %v8811_v62  ;;  %v8776_v10 = vsel %vm8774_vm12, 1.0, %v8739_v55  ;;  %v8724_v33 = vsel %vm8645_vm9, %v8482_v11, 0.0  ;;  %v8721_v7 = vsel %vm8641_vm10, %v8468_v38, 0.0  ;;  %v9179_v51 = vld [vmem:[%s12848_s0 + $0x10] sm:$0xff] }
 0x33b   :  { %v8594_v24 = vcombine.low %v8586_v17, %v8593_v5  ;;  %v8808_v3 = vmul.f32 %v9171_v56, %v8776_v10  ;;  %v8815_v31 = vmul.f32 %v9172_v4, %v8746_v20  ;;  %v7456_v29 = vmul.f32 %v12337_v8, %v6784_v59  ;;  %v9174_v8 = vld [vmem:[%s12848_s0 + $0x28] sm:$0x1]  ;;  %v9181_v5 = vld [vmem:[%s12848_s0 + $0x50] sm:$0xff]  ;;  %v9182_v55 = vld [vmem:[%s12848_s0 + $0x78] sm:$0x1] }
 0x33c   :  { %v8697_v52 = vsel %vm8641_vm10, %v8216_v35, 0.0  ;;  %v9183_v56 = vld [vmem:[%s12848_s0 + $0x40] sm:$0xff]  ;;  %v9184_v4 = vld [vmem:[%s12848_s0 + $0x98] sm:$0x1] }
 0x33d   :  { %8698 = vadd.xlane.f32.xlu0 %v8697_v52  ;;  %8840 = vst.msk [vmem:[%s12851_s4] sm:$0xff] %vm2015_vm1, %v8808_v3  ;;  %v8601_v46 = vrot.slane %v7456_v29, %v9283_v16  ;;  %v8733_v18 = vsel %vm8641_vm10, %v8594_v24, 0.0 }
 0x33e   :  { %8848 = vst.msk [vmem:[%s12851_s4 + $0x38] sm:$0x1] %vm8841_vm11, %v8815_v31 }
 0x33f   :  { %v8648_v54 = vpop.xlane.xlu1 %8647  ;;  %v8608_v2 = vrot.slane %v8601_v46, %v9283_v16  ;;  %v9176_v16 = vld [vmem:[%s12848_s0 + $0x48] sm:$0x1] }
 0x340   :  { %v8740_v23 = vmax.f32 %v8648_v54, 0.0  ;;  %v9185_v54 = vld [vmem:[%s12848_s0 + $0x60] sm:$0xff] }
 0x341   :  { %8725 = vadd.xlane.f32.xlu0 %v8724_v33  ;;  %v8736_v32 = vsel %vm8645_vm9, %v8608_v2, 0.0  ;;  %v9188_v2 = vld [vmem:[%s12848_s0 + $0xa8] sm:$0x1] }
 0x342   :  { %v8809_v0 = vmul.f32 %v9173_v9, %v8740_v23  ;;  %v9186_v9 = vld [vmem:[%s12848_s0 + $0x88] sm:$0x1] }
 0x343   :  { %v8660_v58 = vpop.xlane.xlu1 %8659 }
 0x344   :  { %8842 = vst.msk [vmem:[%s12851_s4 + $0x8] sm:$0x1] %vm8841_vm11, %v8809_v0  ;;  %v8744_v39 = vmax.f32 %v8660_v58, 0.0 }
 0x345   :  { %8710 = vadd.xlane.f32.xlu0 %v8709_v61 }
 0x346   :  { %v8813_v42 = vmul.f32 %v9174_v8, %v8744_v39 }
 0x348   :  { %8846 = vst.msk [vmem:[%s12851_s4 + $0x28] sm:$0x1] %vm8841_vm11, %v8813_v42 }
 0x349   :  { %8722 = vadd.xlane.f32.xlu0 %v8721_v7  ;;  %v9187_v7 = vld [vmem:[%s12848_s0 + $0x80] sm:$0xff] }
 0x34d   :  { %8734 = vadd.xlane.f32.xlu0 %v8733_v18 }
 0x350   :  { %v8657_v27 = vpop.xlane.xlu0 %8656 }
 0x351   :  { %8737 = vadd.xlane.f32.xlu0 %v8736_v32  ;;  %v8743_v13 = vmax.f32 %v8657_v27, 0.0  ;;  %v8672_v21 = vpop.xlane.xlu1 %8671 }
 0x352   :  { %v8748_v41 = vmax.f32 %v8672_v21, 0.0  ;;  %v9189_v21 = vld [vmem:[%s12848_s0 + $0xa0] sm:$0xff] }
 0x353   :  { %v8780_v25 = vsel %vm8774_vm12, 1.0, %v8743_v13 }
 0x354   :  { %v8812_v19 = vmul.f32 %v9175_v49, %v8780_v25  ;;  %v8817_v40 = vmul.f32 %v9176_v16, %v8748_v41  ;;  %v9190_v16 = vld [vmem:[%s12848_s0 + $0xc8] sm:$0x1] }
 0x356   :  { %8845 = vst.msk [vmem:[%s12851_s4 + $0x20] sm:$0xff] %vm2015_vm1, %v8812_v19 }
 0x357   :  { %8850 = vst.msk [vmem:[%s12851_s4 + $0x48] sm:$0x1] %vm8841_vm11, %v8817_v40 }
 0x36d   :  { %v8663_v22 = vpop.xlane.xlu0 %8662 }
 0x36e   :  { %v8745_v30 = vmax.f32 %v8663_v22, 0.0 }
 0x370   :  { %v8782_v37 = vsel %vm8774_vm12, 1.0, %v8745_v30 }
 0x371   :  { %v8814_v48 = vmul.f32 %v9177_v45, %v8782_v37 }
 0x372   :  { %v8678_v12 = vpop.xlane.xlu0 %8677 }
 0x373   :  { %8847 = vst.msk [vmem:[%s12851_s4 + $0x30] sm:$0xff] %vm2015_vm1, %v8814_v48  ;;  %v8750_v34 = vmax.f32 %v8678_v12, 0.0  ;;  %v9191_v48 = vld [vmem:[%s12848_s0 + $0xc0] sm:$0xff] }
 0x375   :  { %v8651_v28 = vpop.xlane.xlu1 %8650  ;;  %v8819_v47 = vmul.f32 %v9178_v15, %v8750_v34  ;;  %v9192_v15 = vld [vmem:[%s12848_s0 + $0x70] sm:$0xff] }
 0x376   :  { %v8741_v60 = vmax.f32 %v8651_v28, 0.0 }
 0x377   :  { %8852 = vst.msk [vmem:[%s12851_s4 + $0x58] sm:$0x1] %vm8841_vm11, %v8819_v47 }
 0x378   :  { %v8778_v43 = vsel %vm8774_vm12, 1.0, %v8741_v60 }
 0x379   :  { %v8810_v38 = vmul.f32 %v9179_v51, %v8778_v43  ;;  %v8684_v57 = vpop.xlane.xlu1 %8683  ;;  %v9193_v51 = vld [vmem:[%s12848_s0 + $0xb8] sm:$0x1] }
 0x37a   :  { %v8752_v53 = vmax.f32 %v8684_v57, 0.0 }
 0x37b   :  { %8843 = vst.msk [vmem:[%s12851_s4 + $0x10] sm:$0xff] %vm2015_vm1, %v8810_v38 }
 0x37c   :  { %v8821_v36 = vmul.f32 %v9180_v26, %v8752_v53 }
 0x37e   :  { %8854 = vst.msk [vmem:[%s12851_s4 + $0x68] sm:$0x1] %vm8841_vm11, %v8821_v36  ;;  %v9194_v36 = vld [vmem:[%s12848_s0 + $0xe0] sm:$0xff] }
 0x386   :  { %v8675_v6 = vpop.xlane.xlu0 %8674 }
 0x387   :  { %v8749_v14 = vmax.f32 %v8675_v6, 0.0 }
 0x389   :  { %v8786_v17 = vsel %vm8774_vm12, 1.0, %v8749_v14 }
 0x38a   :  { %v8818_v35 = vmul.f32 %v9181_v5, %v8786_v17  ;;  %v9195_v5 = vld [vmem:[%s12848_s0 + $0xe8] sm:$0x1] }
 0x38b   :  { %v8690_v63 = vpop.xlane.xlu0 %8689 }
 0x38c   :  { %8851 = vst.msk [vmem:[%s12851_s4 + $0x50] sm:$0xff] %vm2015_vm1, %v8818_v35  ;;  %v8754_v62 = vmax.f32 %v8690_v63, 0.0 }
 0x38e   :  { %v8669_v44 = vpop.xlane.xlu1 %8668  ;;  %v8823_v52 = vmul.f32 %v9182_v55, %v8754_v62 }
 0x38f   :  { %v8747_v24 = vmax.f32 %v8669_v44, 0.0 }
 0x390   :  { %8856 = vst.msk [vmem:[%s12851_s4 + $0x78] sm:$0x1] %vm8841_vm11, %v8823_v52 }
 0x391   :  { %v8784_v11 = vsel %vm8774_vm12, 1.0, %v8747_v24  ;;  %v8702_v10 = vpop.xlane.xlu0 %8701  ;;  %v9196_v24 = vld [vmem:[%s12848_s0 + $0x90] sm:$0xff] }
 0x392   :  { %v8816_v3 = vmul.f32 %v9183_v56, %v8784_v11  ;;  %v8758_v50 = vmax.f32 %v8702_v10, 0.0  ;;  %v8681_v20 = vpop.xlane.xlu1 %8680  ;;  %v9197_v10 = vld [vmem:[%s12848_s0 + $0xd8] sm:$0x1] }
 0x393   :  { %v8751_v33 = vmax.f32 %v8681_v20, 0.0 }
 0x394   :  { %8849 = vst.msk [vmem:[%s12851_s4 + $0x40] sm:$0xff] %vm2015_vm1, %v8816_v3  ;;  %v8827_v31 = vmul.f32 %v9184_v4, %v8758_v50 }
 0x395   :  { %v8788_v59 = vsel %vm8774_vm12, 1.0, %v8751_v33  ;;  %v9198_v33 = vld [vmem:[%s12848_s0 + $0xb0] sm:$0xff] }
 0x396   :  { %8860 = vst.msk [vmem:[%s12851_s4 + $0x98] sm:$0x1] %vm8841_vm11, %v8827_v31  ;;  %v8820_v23 = vmul.f32 %v9185_v54, %v8788_v59 }
 0x397   :  { %v8696_v29 = vpop.xlane.xlu1 %8695 }
 0x398   :  { %v8756_v61 = vmax.f32 %v8696_v29, 0.0  ;;  %8853 = vst.msk [vmem:[%s12851_s4 + $0x60] sm:$0xff] %vm2015_vm1, %v8820_v23  ;;  %v9199_v23 = vld [vmem:[%s12848_s0 + $0xd0] sm:$0xff] }
 0x39a   :  { %v8825_v0 = vmul.f32 %v9186_v9, %v8756_v61 }
 0x39c   :  { %8858 = vst.msk [vmem:[%s12851_s4 + $0x88] sm:$0x1] %vm8841_vm11, %v8825_v0 }
 0x3a7   :  { %v8693_v58 = vpop.xlane.xlu1 %8692 }
 0x3a8   :  { %v8755_v39 = vmax.f32 %v8693_v58, 0.0  ;;  %v9200_v58 = vld [vmem:[%s12848_s0 + $0xf0] sm:$0xff] }
 0x3aa   :  { %v8792_v46 = vsel %vm8774_vm12, 1.0, %v8755_v39 }
 0x3ab   :  { %v8824_v8 = vmul.f32 %v9187_v7, %v8792_v46  ;;  %v8708_v42 = vpop.xlane.xlu1 %8707 }
 0x3ac   :  { %v8760_v18 = vmax.f32 %v8708_v42, 0.0 }
 0x3ad   :  { %8857 = vst.msk [vmem:[%s12851_s4 + $0x80] sm:$0xff] %vm2015_vm1, %v8824_v8  ;;  %v9201_v8 = vld [vmem:[%s12848_s0 + $0xf8] sm:$0x1] }
 0x3ae   :  { %v8829_v32 = vmul.f32 %v9188_v2, %v8760_v18 }
 0x3af   :  { %v8705_v27 = vpop.xlane.xlu1 %8704 }
 0x3b0   :  { %8862 = vst.msk [vmem:[%s12851_s4 + $0xa8] sm:$0x1] %vm8841_vm11, %v8829_v32  ;;  %v8759_v13 = vmax.f32 %v8705_v27, 0.0 }
 0x3b2   :  { %v8796_v25 = vsel %vm8774_vm12, 1.0, %v8759_v13 }
 0x3b3   :  { %v8828_v49 = vmul.f32 %v9189_v21, %v8796_v25  ;;  %v8720_v19 = vpop.xlane.xlu1 %8719 }
 0x3b4   :  { %v8764_v41 = vmax.f32 %v8720_v19, 0.0 }
 0x3b5   :  { %8861 = vst.msk [vmem:[%s12851_s4 + $0xa0] sm:$0xff] %vm2015_vm1, %v8828_v49 }
 0x3b6   :  { %v8833_v40 = vmul.f32 %v9190_v16, %v8764_v41 }
 0x3b7   :  { %v8717_v22 = vpop.xlane.xlu1 %8716 }
 0x3b8   :  { %8866 = vst.msk [vmem:[%s12851_s4 + $0xc8] sm:$0x1] %vm8841_vm11, %v8833_v40  ;;  %v8763_v30 = vmax.f32 %v8717_v22, 0.0 }
 0x3ba   :  { %v8800_v37 = vsel %vm8774_vm12, 1.0, %v8763_v30 }
 0x3bb   :  { %v8687_v45 = vpop.xlane.xlu0 %8686  ;;  %v8832_v12 = vmul.f32 %v9191_v48, %v8800_v37 }
 0x3bc   :  { %v8753_v34 = vmax.f32 %v8687_v45, 0.0 }
 0x3bd   :  { %8865 = vst.msk [vmem:[%s12851_s4 + $0xc0] sm:$0xff] %vm2015_vm1, %v8832_v12 }
 0x3be   :  { %v8790_v28 = vsel %vm8774_vm12, 1.0, %v8753_v34 }
 0x3bf   :  { %v8822_v47 = vmul.f32 %v9192_v15, %v8790_v28  ;;  %v8714_v60 = vpop.xlane.xlu0 %8713 }
 0x3c0   :  { %v8762_v43 = vmax.f32 %v8714_v60, 0.0 }
 0x3c1   :  { %8855 = vst.msk [vmem:[%s12851_s4 + $0x70] sm:$0xff] %vm2015_vm1, %v8822_v47  ;;  %v8729_v57 = vpop.xlane.xlu1 %8728 }
 0x3c2   :  { %v8831_v38 = vmul.f32 %v9193_v51, %v8762_v43  ;;  %v8767_v53 = vmax.f32 %v8729_v57, 0.0 }
 0x3c4   :  { %8864 = vst.msk [vmem:[%s12851_s4 + $0xb8] sm:$0x1] %vm8841_vm11, %v8831_v38  ;;  %v8804_v26 = vsel %vm8774_vm12, 1.0, %v8767_v53 }
 0x3c5   :  { %v8836_v6 = vmul.f32 %v9194_v36, %v8804_v26  ;;  %v8732_v14 = vpop.xlane.xlu1 %8731 }
 0x3c6   :  { %v8768_v17 = vmax.f32 %v8732_v14, 0.0 }
 0x3c7   :  { %8869 = vst.msk [vmem:[%s12851_s4 + $0xe0] sm:$0xff] %vm2015_vm1, %v8836_v6 }
 0x3c8   :  { %v8837_v35 = vmul.f32 %v9195_v5, %v8768_v17 }
 0x3ca   :  { %v8699_v63 = vpop.xlane.xlu0 %8698  ;;  %8870 = vst.msk [vmem:[%s12851_s4 + $0xe8] sm:$0x1] %vm8841_vm11, %v8837_v35 }
 0x3cb   :  { %v8757_v62 = vmax.f32 %v8699_v63, 0.0 }
 0x3cd   :  { %v8794_v44 = vsel %vm8774_vm12, 1.0, %v8757_v62 }
 0x3ce   :  { %v8826_v55 = vmul.f32 %v9196_v24, %v8794_v44  ;;  %v8726_v52 = vpop.xlane.xlu0 %8725 }
 0x3cf   :  { %v8766_v11 = vmax.f32 %v8726_v52, 0.0 }
 0x3d0   :  { %8859 = vst.msk [vmem:[%s12851_s4 + $0x90] sm:$0xff] %vm2015_vm1, %v8826_v55 }
 0x3d1   :  { %v8835_v56 = vmul.f32 %v9197_v10, %v8766_v11 }
 0x3d2   :  { %v8711_v3 = vpop.xlane.xlu0 %8710 }
 0x3d3   :  { %8868 = vst.msk [vmem:[%s12851_s4 + $0xd8] sm:$0x1] %vm8841_vm11, %v8835_v56  ;;  %v8761_v50 = vmax.f32 %v8711_v3, 0.0 }
 0x3d5   :  { %v8798_v20 = vsel %vm8774_vm12, 1.0, %v8761_v50 }
 0x3d6   :  { %v8830_v4 = vmul.f32 %v9198_v33, %v8798_v20  ;;  %v8723_v31 = vpop.xlane.xlu0 %8722 }
 0x3d7   :  { %v8765_v59 = vmax.f32 %v8723_v31, 0.0 }
 0x3d8   :  { %8863 = vst.msk [vmem:[%s12851_s4 + $0xb0] sm:$0xff] %vm2015_vm1, %v8830_v4 }
 0x3d9   :  { %v8802_v54 = vsel %vm8774_vm12, 1.0, %v8765_v59 }
 0x3da   :  { %v8834_v29 = vmul.f32 %v9199_v23, %v8802_v54  ;;  %v8735_v61 = vpop.xlane.xlu0 %8734 }
 0x3db   :  { %v8769_v9 = vmax.f32 %v8735_v61, 0.0 }
 0x3dc   :  { %8867 = vst.msk [vmem:[%s12851_s4 + $0xd0] sm:$0xff] %vm2015_vm1, %v8834_v29 }
 0x3dd   :  { %v8806_v0 = vsel %vm8774_vm12, 1.0, %v8769_v9 }
 0x3de   :  { %v8838_v39 = vmul.f32 %v9200_v58, %v8806_v0  ;;  %v8738_v46 = vpop.xlane.xlu0 %8737 }
 0x3df   :  { %v8770_v7 = vmax.f32 %v8738_v46, 0.0 }
 0x3e0   :  { %8871 = vst.msk [vmem:[%s12851_s4 + $0xf0] sm:$0xff] %vm2015_vm1, %v8838_v39 }
 0x3e1   :  { %v8839_v42 = vmul.f32 %v9201_v8, %v8770_v7 }
 0x3e3   :  { %8872 = vst.msk [vmem:[%s12851_s4 + $0xf8] sm:$0x1] %vm8841_vm11, %v8839_v42 }

</bundles_post_ra>
